<compile_context>
chip_gen: v7x
topology: tpu7x:2x2x1
jax: 0.10.0
libtpu: 0.0.40
codegen_flags: <defaults>
</compile_context>

<pallas_src>
import math
from functools import partial

import jax
import jax.numpy as jnp
from jax.experimental import pallas as pl
from jax.experimental.pallas import tpu as pltpu

SN_EPS = 1e-5   # SwitchNorm2d eps
BN_EPS = 1e-5   # BatchNorm1d eps


def gating_kernel(mw_ref, vw_ref,      # SMEM (3,), (3,)  softmaxed mixing weights
                  sn_ref,              # SMEM (2,)        [sn_gamma, sn_beta]  (C == 1)
                  x_ref,               # VMEM (N, F)      f32 input, F = C*H*W
                  w_ref,               # VMEM (F, Kp)     bf16 Linear weight (lane-padded)
                  bn_g_ref, bn_b_ref,  # VMEM (1, Kp)     f32 BatchNorm1d affine (padded)
                  out_ref):            # VMEM (N, Kp)     f32 output
    x = x_ref[...]                                                    # (N, F) f32
    hw = x.shape[-1]                                                  # C == 1 -> HW == F (HW > 1 assumed)
    inv_hw = 1.0 / hw

    # ---- SwitchNorm2d, C == 1 (training-mode statistics), one pass over x ----
    s1 = jnp.sum(x, axis=-1, keepdims=True)                           # (N, 1)  XLU lane reduce
    s2 = jnp.sum(x * x, axis=-1, keepdims=True)                       # (N, 1)
    mean_in = s1 * inv_hw
    ex2 = s2 * inv_hw                                                 # E[x^2] per row
    var_in = (ex2 - mean_in * mean_in) * (hw / (hw - 1.0))            # unbiased, like torch.var
    mean_ln = mean_in                                                 # mean over C==1 channel
    temp = var_in + mean_in * mean_in
    var_ln = temp - mean_ln * mean_ln
    mean_bn = jnp.mean(mean_in, axis=0, keepdims=True)                # (1, 1)
    var_bn = jnp.mean(temp, axis=0, keepdims=True) - mean_bn * mean_bn

    mw0, mw1, mw2 = mw_ref[0], mw_ref[1], mw_ref[2]
    vw0, vw1, vw2 = vw_ref[0], vw_ref[1], vw_ref[2]
    mean = mw0 * mean_in + mw1 * mean_ln + mw2 * mean_bn              # (N, 1)
    var = vw0 * var_in + vw1 * var_ln + vw2 * var_bn                  # (N, 1)
    var = jnp.maximum(var, 0.0)                                       # guard E[x^2]-E[x]^2 cancellation

    # Fold sn_gamma into the rsqrt scale -> one FMA over the big (N, F) tensor.
    g = sn_ref[0]
    b = sn_ref[1]
    scale = g * jax.lax.rsqrt(var + SN_EPS)                           # (N, 1), EUP rsqrt on small stats
    shift = b - mean * scale                                          # (N, 1)
    xn = x * scale + shift                                            # (N, F), f32 elementwise (v5e-safe)

    # ---- Reshape(flat_dim0) is a no-op on the 2D view + Linear ----
    # bf16 MXU matmul with f32 accumulation.  Linear bias intentionally
    # omitted: training-mode BatchNorm1d subtracts the per-column batch mean,
    # so a per-column constant bias cancels exactly.
    y = jnp.dot(xn.astype(w_ref.dtype), w_ref[...],
                preferred_element_type=jnp.float32)                   # (N, Kp) f32

    # ---- BatchNorm1d (training mode: biased batch variance) ----
    mu = jnp.mean(y, axis=0, keepdims=True)                           # (1, Kp)
    yc = y - mu
    v = jnp.mean(yc * yc, axis=0, keepdims=True)                      # (1, Kp)
    # Padded columns K..Kp: v == 0 -> bn_scale = rsqrt(eps), but yc == 0 there,
    # so the padded output is exactly 0 (no NaN path).
    bn_scale = bn_g_ref[...] * jax.lax.rsqrt(v + BN_EPS)              # (1, Kp)
    out_ref[...] = yc * bn_scale + bn_b_ref[...]


def pack_gating_params(params):
    """One-time parameter packing (do NOT call per forward pass).

    Pads / casts the Linear weight and BatchNorm affine to the lane-aligned
    Kp = ceil(K/128)*128 layout and pre-softmaxes the SwitchNorm mixing
    weights, so the per-call path is only reshape + pallas_call.
    The Linear bias is deliberately excluded (cancels under training-mode BN).
    """
    F, K = params["w"].shape
    Kp = ((K + 127) // 128) * 128   # lane-pad output dim -> unmasked stores, 128-multiple MXU N dim
    return {
        "mean_w": jax.nn.softmax(params["sn_mean_weight"]).astype(jnp.float32),
        "var_w": jax.nn.softmax(params["sn_var_weight"]).astype(jnp.float32),
        "sn_gb": jnp.concatenate([params["sn_gamma"].reshape(-1)[:1],
                                  params["sn_beta"].reshape(-1)[:1]]).astype(jnp.float32),
        "w_pad": jnp.zeros((F, Kp), jnp.bfloat16).at[:, :K].set(
            params["w"].astype(jnp.bfloat16)),
        "bn_g": jnp.ones((1, Kp), jnp.float32).at[0, :K].set(
            params["bn_gamma"].astype(jnp.float32)),
        "bn_b": jnp.zeros((1, Kp), jnp.float32).at[0, :K].set(
            params["bn_beta"].astype(jnp.float32)),
        "num_blocks": K,
        "flat_dim": F,
    }


@partial(jax.jit, static_argnames=("num_blocks", "pad_output"))
def _gating_forward(x_nchw, mean_w, var_w, sn_gb, w_pad, bn_g, bn_b,
                    *, num_blocks, pad_output):
    N, C, H, W = x_nchw.shape
    F = C * H * W
    Kp = w_pad.shape[1]
    x2d = x_nchw.reshape(N, F).astype(jnp.float32)

    smem = pl.BlockSpec(memory_space=pltpu.MemorySpace.SMEM)
    vmem = pl.BlockSpec(memory_space=pltpu.MemorySpace.VMEM)

    cost = pl.CostEstimate(
        flops=2 * N * F * Kp + 8 * N * F + 6 * N * Kp,     # matmul + normalize passes
        transcendentals=N + Kp,                            # rsqrt on the stat tensors
        bytes_accessed=N * F * 4 + F * Kp * 2 + 2 * Kp * 4 + N * Kp * 4,
    )

    out_pad = pl.pallas_call(
        gating_kernel,
        out_shape=jax.ShapeDtypeStruct((N, Kp), jnp.float32),
        in_specs=[smem, smem, smem, vmem, vmem, vmem, vmem],
        out_specs=vmem,
        cost_estimate=cost,
        compiler_params=pltpu.CompilerParams(vmem_limit_bytes=32 * 1024 * 1024),
    )(mean_w, var_w, sn_gb, x2d, w_pad, bn_g, bn_b)

    if pad_output:
        return out_pad                  # (N, Kp) padded layout, no post-kernel copy
    return out_pad[:, :num_blocks]      # (N, K)  semantic layout


def gating_layer_forward(x_nchw, packed, *, pad_output=False):
    """Returns (gating_score, trans_weight); with seperate_trans=0 they are identical."""
    N, C, H, W = x_nchw.shape
    # TODO(synk): general C > 1 needs per-channel (N, C, HW) SwitchNorm statistics.
    assert C == 1, "fused kernel currently supports the C==1 (mnist) configuration"
    assert H * W > 1, "torch.var-style unbiased variance divides by HW - 1"
    out = _gating_forward(x_nchw, packed["mean_w"], packed["var_w"], packed["sn_gb"],
                          packed["w_pad"], packed["bn_g"], packed["bn_b"],
                          num_blocks=packed["num_blocks"], pad_output=pad_output)
    return out, out   # seperate_trans == 0


def gating_layer_ref(x_nchw, params):
    """Pure-JAX f32 reference of the original forward (bias included)."""
    N, C, H, W = x_nchw.shape
    x = x_nchw.reshape(N, C, H * W).astype(jnp.float32)
    mean_w = jax.nn.softmax(params["sn_mean_weight"])
    var_w = jax.nn.softmax(params["sn_var_weight"])
    mean_in = jnp.mean(x, -1, keepdims=True)
    var_in = jnp.sum((x - mean_in) ** 2, -1, keepdims=True) / (H * W - 1)
    mean_ln = jnp.mean(mean_in, 1, keepdims=True)
    temp = var_in + mean_in ** 2
    var_ln = jnp.mean(temp, 1, keepdims=True) - mean_ln ** 2
    mean_bn = jnp.mean(mean_in, 0, keepdims=True)
    var_bn = jnp.mean(temp, 0, keepdims=True) - mean_bn ** 2
    mean = mean_w[0] * mean_in + mean_w[1] * mean_ln + mean_w[2] * mean_bn
    var = var_w[0] * var_in + var_w[1] * var_ln + var_w[2] * var_bn
    xn = (x - mean) / jnp.sqrt(var + SN_EPS)
    xn = xn * params["sn_gamma"].reshape(1, C, 1) + params["sn_beta"].reshape(1, C, 1)
    xf = xn.reshape(N, -1)
    y = xf @ params["w"] + params["b"]
    mu = jnp.mean(y, 0, keepdims=True)
    v = jnp.mean((y - mu) ** 2, 0, keepdims=True)
    return (y - mu) / jnp.sqrt(v + BN_EPS) * params["bn_gamma"] + params["bn_beta"]


def num_gating_blocks(param_sizes, fine_grained_block_split=100):
    """Replicates GatingLayer.__init__ block-splitting count (constructor-only glue)."""
    total = 0
    for sz in param_sizes:
        split_num = fine_grained_block_split if sz >= fine_grained_block_split else sz
        size_each = math.ceil(sz / split_num)
        split_num = math.ceil(sz / size_each)
        total += split_num
    return total


if __name__ == "__main__":
    # dataset_name='mnist' -> IN_PLANES=1, input_feat_size = 1*28*28 = 784.
    # N=256 (per review): fills the MXU M dimension on v6e/v7x and amortizes
    # the weight DMA + launch overhead; x is still <1 MiB f32 (fits VMEM on
    # all generations with a single whole-array block).
    N, C, H, W = 256, 1, 28, 28
    F = C * H * W

    # synthetic "model_to_mask": MLP Linear(784,32) + Linear(32,10)
    model_param_sizes = [784 * 32, 32, 32 * 10, 10]
    K = num_gating_blocks(model_param_sizes, fine_grained_block_split=100)  # = 222

    key = jax.random.PRNGKey(0)
    kx, kw, kb = jax.random.split(key, 3)
    x = jax.random.normal(kx, (N, C, H, W), dtype=jnp.float32)

    # Deterministic parameter init (shapes follow the module __init__ / reset_parameters)
    limit = 1.0 / math.sqrt(F)
    params = {
        # SwitchNorm2d(C)
        "sn_gamma": jnp.ones((C,), jnp.float32),
        "sn_beta": jnp.zeros((C,), jnp.float32),
        "sn_mean_weight": jnp.ones((3,), jnp.float32),
        "sn_var_weight": jnp.ones((3,), jnp.float32),
        # Linear(F, K) -- stored transposed (in, out)
        "w": jax.random.uniform(kw, (F, K), jnp.float32, minval=-limit, maxval=limit),
        "b": jax.random.uniform(kb, (K,), jnp.float32, minval=-limit, maxval=limit),
        # BatchNorm1d(K)
        "bn_gamma": jnp.ones((K,), jnp.float32),
        "bn_beta": jnp.zeros((K,), jnp.float32),
    }

    # One-time packing (hoisted out of the per-call forward path).
    packed = jax.tree_util.tree_map(jax.block_until_ready, pack_gating_params(params))

    gating_score, trans_weight = gating_layer_forward(x, packed)
    gating_score = jax.block_until_ready(gating_score)

    ref = gating_layer_ref(x, params)
    assert gating_score.shape == (N, K)
    assert trans_weight.shape == (N, K)
    assert bool(jnp.all(jnp.isfinite(gating_score)))
    assert bool(jnp.allclose(gating_score, ref, atol=5e-2, rtol=5e-2))

    print("KERNEL_OK")
</pallas_src>

<mosaic_0001>
module attributes {stable_mosaic.version = 11 : i64} {
  func.func @gating_kernel(%arg0: memref<3xf32, #tpu.memory_space<smem>>, %arg1: memref<3xf32, #tpu.memory_space<smem>>, %arg2: memref<2xf32, #tpu.memory_space<smem>>, %arg3: memref<256x784xf32, #tpu.memory_space<vmem>>, %arg4: memref<784x256xbf16, #tpu.memory_space<vmem>>, %arg5: memref<1x256xf32, #tpu.memory_space<vmem>>, %arg6: memref<1x256xf32, #tpu.memory_space<vmem>>, %arg7: memref<256x256xf32, #tpu.memory_space<vmem>>) attributes {dimension_semantics = [], scalar_prefetch = 0 : i64, scratch_operands = 0 : i64, tpu.core_type = #tpu.core_type<tc>} {
    %c0 = arith.constant 0 : index
    %c0_0 = arith.constant 0 : index
    %0 = vector.load %arg3[%c0, %c0_0] : memref<256x784xf32, #tpu.memory_space<vmem>>, vector<256x784xf32>
    %cst = arith.constant dense<0.000000e+00> : vector<256xf32>
    %1 = vector.multi_reduction <add>, %0, %cst [1] : vector<256x784xf32> to vector<256xf32>
    %2 = vector.shape_cast %1 : vector<256xf32> to vector<256x1xf32>
    %3 = arith.mulf %0, %0 : vector<256x784xf32>
    %cst_1 = arith.constant dense<0.000000e+00> : vector<256xf32>
    %4 = vector.multi_reduction <add>, %3, %cst_1 [1] : vector<256x784xf32> to vector<256xf32>
    %5 = vector.shape_cast %4 : vector<256xf32> to vector<256x1xf32>
    %cst_2 = arith.constant 0.00127551018 : f32
    %6 = vector.broadcast %cst_2 : f32 to vector<256x1xf32>
    %7 = arith.mulf %2, %6 : vector<256x1xf32>
    %cst_3 = arith.constant 0.00127551018 : f32
    %8 = vector.broadcast %cst_3 : f32 to vector<256x1xf32>
    %9 = arith.mulf %5, %8 : vector<256x1xf32>
    %10 = arith.mulf %7, %7 : vector<256x1xf32>
    %11 = arith.subf %9, %10 : vector<256x1xf32>
    %cst_4 = arith.constant 1.00127709 : f32
    %12 = vector.broadcast %cst_4 : f32 to vector<256x1xf32>
    %13 = arith.mulf %11, %12 : vector<256x1xf32>
    %14 = arith.mulf %7, %7 : vector<256x1xf32>
    %15 = arith.addf %13, %14 : vector<256x1xf32>
    %16 = arith.mulf %7, %7 : vector<256x1xf32>
    %17 = arith.subf %15, %16 : vector<256x1xf32>
    %cst_5 = arith.constant dense<0.000000e+00> : vector<1xf32>
    %18 = vector.multi_reduction <add>, %7, %cst_5 [0] : vector<256x1xf32> to vector<1xf32>
    %19 = vector.shape_cast %18 : vector<1xf32> to vector<1x1xf32>
    %cst_6 = arith.constant 2.560000e+02 : f32
    %20 = vector.broadcast %cst_6 : f32 to vector<1x1xf32>
    %21 = arith.divf %19, %20 : vector<1x1xf32>
    %cst_7 = arith.constant dense<0.000000e+00> : vector<1xf32>
    %22 = vector.multi_reduction <add>, %15, %cst_7 [0] : vector<256x1xf32> to vector<1xf32>
    %23 = vector.shape_cast %22 : vector<1xf32> to vector<1x1xf32>
    %cst_8 = arith.constant 2.560000e+02 : f32
    %24 = vector.broadcast %cst_8 : f32 to vector<1x1xf32>
    %25 = arith.divf %23, %24 : vector<1x1xf32>
    %26 = arith.mulf %21, %21 : vector<1x1xf32>
    %27 = arith.subf %25, %26 : vector<1x1xf32>
    %c0_9 = arith.constant 0 : index
    %28 = memref.load %arg0[%c0_9] : memref<3xf32, #tpu.memory_space<smem>>
    %c1 = arith.constant 1 : index
    %29 = memref.load %arg0[%c1] : memref<3xf32, #tpu.memory_space<smem>>
    %c2 = arith.constant 2 : index
    %30 = memref.load %arg0[%c2] : memref<3xf32, #tpu.memory_space<smem>>
    %c0_10 = arith.constant 0 : index
    %31 = memref.load %arg1[%c0_10] : memref<3xf32, #tpu.memory_space<smem>>
    %c1_11 = arith.constant 1 : index
    %32 = memref.load %arg1[%c1_11] : memref<3xf32, #tpu.memory_space<smem>>
    %c2_12 = arith.constant 2 : index
    %33 = memref.load %arg1[%c2_12] : memref<3xf32, #tpu.memory_space<smem>>
    %34 = vector.broadcast %28 : f32 to vector<256x1xf32>
    %35 = arith.mulf %34, %7 : vector<256x1xf32>
    %36 = vector.broadcast %29 : f32 to vector<256x1xf32>
    %37 = arith.mulf %36, %7 : vector<256x1xf32>
    %38 = arith.addf %35, %37 : vector<256x1xf32>
    %39 = vector.broadcast %30 : f32 to vector<1x1xf32>
    %40 = arith.mulf %39, %21 : vector<1x1xf32>
    %41 = vector.broadcast %40 : vector<1x1xf32> to vector<256x1xf32>
    %42 = arith.addf %38, %41 : vector<256x1xf32>
    %43 = vector.broadcast %31 : f32 to vector<256x1xf32>
    %44 = arith.mulf %43, %13 : vector<256x1xf32>
    %45 = vector.broadcast %32 : f32 to vector<256x1xf32>
    %46 = arith.mulf %45, %17 : vector<256x1xf32>
    %47 = arith.addf %44, %46 : vector<256x1xf32>
    %48 = vector.broadcast %33 : f32 to vector<1x1xf32>
    %49 = arith.mulf %48, %27 : vector<1x1xf32>
    %50 = vector.broadcast %49 : vector<1x1xf32> to vector<256x1xf32>
    %51 = arith.addf %47, %50 : vector<256x1xf32>
    %cst_13 = arith.constant 0.000000e+00 : f32
    %52 = vector.broadcast %cst_13 : f32 to vector<256x1xf32>
    %53 = arith.maximumf %51, %52 : vector<256x1xf32>
    %c0_14 = arith.constant 0 : index
    %54 = memref.load %arg2[%c0_14] : memref<2xf32, #tpu.memory_space<smem>>
    %c1_15 = arith.constant 1 : index
    %55 = memref.load %arg2[%c1_15] : memref<2xf32, #tpu.memory_space<smem>>
    %cst_16 = arith.constant 9.99999974E-6 : f32
    %56 = vector.broadcast %cst_16 : f32 to vector<256x1xf32>
    %57 = arith.addf %53, %56 : vector<256x1xf32>
    %58 = math.rsqrt %57 : vector<256x1xf32>
    %59 = vector.broadcast %54 : f32 to vector<256x1xf32>
    %60 = arith.mulf %59, %58 : vector<256x1xf32>
    %61 = arith.mulf %42, %60 : vector<256x1xf32>
    %62 = vector.broadcast %55 : f32 to vector<256x1xf32>
    %63 = arith.subf %62, %61 : vector<256x1xf32>
    %64 = vector.broadcast %60 : vector<256x1xf32> to vector<256x784xf32>
    %65 = arith.mulf %0, %64 : vector<256x784xf32>
    %66 = vector.broadcast %63 : vector<256x1xf32> to vector<256x784xf32>
    %67 = arith.addf %65, %66 : vector<256x784xf32>
    %68 = arith.truncf %67 : vector<256x784xf32> to vector<256x784xbf16>
    %c0_17 = arith.constant 0 : index
    %c0_18 = arith.constant 0 : index
    %69 = vector.load %arg4[%c0_17, %c0_18] : memref<784x256xbf16, #tpu.memory_space<vmem>>, vector<784x256xbf16>
    %cst_19 = arith.constant dense<0.000000e+00> : vector<256x256xf32>
    %70 = tpu.matmul %68, %69, %cst_19 {dimension_numbers = #tpu.dot_dimension_numbers<[1], [0], [0], [1], [0, 0, 1, 1], [], []>} : vector<256x784xbf16>, vector<784x256xbf16>, vector<256x256xf32> -> vector<256x256xf32>
    %cst_20 = arith.constant dense<0.000000e+00> : vector<256xf32>
    %71 = vector.multi_reduction <add>, %70, %cst_20 [0] : vector<256x256xf32> to vector<256xf32>
    %72 = vector.shape_cast %71 : vector<256xf32> to vector<1x256xf32>
    %cst_21 = arith.constant 2.560000e+02 : f32
    %73 = vector.broadcast %cst_21 : f32 to vector<1x256xf32>
    %74 = arith.divf %72, %73 : vector<1x256xf32>
    %75 = vector.broadcast %74 : vector<1x256xf32> to vector<256x256xf32>
    %76 = arith.subf %70, %75 : vector<256x256xf32>
    %77 = arith.mulf %76, %76 : vector<256x256xf32>
    %cst_22 = arith.constant dense<0.000000e+00> : vector<256xf32>
    %78 = vector.multi_reduction <add>, %77, %cst_22 [0] : vector<256x256xf32> to vector<256xf32>
    %79 = vector.shape_cast %78 : vector<256xf32> to vector<1x256xf32>
    %cst_23 = arith.constant 2.560000e+02 : f32
    %80 = vector.broadcast %cst_23 : f32 to vector<1x256xf32>
    %81 = arith.divf %79, %80 : vector<1x256xf32>
    %c0_24 = arith.constant 0 : index
    %c0_25 = arith.constant 0 : index
    %82 = vector.load %arg5[%c0_24, %c0_25] : memref<1x256xf32, #tpu.memory_space<vmem>>, vector<1x256xf32>
    %cst_26 = arith.constant 9.99999974E-6 : f32
    %83 = vector.broadcast %cst_26 : f32 to vector<1x256xf32>
    %84 = arith.addf %81, %83 : vector<1x256xf32>
    %85 = math.rsqrt %84 : vector<1x256xf32>
    %86 = arith.mulf %82, %85 : vector<1x256xf32>
    %87 = vector.broadcast %86 : vector<1x256xf32> to vector<256x256xf32>
    %88 = arith.mulf %76, %87 : vector<256x256xf32>
    %c0_27 = arith.constant 0 : index
    %c0_28 = arith.constant 0 : index
    %89 = vector.load %arg6[%c0_27, %c0_28] : memref<1x256xf32, #tpu.memory_space<vmem>>, vector<1x256xf32>
    %90 = vector.broadcast %89 : vector<1x256xf32> to vector<256x256xf32>
    %91 = arith.addf %88, %90 : vector<256x256xf32>
    %c0_29 = arith.constant 0 : index
    %c0_30 = arith.constant 0 : index
    %92 = vector.load %arg7[%c0_29, %c0_30] : memref<256x256xf32, #tpu.memory_space<vmem>>, vector<256x256xf32>
    tpu.vector_store %arg7[%c0_29, %c0_30], %91 {strides = array<i32>} : memref<256x256xf32, #tpu.memory_space<vmem>>, vector<256x256xf32>,
    return
  }
}

</mosaic_0001>

<bundles_post_ra>
// kernel: _gating_forward.1
= control target key start
LH: loop header
LB: loop body
LE: loop exit
PB: predicated region body
PF: predicated region fallthrough
CT: control target
= control target key end

     0   :  { %12 = vsyncpa [#allocation3], 0  ;;  %s10804_s0 = inlined_call_operand.vmem [shape: f32[3], index: 0, kind: input, shape index: {}]   ;;  %s10805_s1 = inlined_call_operand.vmem [shape: f32[3], index: 1, kind: input, shape index: {}]   ;;  %s10806_s2 = inlined_call_operand.vmem [shape: f32[2], index: 2, kind: input, shape index: {}]   ;;  %s10807_s3 = inlined_call_operand.vmem [shape: f32[256,784], index: 3, kind: input, shape index: {}]   ;;  %s10808_s4 = inlined_call_operand.vmem [shape: bf16[784,256], index: 4, kind: input, shape index: {}]   ;;  %s10809_s5 = inlined_call_operand.vmem [shape: f32[1,256], index: 5, kind: input, shape index: {}]   ;;  %s10810_s6 = inlined_call_operand.vmem [shape: f32[1,256], index: 6, kind: input, shape index: {}]   ;;  %s10811_s7 = inlined_call_operand.vmem [shape: f32[256,256], index: 7, kind: output, shape index: {}]  }
   0x1   :  { %13 = vsyncpa [#allocation5], 0  ;;  %s30_s26 = sshll.u32 %s10805_s1, 4  ;;  %s20_s29 = sshll.u32 %s10804_s0, 4  ;;  %s31_s26 = int_to_ptr.vmem [resolvable:$true] %s30_s26  ;;  %s21_s29 = int_to_ptr.vmem [resolvable:$true] %s20_s29 }
   0x2   :  { %s5105_s30 = scalar_lea.vmem %s31_s26, 16  ;;  %p5110_p1 = scmp.lt.s32.totalorder %s31_s26, %s31_s26 }
   0x3   :  { %p5106_p0 = scmp.ne.s32.totalorder %s31_s26, %s5105_s30  ;;  %p5111_p2 = scmp.lt.s32.totalorder %s5105_s30, %s5105_s30 }
   0x5   :  { %p5112_p3 = por %p5111_p2, %p5110_p1 }
   0x7   :  { %p5113_p4 = pnand %p5112_p3, %p5106_p0 }
   0x9   :  { %5116 = shalt.err (!%p5113_p4)
}
   0xa   :  { %s5145_s8 = smov [#allocation4]   ;;  %s5117_s9 = scalar_lea.vmem %s21_s29, 16 }
   0xb   :  { %33 = dma.vmem_to_smem %s31_s26, 16, %s5145_s8, [#allocation5]  }
   0xc   :  { %p5118_p5 = scmp.ne.s32.totalorder %s21_s29, %s5117_s9  ;;  %p5122_p6 = scmp.lt.s32.totalorder %s21_s29, %s21_s29 }
   0xd   :  { %p5123_p7 = scmp.lt.s32.totalorder %s5117_s9, %s5117_s9 }
   0xf   :  { %p5124_p8 = por %p5123_p7, %p5122_p6 }
  0x11   :  { %p5125_p9 = pnand %p5124_p8, %p5118_p5 }
  0x13   :  { %5128 = shalt.err (!%p5125_p9)
}
  0x14   :  { %s5146_s1 = smov [#allocation2]   ;;  %s40_s11 = sshll.u32 %s10806_s2, 4  ;;  %s41_s11 = int_to_ptr.vmem [resolvable:$true] %s40_s11 }
  0x15   :  { %23 = dma.vmem_to_smem %s21_s29, 16, %s5146_s1, [#allocation3]  }
  0x16   :  { %s5129_s12 = scalar_lea.vmem %s41_s11, 16  ;;  %p5134_p11 = scmp.lt.s32.totalorder %s41_s11, %s41_s11 }
  0x17   :  { %p5130_p10 = scmp.ne.s32.totalorder %s41_s11, %s5129_s12  ;;  %p5135_p12 = scmp.lt.s32.totalorder %s5129_s12, %s5129_s12 }
  0x19   :  { %p5136_p13 = por %p5135_p12, %p5134_p11 }
  0x1b   :  { %p5137_p0 = pnand %p5136_p13, %p5130_p10 }
  0x1d   :  { %5140 = shalt.err (!%p5137_p0)
}
  0x1e   :  { %s5147_s13 = smov [#allocation6]  }
  0x1f   :  { %43 = dma.vmem_to_smem %s41_s11, 16, %s5147_s13, [#allocation5]  }
  0x20   :  { %5141 = dma.done.wait [#allocation3], 16  }
  0x21   :  { %5142 = vsyncadd [#allocation3], 4294967280 }
  0x22   :  { %5143 = dma.done.wait [#allocation5], 32  }
  0x23   :  { %5144 = vsyncadd [#allocation5], 4294967264 }
  0x24   :  { %61 = sfence }
  0x25   :  { %v77_v0 = vld [vmem:[%s10807_s3 + $0x70] sm:$0xff]  ;;  %v78_v1 = vld [vmem:[%s10807_s3 + $0x78] sm:$0xff]  ;;  %v79_v2 = vld [vmem:[%s10807_s3 + $0x80] sm:$0xff]  ;;  %vm292_vm0 = vcmask 130048   ;;  %s1394_s19 = sld [smem:[#allocation4]]  ;;  %s4352_s20 = sld [smem:[#allocation4 + $0x1]] }
  0x26   :  { %v80_v3 = vld [vmem:[%s10807_s3 + $0x88] sm:$0xff]  ;;  %v81_v4 = vld [vmem:[%s10807_s3 + $0x90] sm:$0xff]  ;;  %v306_v5 = vadd.f32 %v78_v1, %v77_v0  ;;  %v83_v6 = vld [vmem:[%s10807_s3 + $0xa0] sm:$0xff]  ;;  %v590_v9 = vmul.f32 %v77_v0, %v77_v0  ;;  %v591_v10 = vmul.f32 %v78_v1, %v78_v1  ;;  %v5223_v11 = vmul.f32 %v79_v2, %v79_v2  ;;  %s1391_s12 = sld [smem:[#allocation2]]  ;;  %s7130_s13 = sld [smem:[#allocation2 + $0x1]] }
  0x27   :  { %v63_v7 = vld [vmem:[%s10807_s3] sm:$0xff]  ;;  %v64_v8 = vld [vmem:[%s10807_s3 + $0x8] sm:$0xff]  ;;  %v82_v12 = vld [vmem:[%s10807_s3 + $0x98] sm:$0xff]  ;;  %v5234_v18 = vmul.f32 %v80_v3, %v80_v3  ;;  %v311_v19 = vsel %vm292_vm0, %v83_v6, 0.0  ;;  %v5248_v24 = vmul.f32 %v81_v4, %v81_v4  ;;  %v5304_v51 = vmul.f32 %v83_v6, %v83_v6  ;;  %s7570_s8 = sld [smem:[#allocation2 + $0x2]]  ;;  %s1693_s27 = sld [smem:[#allocation6]] }
  0x28   :  { %v307_v13 = vadd.f32 %v306_v5, %v79_v2  ;;  %v65_v14 = vld [vmem:[%s10807_s3 + $0x10] sm:$0xff]  ;;  %v66_v15 = vld [vmem:[%s10807_s3 + $0x18] sm:$0xff]  ;;  %v287_v16 = vadd.f32 %v64_v8, %v63_v7  ;;  %v576_v17 = vmul.f32 %v63_v7, %v63_v7  ;;  %v67_v20 = vld [vmem:[%s10807_s3 + $0x20] sm:$0xff]  ;;  %v577_v23 = vmul.f32 %v64_v8, %v64_v8  ;;  %s4353_s26 = sld [smem:[#allocation4 + $0x2]]  ;;  %s4354_s28 = sld [smem:[#allocation6 + $0x1]] }
  0x29   :  { %v69_v21 = vld [vmem:[%s10807_s3 + $0x30] sm:$0xff]  ;;  %v5246_v22 = vld [vmem:[%s10807_s3 + $0xa8] sm:$0xff]  ;;  %v5250_v25 = vmul.f32 %v82_v12, %v82_v12  ;;  %v5263_v30 = vld [vmem:[%s10807_s3 + $0xb8] sm:$0xff]  ;;  %v578_v31 = vmul.f32 %v65_v14, %v65_v14  ;;  %v579_v32 = vmul.f32 %v66_v15, %v66_v15  ;;  %v5278_v37 = vmul.f32 %v67_v20, %v67_v20 }
  0x2a   :  { %v308_v26 = vadd.f32 %v307_v13, %v80_v3  ;;  %v68_v27 = vld [vmem:[%s10807_s3 + $0x28] sm:$0xff]  ;;  %v288_v28 = vadd.f32 %v287_v16, %v65_v14  ;;  %v5258_v29 = vld [vmem:[%s10807_s3 + $0xb0] sm:$0xff]  ;;  %v293_v33 = vsel %vm292_vm0, %v69_v21, 0.0  ;;  %v5269_v34 = vld [vmem:[%s10807_s3 + $0xc0] sm:$0xff]  ;;  %v5291_v44 = vmul.f32 %v69_v21, %v69_v21 }
  0x2b   :  { %v5274_v35 = vld [vmem:[%s10807_s3 + $0xd8] sm:$0xff]  ;;  %v315_v36 = vadd.f32 %v5258_v29, %v5246_v22  ;;  %v5280_v38 = vmul.f32 %v68_v27, %v68_v27  ;;  %v71_v42 = vld [vmem:[%s10807_s3 + $0x40] sm:$0xff]  ;;  %v72_v43 = vld [vmem:[%s10807_s3 + $0x48] sm:$0xff]  ;;  %v800_v45 = vadd.f32 %v577_v23, %v576_v17  ;;  %v818_v63 = vadd.f32 %v591_v10, %v590_v9 }
  0x2c   :  { %v309_v39 = vadd.f32 %v308_v26, %v81_v4  ;;  %v289_v40 = vadd.f32 %v288_v28, %v66_v15  ;;  %v70_v41 = vld [vmem:[%s10807_s3 + $0x38] sm:$0xff]  ;;  %v5296_v46 = vld [vmem:[%s10807_s3 + $0xc8] sm:$0xff]  ;;  %v320_v48 = vsel %vm292_vm0, %v5274_v35, 0.0  ;;  %v73_v49 = vld [vmem:[%s10807_s3 + $0x50] sm:$0xff]  ;;  %v584_v58 = vmul.f32 %v71_v42, %v71_v42 }
  0x2d   :  { %v316_v47 = vadd.f32 %v315_v36, %v5263_v30  ;;  %v297_v50 = vadd.f32 %v71_v42, %v70_v41  ;;  %v76_v54 = vld [vmem:[%s10807_s3 + $0x68] sm:$0xff]  ;;  %v5312_v55 = vld [vmem:[%s10807_s3 + $0xe0] sm:$0xff]  ;;  %v583_v57 = vmul.f32 %v70_v41, %v70_v41  ;;  %v5323_v61 = vld [vmem:[%s10807_s3 + $0xf0] sm:$0xff]  ;;  %v585_v5 = vmul.f32 %v72_v43, %v72_v43 }
  0x2e   :  { %v310_v52 = vadd.f32 %v309_v39, %v82_v12  ;;  %v290_v53 = vadd.f32 %v289_v40, %v67_v20  ;;  %v5317_v56 = vld [vmem:[%s10807_s3 + $0xe8] sm:$0xff]  ;;  %v5330_v2 = vld [vmem:[%s10807_s3 + $0xd0] sm:$0xff]  ;;  %v74_v3 = vld [vmem:[%s10807_s3 + $0x58] sm:$0xff]  ;;  %v586_v6 = vmul.f32 %v73_v49, %v73_v49  ;;  %v302_v9 = vsel %vm292_vm0, %v76_v54, 0.0 }
  0x2f   :  { %v317_v59 = vadd.f32 %v316_v47, %v5269_v34  ;;  %v298_v60 = vadd.f32 %v297_v50, %v72_v43  ;;  %v324_v62 = vadd.f32 %v5317_v56, %v5312_v55  ;;  %v5338_v4 = vld [vmem:[%s10807_s3 + $0xf8] sm:$0xff]  ;;  %v5345_v10 = vld [vmem:[%s10807_s3 + $0x110] sm:$0xff]  ;;  %v75_v14 = vld [vmem:[%s10807_s3 + $0x60] sm:$0xff]  ;;  %v587_v16 = vmul.f32 %v74_v3, %v74_v3 }
  0x30   :  { %v312_v0 = vadd.f32 %v311_v19, %v310_v52  ;;  %v291_v1 = vadd.f32 %v290_v53, %v68_v27  ;;  %v5354_v15 = vld [vmem:[%s10807_s3 + $0x100] sm:$0xff]  ;;  %v809_v17 = vadd.f32 %v584_v58, %v583_v57  ;;  %v801_v19 = vadd.f32 %v800_v45, %v578_v31  ;;  %v5361_v27 = vld [vmem:[%s10807_s3 + $0x118] sm:$0xff]  ;;  %v5371_v31 = vld [vmem:[%s10807_s3 + $0x108] sm:$0xff] }
  0x31   :  { %v318_v7 = vadd.f32 %v317_v59, %v5296_v46  ;;  %v299_v8 = vadd.f32 %v298_v60, %v73_v49  ;;  %v325_v12 = vadd.f32 %v324_v62, %v5323_v61  ;;  %v588_v26 = vmul.f32 %v75_v14, %v75_v14  ;;  %v5366_v28 = vld [vmem:[%s10807_s3 + $0x120] sm:$0xff]  ;;  %v5380_v47 = vld [vmem:[%s10807_s3 + $0x128] sm:$0xff]  ;;  %v5401_v59 = vld [vmem:[%s10807_s3 + $0x138] sm:$0xff] }
  0x32   :  { %313 = vadd.xlane.f32.xlu1 %v312_v0  ;;  %v294_v13 = vadd.f32 %v293_v33, %v291_v1  ;;  %v329_v33 = vsel %vm292_vm0, %v5345_v10, 0.0  ;;  %v810_v36 = vadd.f32 %v809_v17, %v585_v5  ;;  %v802_v39 = vadd.f32 %v801_v19, %v579_v32  ;;  %v5422_v0 = vld [vmem:[%s10807_s3 + $0x158] sm:$0xff]  ;;  %v5452_v17 = vld [vmem:[%s10807_s3 + $0x168] sm:$0xff] }
  0x33   :  { %v319_v20 = vadd.f32 %v318_v7, %v5330_v2  ;;  %v300_v21 = vadd.f32 %v299_v8, %v74_v3  ;;  %v326_v23 = vadd.f32 %v325_v12, %v5338_v4  ;;  %v819_v40 = vadd.f32 %v818_v63, %v5223_v11  ;;  %v5417_v63 = vld [vmem:[%s10807_s3 + $0x150] sm:$0xff] }
  0x34   :  { %295 = vadd.xlane.f32.xlu0 %v294_v13  ;;  %v589_v45 = vmul.f32 %v76_v54, %v76_v54  ;;  %v811_v49 = vadd.f32 %v810_v36, %v586_v6  ;;  %v803_v50 = vadd.f32 %v802_v39, %v5278_v37  ;;  %v333_v32 = vadd.f32 %v5366_v28, %v5361_v27  ;;  %v5392_v54 = vld [vmem:[%s10807_s3 + $0x130] sm:$0xff]  ;;  %v5431_v6 = vld [vmem:[%s10807_s3 + $0x140] sm:$0xff] }
  0x35   :  { %v321_v41 = vadd.f32 %v320_v48, %v319_v20  ;;  %v301_v42 = vadd.f32 %v300_v21, %v75_v14  ;;  %v327_v43 = vadd.f32 %v326_v23, %v5354_v15  ;;  %v820_v52 = vadd.f32 %v819_v40, %v5234_v18  ;;  %v5460_v21 = vld [vmem:[%s10807_s3 + $0x180] sm:$0xff] }
  0x36   :  { %v805_v53 = vsel %vm292_vm0, %v5291_v44, 0.0  ;;  %v597_v37 = vmul.f32 %v5246_v22, %v5246_v22  ;;  %v812_v57 = vadd.f32 %v811_v49, %v587_v16  ;;  %v804_v18 = vadd.f32 %v803_v50, %v5280_v38  ;;  %v5408_v22 = vld [vmem:[%s10807_s3 + $0x148] sm:$0xff]  ;;  %v5498_v50 = vld [vmem:[%s10807_s3 + $0x178] sm:$0xff] }
  0x37   :  { %322 = vadd.xlane.f32.xlu1 %v321_v41  ;;  %v303_v11 = vadd.f32 %v302_v9, %v301_v42  ;;  %v328_v48 = vadd.f32 %v327_v43, %v5371_v31  ;;  %v821_v58 = vadd.f32 %v820_v52, %v5248_v24  ;;  %v334_v44 = vadd.f32 %v333_v32, %v5380_v47  ;;  %v5505_v52 = vld [vmem:[%s10807_s3 + $0x1b8] sm:$0xff] }
  0x38   :  { %v814_v62 = vsel %vm292_vm0, %v589_v45, 0.0  ;;  %v598_v38 = vmul.f32 %v5258_v29, %v5258_v29  ;;  %v599_v24 = vmul.f32 %v5263_v30, %v5263_v30  ;;  %v813_v1 = vadd.f32 %v812_v57, %v588_v26 }
  0x39   :  { %304 = vadd.xlane.f32.xlu0 %v303_v11  ;;  %v330_v60 = vadd.f32 %v329_v33, %v328_v48  ;;  %v822_v3 = vadd.f32 %v821_v58, %v5250_v25  ;;  %v823_v5 = vsel %vm292_vm0, %v5304_v51, 0.0  ;;  %v335_v29 = vadd.f32 %v334_v44, %v5392_v54  ;;  %v5440_v25 = vld [vmem:[%s10807_s3 + $0x160] sm:$0xff]  ;;  %v5475_v33 = vld [vmem:[%s10807_s3 + $0x190] sm:$0xff] }
  0x3a   :  { %v806_v30 = vadd.f32 %v805_v53, %v804_v18  ;;  %v600_v7 = vmul.f32 %v5269_v34, %v5269_v34  ;;  %v603_v8 = vmul.f32 %v5274_v35, %v5274_v35  ;;  %v827_v9 = vadd.f32 %v598_v38, %v597_v37  ;;  %v5517_v37 = vld [vmem:[%s10807_s3 + $0x1a0] sm:$0xff]  ;;  %v5541_v38 = vld [vmem:[%s10807_s3 + $0x1a8] sm:$0xff] }
  0x3b   :  { %331 = vadd.xlane.f32.xlu1 %v330_v60  ;;  %v815_v51 = vadd.f32 %v814_v62, %v813_v1  ;;  %v336_v12 = vadd.f32 %v335_v29, %v5401_v59  ;;  %v338_v13 = vsel %vm292_vm0, %v5408_v22, 0.0  ;;  %v342_v14 = vadd.f32 %v5422_v0, %v5417_v63  ;;  %v5534_v60 = vld [vmem:[%s10807_s3 + $0x1c8] sm:$0xff]  ;;  %v5551_v29 = vld [vmem:[%s10807_s3 + $0x1d0] sm:$0xff] }
  0x3c   :  { %v824_v16 = vadd.f32 %v823_v5, %v822_v3  ;;  %v601_v34 = vmul.f32 %v5296_v46, %v5296_v46  ;;  %v828_v35 = vadd.f32 %v827_v9, %v599_v24  ;;  %v604_v19 = vmul.f32 %v5312_v55, %v5312_v55  ;;  %v5470_v55 = vld [vmem:[%s10807_s3 + $0x188] sm:$0xff] }
  0x3d   :  { %816 = vadd.xlane.f32.xlu0 %v815_v51  ;;  %v337_v20 = vadd.f32 %v336_v12, %v5431_v6  ;;  %v343_v23 = vadd.f32 %v342_v14, %v5440_v25  ;;  %v605_v46 = vmul.f32 %v5317_v56, %v5317_v56  ;;  %v606_v26 = vmul.f32 %v5323_v61, %v5323_v61  ;;  %v5483_v61 = vld [vmem:[%s10807_s3 + $0x170] sm:$0xff] }
  0x3e   :  { %v602_v36 = vmul.f32 %v5330_v2, %v5330_v2  ;;  %v829_v39 = vadd.f32 %v828_v35, %v600_v7  ;;  %v832_v56 = vsel %vm292_vm0, %v603_v8, 0.0  ;;  %v607_v40 = vmul.f32 %v5338_v4, %v5338_v4  ;;  %v5493_v2 = vld [vmem:[%s10807_s3 + $0x198] sm:$0xff]  ;;  %v5556_v8 = vld [vmem:[%s10807_s3 + $0x1b0] sm:$0xff] }
  0x3f   :  { %807 = vadd.xlane.f32.xlu1 %v806_v30  ;;  %v339_v41 = vadd.f32 %v338_v13, %v337_v20  ;;  %v344_v42 = vadd.f32 %v343_v23, %v5452_v17  ;;  %v610_v43 = vmul.f32 %v5345_v10, %v5345_v10  ;;  %v836_v45 = vadd.f32 %v605_v46, %v604_v19  ;;  %v5590_v23 = vld [vmem:[%s10807_s3 + $0x200] sm:$0xff] }
  0x40   :  { %v830_v49 = vadd.f32 %v829_v39, %v601_v34  ;;  %v347_v4 = vsel %vm292_vm0, %v5460_v21, 0.0  ;;  %v351_v10 = vadd.f32 %v5475_v33, %v5470_v55  ;;  %v611_v32 = vmul.f32 %v5361_v27, %v5361_v27 }
  0x41   :  { %825 = vadd.xlane.f32.xlu0 %v824_v16  ;;  %v345_v11 = vadd.f32 %v344_v42, %v5483_v61  ;;  %v608_v48 = vmul.f32 %v5354_v15, %v5354_v15  ;;  %v837_v53 = vadd.f32 %v836_v45, %v606_v26  ;;  %v612_v57 = vmul.f32 %v5366_v28, %v5366_v28  ;;  %v5529_v15 = vld [vmem:[%s10807_s3 + $0x1c0] sm:$0xff]  ;;  %v5573_v16 = vld [vmem:[%s10807_s3 + $0x1d8] sm:$0xff] }
  0x42   :  { %v831_v18 = vadd.f32 %v830_v49, %v602_v36  ;;  %v609_v27 = vmul.f32 %v5371_v31, %v5371_v31  ;;  %v352_v58 = vadd.f32 %v351_v10, %v5493_v2  ;;  %v613_v44 = vmul.f32 %v5380_v47, %v5380_v47  ;;  %v5626_v10 = vld [vmem:[%s10807_s3 + $0x210] sm:$0xff] }
  0x43   :  { %340 = vadd.xlane.f32.xlu1 %v339_v41  ;;  %v346_v28 = vadd.f32 %v345_v11, %v5498_v50  ;;  %v838_v62 = vadd.f32 %v837_v53, %v607_v40  ;;  %v841_v31 = vsel %vm292_vm0, %v610_v43, 0.0  ;;  %v356_v47 = vsel %vm292_vm0, %v5505_v52, 0.0  ;;  %v5610_v41 = vld [vmem:[%s10807_s3 + $0x208] sm:$0xff] }
  0x44   :  { %v833_v24 = vadd.f32 %v832_v56, %v831_v18  ;;  %v353_v1 = vadd.f32 %v352_v58, %v5517_v37  ;;  %v614_v3 = vmul.f32 %v5392_v54, %v5392_v54  ;;  %v845_v5 = vadd.f32 %v612_v57, %v611_v32  ;;  %v5563_v54 = vld [vmem:[%s10807_s3 + $0x1f0] sm:$0xff]  ;;  %v5641_v18 = vld [vmem:[%s10807_s3 + $0x238] sm:$0xff] }
  0x45   :  { %v348_v30 = vadd.f32 %v347_v4, %v346_v28  ;;  %v839_v7 = vadd.f32 %v838_v62, %v608_v48  ;;  %v615_v9 = vmul.f32 %v5401_v59, %v5401_v59  ;;  %v360_v51 = vadd.f32 %v5534_v60, %v5529_v15  ;;  %v5649_v58 = vld [vmem:[%s10807_s3 + $0x218] sm:$0xff] }
  0x46   :  { %834 = vadd.xlane.f32.xlu0 %v833_v24  ;;  %v354_v12 = vadd.f32 %v353_v1, %v5541_v38  ;;  %v616_v13 = vmul.f32 %v5431_v6, %v5431_v6  ;;  %v846_v14 = vadd.f32 %v845_v5, %v613_v44  ;;  %v618_v59 = vmul.f32 %v5417_v63, %v5417_v63  ;;  %v5585_v6 = vld [vmem:[%s10807_s3 + $0x1f8] sm:$0xff]  ;;  %v5668_v1 = vld [vmem:[%s10807_s3 + $0x220] sm:$0xff] }
  0x47   :  { %349 = vadd.xlane.f32.xlu1 %v348_v30  ;;  %v840_v34 = vadd.f32 %v839_v7, %v609_v27  ;;  %v617_v35 = vmul.f32 %v5408_v22, %v5408_v22  ;;  %v361_v19 = vadd.f32 %v360_v51, %v5551_v29  ;;  %v619_v20 = vmul.f32 %v5422_v0, %v5422_v0  ;;  %v5596_v22 = vld [vmem:[%s10807_s3 + $0x1e0] sm:$0xff]  ;;  %v5680_v51 = vld [vmem:[%s10807_s3 + $0x248] sm:$0xff] }
  0x48   :  { %v355_v63 = vadd.f32 %v354_v12, %v5556_v8  ;;  %v847_v46 = vadd.f32 %v846_v14, %v614_v3  ;;  %v365_v0 = vsel %vm292_vm0, %v5563_v54, 0.0  ;;  %v620_v26 = vmul.f32 %v5440_v25, %v5440_v25  ;;  %v5615_v25 = vld [vmem:[%s10807_s3 + $0x1e8] sm:$0xff] }
  0x49   :  { %v842_v36 = vadd.f32 %v841_v31, %v840_v34  ;;  %v362_v39 = vadd.f32 %v361_v19, %v5573_v16  ;;  %v621_v56 = vmul.f32 %v5452_v17, %v5452_v17  ;;  %v624_v40 = vmul.f32 %v5460_v21, %v5460_v21 }
  0x4a   :  { %v357_v42 = vadd.f32 %v356_v47, %v355_v63  ;;  %v848_v43 = vadd.f32 %v847_v46, %v615_v9  ;;  %v854_v45 = vadd.f32 %v619_v20, %v618_v59  ;;  %v369_v49 = vadd.f32 %v5590_v23, %v5585_v6  ;;  %v5707_v63 = vld [vmem:[%s10807_s3 + $0x268] sm:$0xff] }
  0x4b   :  { %843 = vadd.xlane.f32.xlu0 %v842_v36  ;;  %v850_v17 = vsel %vm292_vm0, %v617_v35, 0.0  ;;  %v363_v21 = vadd.f32 %v362_v39, %v5596_v22  ;;  %v622_v4 = vmul.f32 %v5483_v61, %v5483_v61  ;;  %v625_v32 = vmul.f32 %v5470_v55, %v5470_v55  ;;  %v5636_v61 = vld [vmem:[%s10807_s3 + $0x230] sm:$0xff]  ;;  %v5722_v39 = vld [vmem:[%s10807_s3 + $0x258] sm:$0xff] }
  0x4c   :  { %358 = vadd.xlane.f32.xlu1 %v357_v42  ;;  %v849_v11 = vadd.f32 %v848_v43, %v616_v13  ;;  %v855_v48 = vadd.f32 %v854_v45, %v620_v26  ;;  %v370_v53 = vadd.f32 %v369_v49, %v5610_v41  ;;  %v626_v57 = vmul.f32 %v5475_v33, %v5475_v33  ;;  %v5654_v33 = vld [vmem:[%s10807_s3 + $0x228] sm:$0xff]  ;;  %v5737_v49 = vld [vmem:[%s10807_s3 + $0x298] sm:$0xff] }
  0x4d   :  { %v364_v55 = vadd.f32 %v363_v21, %v5615_v25  ;;  %v623_v27 = vmul.f32 %v5498_v50, %v5498_v50  ;;  %v627_v44 = vmul.f32 %v5493_v2, %v5493_v2  ;;  %v859_v31 = vsel %vm292_vm0, %v624_v40, 0.0  ;;  %v5663_v50 = vld [vmem:[%s10807_s3 + $0x240] sm:$0xff] }
  0x4e   :  { %v851_v28 = vadd.f32 %v850_v17, %v849_v11  ;;  %v856_v62 = vadd.f32 %v855_v48, %v621_v56  ;;  %v371_v47 = vadd.f32 %v370_v53, %v5626_v10  ;;  %v628_v2 = vmul.f32 %v5517_v37, %v5517_v37  ;;  %v5685_v37 = vld [vmem:[%s10807_s3 + $0x260] sm:$0xff] }
  0x4f   :  { %v366_v24 = vadd.f32 %v365_v0, %v364_v55  ;;  %v863_v3 = vadd.f32 %v626_v57, %v625_v32  ;;  %v378_v5 = vadd.f32 %v5641_v18, %v5636_v61  ;;  %v374_v9 = vsel %vm292_vm0, %v5654_v33, 0.0  ;;  %v5758_v55 = vld [vmem:[%s10807_s3 + $0x2a0] sm:$0xff] }
  0x50   :  { %852 = vadd.xlane.f32.xlu0 %v851_v28  ;;  %v857_v30 = vadd.f32 %v856_v62, %v622_v4  ;;  %v372_v7 = vadd.f32 %v371_v47, %v5649_v58  ;;  %v632_v12 = vmul.f32 %v5529_v15, %v5529_v15  ;;  %v629_v13 = vmul.f32 %v5541_v38, %v5541_v38  ;;  %v5700_v15 = vld [vmem:[%s10807_s3 + $0x250] sm:$0xff]  ;;  %v5745_v4 = vld [vmem:[%s10807_s3 + $0x280] sm:$0xff] }
  0x51   :  { %367 = vadd.xlane.f32.xlu1 %v366_v24  ;;  %v864_v14 = vadd.f32 %v863_v3, %v627_v44  ;;  %v379_v59 = vadd.f32 %v378_v5, %v5663_v50  ;;  %v633_v34 = vmul.f32 %v5534_v60, %v5534_v60  ;;  %v631_v20 = vmul.f32 %v5505_v52, %v5505_v52  ;;  %v5712_v60 = vld [vmem:[%s10807_s3 + $0x270] sm:$0xff] }
  0x52   :  { %v858_v35 = vadd.f32 %v857_v30, %v623_v27  ;;  %v373_v19 = vadd.f32 %v372_v7, %v5668_v1  ;;  %v634_v38 = vmul.f32 %v5551_v29, %v5551_v29  ;;  %v630_v52 = vmul.f32 %v5556_v8, %v5556_v8  ;;  %v5729_v8 = vld [vmem:[%s10807_s3 + $0x278] sm:$0xff]  ;;  %v5787_v3 = vld [vmem:[%s10807_s3 + $0x290] sm:$0xff] }
  0x53   :  { %v865_v46 = vadd.f32 %v864_v14, %v628_v2  ;;  %v380_v0 = vadd.f32 %v379_v59, %v5680_v51  ;;  %v383_v26 = vsel %vm292_vm0, %v5685_v37, 0.0  ;;  %v635_v56 = vmul.f32 %v5573_v16, %v5573_v16  ;;  %v5794_v30 = vld [vmem:[%s10807_s3 + $0x2d0] sm:$0xff] }
  0x54   :  { %v860_v29 = vadd.f32 %v859_v31, %v858_v35  ;;  %v375_v36 = vadd.f32 %v374_v9, %v373_v19  ;;  %v872_v40 = vadd.f32 %v633_v34, %v632_v12  ;;  %v636_v45 = vmul.f32 %v5596_v22, %v5596_v22  ;;  %v5803_v12 = vld [vmem:[%s10807_s3 + $0x2b8] sm:$0xff] }
  0x55   :  { %v866_v42 = vadd.f32 %v865_v46, %v629_v13  ;;  %v381_v43 = vadd.f32 %v380_v0, %v5700_v15  ;;  %v387_v16 = vadd.f32 %v5712_v60, %v5707_v63  ;;  %v868_v17 = vsel %vm292_vm0, %v631_v20, 0.0  ;;  %v5815_v19 = vld [vmem:[%s10807_s3 + $0x2d8] sm:$0xff]  ;;  %v5820_v20 = vld [vmem:[%s10807_s3 + $0x2e0] sm:$0xff] }
  0x56   :  { %861 = vadd.xlane.f32.xlu0 %v860_v29  ;;  %376 = vadd.xlane.f32.xlu1 %v375_v36  ;;  %v873_v21 = vadd.f32 %v872_v40, %v634_v38  ;;  %v639_v22 = vmul.f32 %v5585_v6, %v5585_v6  ;;  %v640_v32 = vmul.f32 %v5590_v23, %v5590_v23  ;;  %v5763_v6 = vld [vmem:[%s10807_s3 + $0x2a8] sm:$0xff]  ;;  %v392_v44 = vsel %vm292_vm0, %v5737_v49, 0.0 }
  0x57   :  { %v867_v11 = vadd.f32 %v866_v42, %v630_v52  ;;  %v382_v48 = vadd.f32 %v381_v43, %v5722_v39  ;;  %v638_v53 = vmul.f32 %v5563_v54, %v5563_v54  ;;  %v388_v57 = vadd.f32 %v387_v16, %v5729_v8  ;;  %v5770_v54 = vld [vmem:[%s10807_s3 + $0x288] sm:$0xff] }
  0x58   :  { %v637_v23 = vmul.f32 %v5615_v25, %v5615_v25  ;;  %v874_v27 = vadd.f32 %v873_v21, %v635_v56  ;;  %v641_v28 = vmul.f32 %v5610_v41, %v5610_v41  ;;  %v642_v24 = vmul.f32 %v5626_v10, %v5626_v10  ;;  %v5782_v25 = vld [vmem:[%s10807_s3 + $0x2b0] sm:$0xff]  ;;  %v5844_v56 = vld [vmem:[%s10807_s3 + $0x2c8] sm:$0xff] }
  0x59   :  { %v869_v62 = vadd.f32 %v868_v17, %v867_v11  ;;  %v384_v31 = vadd.f32 %v383_v26, %v382_v48  ;;  %v389_v47 = vadd.f32 %v388_v57, %v5745_v4  ;;  %v645_v41 = vmul.f32 %v5654_v33, %v5654_v33  ;;  %v5856_v17 = vld [vmem:[%s10807_s3 + $0x2f0] sm:$0xff]  ;;  %v5873_v48 = vld [vmem:[%s10807_s3 + $0x318] sm:$0xff]  ;;  %v5886_v57 = vld [vmem:[%s10807_s3 + $0x308] sm:$0xff] }
  0x5a   :  { %v875_v2 = vadd.f32 %v874_v27, %v636_v45  ;;  %v881_v5 = vadd.f32 %v640_v32, %v639_v22  ;;  %v396_v10 = vadd.f32 %v5763_v6, %v5758_v55  ;;  %v877_v7 = vsel %vm292_vm0, %v638_v53, 0.0 }
  0x5b   :  { %870 = vadd.xlane.f32.xlu0 %v869_v62  ;;  %385 = vadd.xlane.f32.xlu1 %v384_v31  ;;  %v390_v9 = vadd.f32 %v389_v47, %v5770_v54  ;;  %v646_v33 = vmul.f32 %v5636_v61, %v5636_v61  ;;  %v647_v13 = vmul.f32 %v5641_v18, %v5641_v18  ;;  %v401_v38 = vsel %vm292_vm0, %v5794_v30, 0.0  ;;  %v5898_v62 = vld [vmem:[%s10807_s3 + $0x320] sm:$0xff] }
  0x5c   :  { %v876_v14 = vadd.f32 %v875_v2, %v637_v23  ;;  %v643_v59 = vmul.f32 %v5649_v58, %v5649_v58  ;;  %v882_v34 = vadd.f32 %v881_v5, %v641_v28  ;;  %v397_v35 = vadd.f32 %v396_v10, %v5782_v25  ;;  %v5828_v58 = vld [vmem:[%s10807_s3 + $0x2c0] sm:$0xff]  ;;  %v5915_v10 = vld [vmem:[%s10807_s3 + $0x328] sm:$0xff] }
  0x5d   :  { %v391_v61 = vadd.f32 %v390_v9, %v5787_v3  ;;  %v644_v18 = vmul.f32 %v5668_v1, %v5668_v1  ;;  %v648_v52 = vmul.f32 %v5663_v50, %v5663_v50  ;;  %v886_v26 = vsel %vm292_vm0, %v645_v41, 0.0  ;;  %v5839_v1 = vld [vmem:[%s10807_s3 + $0x2e8] sm:$0xff] }
  0x5e   :  { %v878_v46 = vadd.f32 %v877_v7, %v876_v14  ;;  %v883_v0 = vadd.f32 %v882_v34, %v642_v24  ;;  %v398_v29 = vadd.f32 %v397_v35, %v5803_v12  ;;  %v649_v50 = vmul.f32 %v5680_v51, %v5680_v51  ;;  %v5927_v34 = vld [vmem:[%s10807_s3 + $0x330] sm:$0xff] }
  0x5f   :  { %v393_v36 = vadd.f32 %v392_v44, %v391_v61  ;;  %v890_v40 = vadd.f32 %v647_v13, %v646_v33  ;;  %v405_v42 = vadd.f32 %v5820_v20, %v5815_v19  ;;  %v650_v16 = vmul.f32 %v5700_v15, %v5700_v15  ;;  %v5868_v15 = vld [vmem:[%s10807_s3 + $0x310] sm:$0xff]  ;;  %v5934_v61 = vld [vmem:[%s10807_s3 + $0x348] sm:$0xff] }
  0x60   :  { %879 = vadd.xlane.f32.xlu0 %v878_v46  ;;  %v884_v43 = vadd.f32 %v883_v0, %v643_v59  ;;  %v399_v45 = vadd.f32 %v398_v29, %v5828_v58  ;;  %v653_v21 = vmul.f32 %v5707_v63, %v5707_v63  ;;  %v651_v51 = vmul.f32 %v5722_v39, %v5722_v39 }
  0x61   :  { %394 = vadd.xlane.f32.xlu1 %v393_v36  ;;  %v891_v22 = vadd.f32 %v890_v40, %v648_v52  ;;  %v406_v32 = vadd.f32 %v405_v42, %v5839_v1  ;;  %v654_v11 = vmul.f32 %v5712_v60, %v5712_v60  ;;  %v652_v39 = vmul.f32 %v5685_v37, %v5685_v37  ;;  %v5881_v60 = vld [vmem:[%s10807_s3 + $0x2f8] sm:$0xff] }
  0x62   :  { %v885_v63 = vadd.f32 %v884_v43, %v644_v18  ;;  %v400_v53 = vadd.f32 %v399_v45, %v5844_v56  ;;  %v655_v23 = vmul.f32 %v5729_v8, %v5729_v8  ;;  %v656_v28 = vmul.f32 %v5745_v4, %v5745_v4  ;;  %v5903_v8 = vld [vmem:[%s10807_s3 + $0x300] sm:$0xff]  ;;  %v5968_v43 = vld [vmem:[%s10807_s3 + $0x378] sm:$0xff] }
  0x63   :  { %v892_v27 = vadd.f32 %v891_v22, %v649_v50  ;;  %v407_v44 = vadd.f32 %v406_v32, %v5856_v17  ;;  %v659_v37 = vmul.f32 %v5737_v49, %v5737_v49  ;;  %v899_v24 = vadd.f32 %v654_v11, %v653_v21  ;;  %v5962_v50 = vld [vmem:[%s10807_s3 + $0x358] sm:$0xff] }
  0x64   :  { %v887_v31 = vadd.f32 %v886_v26, %v885_v63  ;;  %v402_v47 = vadd.f32 %v401_v38, %v400_v53  ;;  %v414_v2 = vadd.f32 %v5873_v48, %v5868_v15  ;;  %v410_v49 = vsel %vm292_vm0, %v5886_v57, 0.0  ;;  %v5945_v38 = vld [vmem:[%s10807_s3 + $0x340] sm:$0xff]  ;;  %v5953_v26 = vld [vmem:[%s10807_s3 + $0x338] sm:$0xff]  ;;  %v5995_v53 = vld [vmem:[%s10807_s3 + $0x388] sm:$0xff] }
  0x65   :  { %v893_v4 = vadd.f32 %v892_v27, %v650_v16  ;;  %v408_v41 = vadd.f32 %v407_v44, %v5881_v60  ;;  %v657_v5 = vmul.f32 %v5770_v54, %v5770_v54  ;;  %v895_v7 = vsel %vm292_vm0, %v652_v39, 0.0  ;;  %v5979_v16 = vld [vmem:[%s10807_s3 + $0x360] sm:$0xff]  ;;  %v6007_v39 = vld [vmem:[%s10807_s3 + $0x370] sm:$0xff] }
  0x66   :  { %888 = vadd.xlane.f32.xlu0 %v887_v31  ;;  %403 = vadd.xlane.f32.xlu1 %v402_v47  ;;  %v900_v9 = vadd.f32 %v899_v24, %v655_v23  ;;  %v415_v33 = vadd.f32 %v414_v2, %v5898_v62  ;;  %v660_v13 = vmul.f32 %v5758_v55, %v5758_v55  ;;  %v5939_v55 = vld [vmem:[%s10807_s3 + $0x350] sm:$0xff]  ;;  %v428_v23 = vsel %vm292_vm0, %v5968_v43, 0.0  ;;  %v6024_v24 = vld [vmem:[%s10807_s3 + $0x398] sm:$0xff] }
  0x67   :  { %v894_v14 = vadd.f32 %v893_v4, %v651_v51  ;;  %v409_v59 = vadd.f32 %v408_v41, %v5903_v8  ;;  %v658_v54 = vmul.f32 %v5787_v3, %v5787_v3  ;;  %v661_v35 = vmul.f32 %v5763_v6, %v5763_v6 }
  0x68   :  { %v901_v18 = vadd.f32 %v900_v9, %v656_v28  ;;  %v904_v3 = vsel %vm292_vm0, %v659_v37, 0.0  ;;  %v416_v6 = vadd.f32 %v415_v33, %v5915_v10  ;;  %v662_v52 = vmul.f32 %v5782_v25, %v5782_v25  ;;  %v6052_v9 = vld [vmem:[%s10807_s3 + $0x3a0] sm:$0xff] }
  0x69   :  { %v896_v46 = vadd.f32 %v895_v7, %v894_v14  ;;  %v411_v0 = vadd.f32 %v410_v49, %v409_v59  ;;  %v663_v29 = vmul.f32 %v5803_v12, %v5803_v12  ;;  %v664_v36 = vmul.f32 %v5828_v58, %v5828_v58  ;;  %v6040_v49 = vld [vmem:[%s10807_s3 + $0x3b8] sm:$0xff] }
  0x6a   :  { %v902_v40 = vadd.f32 %v901_v18, %v657_v5  ;;  %v417_v25 = vadd.f32 %v416_v6, %v5927_v34  ;;  %v908_v42 = vadd.f32 %v661_v35, %v660_v13  ;;  %v423_v12 = vadd.f32 %v5939_v55, %v5934_v61  ;;  %v6045_v5 = vld [vmem:[%s10807_s3 + $0x3c0] sm:$0xff]  ;;  %v6064_v35 = vld [vmem:[%s10807_s3 + $0x3c8] sm:$0xff] }
  0x6b   :  { %897 = vadd.xlane.f32.xlu0 %v896_v46  ;;  %412 = vadd.xlane.f32.xlu1 %v411_v0  ;;  %v419_v58 = vsel %vm292_vm0, %v5945_v38, 0.0  ;;  %v666_v45 = vmul.f32 %v5794_v30, %v5794_v30  ;;  %v667_v21 = vmul.f32 %v5815_v19, %v5815_v19  ;;  %v668_v51 = vmul.f32 %v5820_v20, %v5820_v20  ;;  %v5990_v30 = vld [vmem:[%s10807_s3 + $0x380] sm:$0xff]  ;;  %v6002_v20 = vld [vmem:[%s10807_s3 + $0x368] sm:$0xff] }
  0x6c   :  { %v903_v22 = vadd.f32 %v902_v40, %v658_v54  ;;  %v418_v32 = vadd.f32 %v417_v25, %v5953_v26  ;;  %v909_v11 = vadd.f32 %v908_v42, %v662_v52  ;;  %v424_v63 = vadd.f32 %v423_v12, %v5962_v50  ;;  %v6069_v18 = vld [vmem:[%s10807_s3 + $0x3e8] sm:$0xff] }
  0x6d   :  { %v665_v19 = vmul.f32 %v5844_v56, %v5844_v56  ;;  %v669_v27 = vmul.f32 %v5839_v1, %v5839_v1  ;;  %v673_v44 = vmul.f32 %v5886_v57, %v5886_v57  ;;  %v6018_v56 = vld [vmem:[%s10807_s3 + $0x390] sm:$0xff]  ;;  %v670_v57 = vmul.f32 %v5856_v17, %v5856_v17  ;;  %v6076_v6 = vld [vmem:[%s10807_s3 + $0x3a8] sm:$0xff] }
  0x6e   :  { %v905_v28 = vadd.f32 %v904_v3, %v903_v22  ;;  %v420_v37 = vadd.f32 %v419_v58, %v418_v32  ;;  %v910_v31 = vadd.f32 %v909_v11, %v663_v29  ;;  %v425_v47 = vadd.f32 %v424_v63, %v5979_v16  ;;  %v6029_v1 = vld [vmem:[%s10807_s3 + $0x3b0] sm:$0xff]  ;;  %v6110_v22 = vld [vmem:[%s10807_s3 + $0x3f8] sm:$0xff] }
  0x6f   :  { %v671_v2 = vmul.f32 %v5881_v60, %v5881_v60  ;;  %v917_v4 = vadd.f32 %v668_v51, %v667_v21  ;;  %v432_v41 = vadd.f32 %v5995_v53, %v5990_v30  ;;  %v913_v7 = vsel %vm292_vm0, %v666_v45, 0.0  ;;  %v6105_v51 = vld [vmem:[%s10807_s3 + $0x3f0] sm:$0xff] }
  0x70   :  { %906 = vadd.xlane.f32.xlu0 %v905_v28  ;;  %421 = vadd.xlane.f32.xlu1 %v420_v37  ;;  %v911_v17 = vadd.f32 %v910_v31, %v664_v36  ;;  %v426_v60 = vadd.f32 %v425_v47, %v6002_v20  ;;  %v674_v33 = vmul.f32 %v5868_v15, %v5868_v15  ;;  %v437_v0 = vsel %vm292_vm0, %v6029_v1, 0.0  ;;  %v6088_v36 = vld [vmem:[%s10807_s3 + $0x3d0] sm:$0xff]  ;;  %v6130_v28 = vld [vmem:[%s10807_s3 + $0x400] sm:$0xff] }
  0x71   :  { %v672_v13 = vmul.f32 %v5903_v8, %v5903_v8  ;;  %v918_v14 = vadd.f32 %v917_v4, %v669_v27  ;;  %v433_v59 = vadd.f32 %v432_v41, %v6018_v56  ;;  %v675_v54 = vmul.f32 %v5873_v48, %v5873_v48  ;;  %v6123_v27 = vld [vmem:[%s10807_s3 + $0x3e0] sm:$0xff]  ;;  %v6142_v4 = vld [vmem:[%s10807_s3 + $0x408] sm:$0xff] }
  0x72   :  { %v912_v15 = vadd.f32 %v911_v17, %v665_v19  ;;  %v427_v3 = vadd.f32 %v426_v60, %v6007_v39  ;;  %v922_v8 = vsel %vm292_vm0, %v673_v44, 0.0  ;;  %v676_v48 = vmul.f32 %v5898_v62, %v5898_v62  ;;  %v6148_v17 = vld [vmem:[%s10807_s3 + $0x420] sm:$0xff]  ;;  %v6162_v60 = vld [vmem:[%s10807_s3 + $0x430] sm:$0xff] }
  0x73   :  { %v919_v52 = vadd.f32 %v918_v14, %v670_v57  ;;  %v434_v46 = vadd.f32 %v433_v59, %v6024_v24  ;;  %v677_v29 = vmul.f32 %v5915_v10, %v5915_v10  ;;  %v926_v42 = vadd.f32 %v675_v54, %v674_v33  ;;  %v6098_v10 = vld [vmem:[%s10807_s3 + $0x3d8] sm:$0xff] }
  0x74   :  { %v914_v40 = vadd.f32 %v913_v7, %v912_v15  ;;  %v429_v25 = vadd.f32 %v428_v23, %v427_v3  ;;  %v441_v62 = vadd.f32 %v6045_v5, %v6040_v49  ;;  %v678_v45 = vmul.f32 %v5927_v34, %v5927_v34  ;;  %v6157_v7 = vld [vmem:[%s10807_s3 + $0x428] sm:$0xff] }
  0x75   :  { %v920_v12 = vadd.f32 %v919_v52, %v671_v2  ;;  %v435_v58 = vadd.f32 %v434_v46, %v6052_v9  ;;  %v681_v21 = vmul.f32 %v5934_v61, %v5934_v61  ;;  %v927_v34 = vadd.f32 %v926_v42, %v676_v48 }
  0x76   :  { %915 = vadd.xlane.f32.xlu0 %v914_v40  ;;  %430 = vadd.xlane.f32.xlu1 %v429_v25  ;;  %v442_v32 = vadd.f32 %v441_v62, %v6064_v35  ;;  %v446_v11 = vsel %vm292_vm0, %v6069_v18, 0.0  ;;  %v682_v61 = vmul.f32 %v5939_v55, %v5939_v55  ;;  %v680_v23 = vmul.f32 %v5945_v38, %v5945_v38 }
  0x77   :  { %v921_v63 = vadd.f32 %v920_v12, %v672_v13  ;;  %v436_v19 = vadd.f32 %v435_v58, %v6076_v6  ;;  %v683_v44 = vmul.f32 %v5962_v50, %v5962_v50  ;;  %v679_v55 = vmul.f32 %v5953_v26, %v5953_v26  ;;  %v6209_v12 = vld [vmem:[%s10807_s3 + $0x460] sm:$0xff]  ;;  %v6214_v58 = vld [vmem:[%s10807_s3 + $0x468] sm:$0xff] }
  0x78   :  { %v928_v37 = vadd.f32 %v927_v34, %v677_v29  ;;  %v443_v31 = vadd.f32 %v442_v32, %v6088_v36  ;;  %v684_v38 = vmul.f32 %v5979_v16, %v5979_v16  ;;  %v685_v2 = vmul.f32 %v6002_v20, %v6002_v20  ;;  %v6221_v34 = vld [vmem:[%s10807_s3 + $0x448] sm:$0xff]  ;;  %v6226_v32 = vld [vmem:[%s10807_s3 + $0x458] sm:$0xff] }
  0x79   :  { %v923_v47 = vadd.f32 %v922_v8, %v921_v63  ;;  %v438_v57 = vadd.f32 %v437_v0, %v436_v19  ;;  %v935_v50 = vadd.f32 %v682_v61, %v681_v21  ;;  %v450_v16 = vadd.f32 %v6110_v22, %v6105_v51 }
  0x7a   :  { %v929_v41 = vadd.f32 %v928_v37, %v678_v45  ;;  %v444_v26 = vadd.f32 %v443_v31, %v6098_v10  ;;  %v688_v20 = vmul.f32 %v5990_v30, %v5990_v30  ;;  %v931_v33 = vsel %vm292_vm0, %v680_v23, 0.0  ;;  %v6170_v30 = vld [vmem:[%s10807_s3 + $0x410] sm:$0xff] }
  0x7b   :  { %924 = vadd.xlane.f32.xlu0 %v923_v47  ;;  %439 = vadd.xlane.f32.xlu1 %v438_v57  ;;  %v687_v13 = vmul.f32 %v5968_v43, %v5968_v43  ;;  %v936_v14 = vadd.f32 %v935_v50, %v683_v44  ;;  %v689_v59 = vmul.f32 %v5995_v53, %v5995_v53  ;;  %v6181_v43 = vld [vmem:[%s10807_s3 + $0x438] sm:$0xff]  ;;  %v455_v62 = vsel %vm292_vm0, %v6148_v17, 0.0  ;;  %v6238_v44 = vld [vmem:[%s10807_s3 + $0x470] sm:$0xff] }
  0x7c   :  { %v930_v54 = vadd.f32 %v929_v41, %v679_v55  ;;  %v445_v15 = vadd.f32 %v444_v26, %v6123_v27  ;;  %v451_v3 = vadd.f32 %v450_v16, %v6130_v28  ;;  %v690_v8 = vmul.f32 %v6018_v56, %v6018_v56  ;;  %v6188_v53 = vld [vmem:[%s10807_s3 + $0x418] sm:$0xff] }
  0x7d   :  { %v686_v48 = vmul.f32 %v6007_v39, %v6007_v39  ;;  %v937_v52 = vadd.f32 %v936_v14, %v684_v38  ;;  %v691_v46 = vmul.f32 %v6024_v24, %v6024_v24  ;;  %v694_v56 = vmul.f32 %v6029_v1, %v6029_v1  ;;  %v6198_v39 = vld [vmem:[%s10807_s3 + $0x440] sm:$0xff]  ;;  %v6262_v50 = vld [vmem:[%s10807_s3 + $0x478] sm:$0xff] }
  0x7e   :  { %v932_v0 = vadd.f32 %v931_v33, %v930_v54  ;;  %v447_v29 = vadd.f32 %v446_v11, %v445_v15  ;;  %v452_v40 = vadd.f32 %v451_v3, %v6142_v4  ;;  %v944_v25 = vadd.f32 %v689_v59, %v688_v20  ;;  %v6269_v20 = vld [vmem:[%s10807_s3 + $0x498] sm:$0xff] }
  0x7f   :  { %v938_v42 = vadd.f32 %v937_v52, %v685_v2  ;;  %v692_v24 = vmul.f32 %v6052_v9, %v6052_v9  ;;  %v459_v1 = vadd.f32 %v6162_v60, %v6157_v7  ;;  %v940_v45 = vsel %vm292_vm0, %v687_v13, 0.0  ;;  %v6282_v13 = vld [vmem:[%s10807_s3 + $0x480] sm:$0xff] }
  0x80   :  { %933 = vadd.xlane.f32.xlu0 %v932_v0  ;;  %448 = vadd.xlane.f32.xlu1 %v447_v29  ;;  %v453_v21 = vadd.f32 %v452_v40, %v6170_v30  ;;  %v945_v9 = vadd.f32 %v944_v25, %v690_v8  ;;  %v695_v11 = vmul.f32 %v6040_v49, %v6040_v49  ;;  %v949_v31 = vsel %vm292_vm0, %v694_v56, 0.0  ;;  %v6245_v49 = vld [vmem:[%s10807_s3 + $0x450] sm:$0xff] }
  0x81   :  { %v939_v61 = vadd.f32 %v938_v42, %v686_v48  ;;  %v693_v63 = vmul.f32 %v6076_v6, %v6076_v6  ;;  %v460_v19 = vadd.f32 %v459_v1, %v6181_v43  ;;  %v696_v23 = vmul.f32 %v6045_v5, %v6045_v5  ;;  %v6252_v5 = vld [vmem:[%s10807_s3 + $0x490] sm:$0xff]  ;;  %v6294_v48 = vld [vmem:[%s10807_s3 + $0x4a8] sm:$0xff]  ;;  %v6327_v1 = vld [vmem:[%s10807_s3 + $0x4d8] sm:$0xff] }
  0x82   :  { %v454_v55 = vadd.f32 %v453_v21, %v6188_v53  ;;  %v946_v37 = vadd.f32 %v945_v9, %v691_v46  ;;  %v697_v6 = vmul.f32 %v6064_v35, %v6064_v35  ;;  %v698_v57 = vmul.f32 %v6088_v36, %v6088_v36  ;;  %v6335_v9 = vld [vmem:[%s10807_s3 + $0x4b8] sm:$0xff] }
  0x83   :  { %v941_v38 = vadd.f32 %v940_v45, %v939_v61  ;;  %v461_v47 = vadd.f32 %v460_v19, %v6198_v39  ;;  %v701_v2 = vmul.f32 %v6069_v18, %v6069_v18  ;;  %v953_v26 = vadd.f32 %v696_v23, %v695_v11  ;;  %v6274_v18 = vld [vmem:[%s10807_s3 + $0x4a0] sm:$0xff]  ;;  %v6340_v11 = vld [vmem:[%s10807_s3 + $0x4c8] sm:$0xff] }
  0x84   :  { %v456_v35 = vadd.f32 %v455_v62, %v454_v55  ;;  %v947_v41 = vadd.f32 %v946_v37, %v692_v24  ;;  %v468_v16 = vadd.f32 %v6214_v58, %v6209_v12  ;;  %v464_v33 = vsel %vm292_vm0, %v6226_v32, 0.0  ;;  %v6352_v55 = vld [vmem:[%s10807_s3 + $0x4e0] sm:$0xff] }
  0x85   :  { %942 = vadd.xlane.f32.xlu0 %v941_v38  ;;  %v462_v36 = vadd.f32 %v461_v47, %v6221_v34  ;;  %v702_v14 = vmul.f32 %v6105_v51, %v6105_v51  ;;  %v703_v59 = vmul.f32 %v6110_v22, %v6110_v22  ;;  %v699_v15 = vmul.f32 %v6098_v10, %v6098_v10  ;;  %v6302_v22 = vld [vmem:[%s10807_s3 + $0x488] sm:$0xff] }
  0x86   :  { %457 = vadd.xlane.f32.xlu1 %v456_v35  ;;  %v948_v54 = vadd.f32 %v947_v41, %v693_v63  ;;  %v954_v3 = vadd.f32 %v953_v26, %v697_v6  ;;  %v469_v8 = vadd.f32 %v468_v16, %v6238_v44  ;;  %v700_v51 = vmul.f32 %v6123_v27, %v6123_v27  ;;  %v6313_v27 = vld [vmem:[%s10807_s3 + $0x4b0] sm:$0xff] }
  0x87   :  { %v463_v52 = vadd.f32 %v462_v36, %v6245_v49  ;;  %v473_v10 = vsel %vm292_vm0, %v6252_v5, 0.0  ;;  %v704_v46 = vmul.f32 %v6130_v28, %v6130_v28  ;;  %v958_v29 = vsel %vm292_vm0, %v701_v2, 0.0  ;;  %v6322_v28 = vld [vmem:[%s10807_s3 + $0x4d0] sm:$0xff] }
  0x88   :  { %v950_v56 = vadd.f32 %v949_v31, %v948_v54  ;;  %v955_v0 = vadd.f32 %v954_v3, %v698_v57  ;;  %v470_v40 = vadd.f32 %v469_v8, %v6262_v50  ;;  %v705_v42 = vmul.f32 %v6142_v4, %v6142_v4  ;;  %v6391_v3 = vld [vmem:[%s10807_s3 + $0x4f0] sm:$0xff] }
  0x89   :  { %v465_v25 = vadd.f32 %v464_v33, %v463_v52  ;;  %v962_v62 = vadd.f32 %v703_v59, %v702_v14  ;;  %v477_v24 = vadd.f32 %v6274_v18, %v6269_v20  ;;  %v706_v4 = vmul.f32 %v6170_v30, %v6170_v30  ;;  %v6398_v52 = vld [vmem:[%s10807_s3 + $0x508] sm:$0xff] }
  0x8a   :  { %951 = vadd.xlane.f32.xlu0 %v950_v56  ;;  %v956_v45 = vadd.f32 %v955_v0, %v699_v15  ;;  %v471_v21 = vadd.f32 %v470_v40, %v6282_v13  ;;  %v709_v61 = vmul.f32 %v6157_v7, %v6157_v7  ;;  %v707_v63 = vmul.f32 %v6188_v53, %v6188_v53  ;;  %v6360_v53 = vld [vmem:[%s10807_s3 + $0x4c0] sm:$0xff] }
  0x8b   :  { %466 = vadd.xlane.f32.xlu1 %v465_v25  ;;  %v963_v19 = vadd.f32 %v962_v62, %v704_v46  ;;  %v478_v30 = vadd.f32 %v477_v24, %v6294_v48  ;;  %v710_v23 = vmul.f32 %v6162_v60, %v6162_v60  ;;  %v708_v7 = vmul.f32 %v6148_v17, %v6148_v17 }
  0x8c   :  { %v957_v37 = vadd.f32 %v956_v45, %v700_v51  ;;  %v472_v31 = vadd.f32 %v471_v21, %v6302_v22  ;;  %v711_v6 = vmul.f32 %v6181_v43, %v6181_v43  ;;  %v712_v47 = vmul.f32 %v6198_v39, %v6198_v39  ;;  %v6379_v39 = vld [vmem:[%s10807_s3 + $0x4e8] sm:$0xff]  ;;  %v6432_v45 = vld [vmem:[%s10807_s3 + $0x538] sm:$0xff] }
  0x8d   :  { %v964_v60 = vadd.f32 %v963_v19, %v705_v42  ;;  %v479_v38 = vadd.f32 %v478_v30, %v6313_v27  ;;  %v715_v57 = vmul.f32 %v6226_v32, %v6226_v32  ;;  %v971_v17 = vadd.f32 %v710_v23, %v709_v61  ;;  %v6426_v42 = vld [vmem:[%s10807_s3 + $0x518] sm:$0xff] }
  0x8e   :  { %v959_v2 = vadd.f32 %v958_v29, %v957_v37  ;;  %v474_v35 = vadd.f32 %v473_v10, %v472_v31  ;;  %v486_v41 = vadd.f32 %v6327_v1, %v6322_v28  ;;  %v482_v43 = vsel %vm292_vm0, %v6340_v11, 0.0  ;;  %v6409_v10 = vld [vmem:[%s10807_s3 + $0x500] sm:$0xff]  ;;  %v6417_v29 = vld [vmem:[%s10807_s3 + $0x4f8] sm:$0xff]  ;;  %v6459_v31 = vld [vmem:[%s10807_s3 + $0x548] sm:$0xff] }
  0x8f   :  { %v965_v26 = vadd.f32 %v964_v60, %v706_v4  ;;  %v480_v16 = vadd.f32 %v479_v38, %v6335_v9  ;;  %v713_v36 = vmul.f32 %v6221_v34, %v6221_v34  ;;  %v967_v32 = vsel %vm292_vm0, %v708_v7, 0.0  ;;  %v6443_v4 = vld [vmem:[%s10807_s3 + $0x520] sm:$0xff] }
  0x90   :  { %960 = vadd.xlane.f32.xlu0 %v959_v2  ;;  %475 = vadd.xlane.f32.xlu1 %v474_v35  ;;  %v972_v33 = vadd.f32 %v971_v17, %v711_v6  ;;  %v487_v14 = vadd.f32 %v486_v41, %v6352_v55  ;;  %v716_v59 = vmul.f32 %v6209_v12, %v6209_v12  ;;  %v6403_v12 = vld [vmem:[%s10807_s3 + $0x510] sm:$0xff]  ;;  %v500_v7 = vsel %vm292_vm0, %v6432_v45, 0.0 }
  0x91   :  { %v966_v54 = vadd.f32 %v965_v26, %v707_v63  ;;  %v481_v15 = vadd.f32 %v480_v16, %v6360_v53  ;;  %v714_v34 = vmul.f32 %v6245_v49, %v6245_v49  ;;  %v717_v8 = vmul.f32 %v6214_v58, %v6214_v58  ;;  %v6483_v35 = vld [vmem:[%s10807_s3 + $0x530] sm:$0xff] }
  0x92   :  { %v973_v51 = vadd.f32 %v972_v33, %v712_v47  ;;  %v976_v49 = vsel %vm292_vm0, %v715_v57, 0.0  ;;  %v488_v58 = vadd.f32 %v487_v14, %v6379_v39  ;;  %v718_v46 = vmul.f32 %v6238_v44, %v6238_v44 }
  0x93   :  { %v968_v56 = vadd.f32 %v967_v32, %v966_v54  ;;  %v483_v0 = vadd.f32 %v482_v43, %v481_v15  ;;  %v719_v40 = vmul.f32 %v6262_v50, %v6262_v50  ;;  %v720_v25 = vmul.f32 %v6282_v13, %v6282_v13  ;;  %v6513_v54 = vld [vmem:[%s10807_s3 + $0x578] sm:$0xff]  ;;  %v6518_v15 = vld [vmem:[%s10807_s3 + $0x580] sm:$0xff] }
  0x94   :  { %v974_v62 = vadd.f32 %v973_v51, %v713_v36  ;;  %v489_v44 = vadd.f32 %v488_v58, %v6391_v3  ;;  %v980_v24 = vadd.f32 %v717_v8, %v716_v59  ;;  %v495_v50 = vadd.f32 %v6403_v12, %v6398_v52  ;;  %v6496_v36 = vld [vmem:[%s10807_s3 + $0x558] sm:$0xff]  ;;  %v6525_v8 = vld [vmem:[%s10807_s3 + $0x560] sm:$0xff] }
  0x95   :  { %969 = vadd.xlane.f32.xlu0 %v968_v56  ;;  %484 = vadd.xlane.f32.xlu1 %v483_v0  ;;  %v491_v13 = vsel %vm292_vm0, %v6409_v10, 0.0  ;;  %v722_v21 = vmul.f32 %v6252_v5, %v6252_v5  ;;  %v723_v61 = vmul.f32 %v6269_v20, %v6269_v20  ;;  %v724_v63 = vmul.f32 %v6274_v18, %v6274_v18  ;;  %v6454_v5 = vld [vmem:[%s10807_s3 + $0x540] sm:$0xff]  ;;  %v6466_v18 = vld [vmem:[%s10807_s3 + $0x528] sm:$0xff] }
  0x96   :  { %v975_v19 = vadd.f32 %v974_v62, %v714_v34  ;;  %v490_v30 = vadd.f32 %v489_v44, %v6417_v29  ;;  %v981_v23 = vadd.f32 %v980_v24, %v718_v46  ;;  %v496_v37 = vadd.f32 %v495_v50, %v6426_v42  ;;  %v6537_v56 = vld [vmem:[%s10807_s3 + $0x588] sm:$0xff] }
  0x97   :  { %v721_v20 = vmul.f32 %v6302_v22, %v6302_v22  ;;  %v725_v6 = vmul.f32 %v6294_v48, %v6294_v48  ;;  %v729_v60 = vmul.f32 %v6340_v11, %v6340_v11  ;;  %v6478_v22 = vld [vmem:[%s10807_s3 + $0x550] sm:$0xff]  ;;  %v726_v48 = vmul.f32 %v6313_v27, %v6313_v27  ;;  %v6542_v0 = vld [vmem:[%s10807_s3 + $0x5a8] sm:$0xff] }
  0x98   :  { %v977_v38 = vadd.f32 %v976_v49, %v975_v19  ;;  %v492_v47 = vadd.f32 %v491_v13, %v490_v30  ;;  %v982_v57 = vadd.f32 %v981_v23, %v719_v40  ;;  %v497_v2 = vadd.f32 %v496_v37, %v6443_v4  ;;  %v6501_v27 = vld [vmem:[%s10807_s3 + $0x570] sm:$0xff] }
  0x99   :  { %v727_v11 = vmul.f32 %v6335_v9, %v6335_v9  ;;  %v989_v17 = vadd.f32 %v724_v63, %v723_v61  ;;  %v504_v41 = vadd.f32 %v6459_v31, %v6454_v5  ;;  %v985_v16 = vsel %vm292_vm0, %v722_v21, 0.0  ;;  %v6557_v13 = vld [vmem:[%s10807_s3 + $0x590] sm:$0xff] }
  0x9a   :  { %978 = vadd.xlane.f32.xlu0 %v977_v38  ;;  %493 = vadd.xlane.f32.xlu1 %v492_v47  ;;  %v983_v26 = vadd.f32 %v982_v57, %v720_v25  ;;  %v498_v43 = vadd.f32 %v497_v2, %v6466_v18  ;;  %v730_v9 = vmul.f32 %v6322_v28, %v6322_v28  ;;  %v509_v58 = vsel %vm292_vm0, %v6501_v27, 0.0  ;;  %v6547_v25 = vld [vmem:[%s10807_s3 + $0x568] sm:$0xff]  ;;  %v6594_v57 = vld [vmem:[%s10807_s3 + $0x5a0] sm:$0xff] }
  0x9b   :  { %v728_v32 = vmul.f32 %v6360_v53, %v6360_v53  ;;  %v990_v33 = vadd.f32 %v989_v17, %v725_v6  ;;  %v505_v14 = vadd.f32 %v504_v41, %v6478_v22  ;;  %v731_v59 = vmul.f32 %v6327_v1, %v6327_v1 }
  0x9c   :  { %v984_v28 = vadd.f32 %v983_v26, %v721_v20  ;;  %v499_v34 = vadd.f32 %v498_v43, %v6483_v35  ;;  %v994_v53 = vsel %vm292_vm0, %v729_v60, 0.0  ;;  %v732_v1 = vmul.f32 %v6352_v55, %v6352_v55  ;;  %v6614_v43 = vld [vmem:[%s10807_s3 + $0x5c8] sm:$0xff] }
  0x9d   :  { %v991_v51 = vadd.f32 %v990_v33, %v726_v48  ;;  %v506_v49 = vadd.f32 %v505_v14, %v6496_v36  ;;  %v733_v46 = vmul.f32 %v6379_v39, %v6379_v39  ;;  %v998_v62 = vadd.f32 %v731_v59, %v730_v9  ;;  %v6630_v59 = vld [vmem:[%s10807_s3 + $0x5e8] sm:$0xff] }
  0x9e   :  { %v986_v55 = vadd.f32 %v985_v16, %v984_v28  ;;  %v501_v40 = vadd.f32 %v500_v7, %v499_v34  ;;  %v513_v39 = vadd.f32 %v6518_v15, %v6513_v54  ;;  %v734_v50 = vmul.f32 %v6391_v3, %v6391_v3  ;;  %v6579_v7 = vld [vmem:[%s10807_s3 + $0x5b0] sm:$0xff] }
  0x9f   :  { %v992_v44 = vadd.f32 %v991_v51, %v727_v11  ;;  %v507_v24 = vadd.f32 %v506_v49, %v6525_v8  ;;  %v737_v21 = vmul.f32 %v6398_v52, %v6398_v52  ;;  %v999_v61 = vadd.f32 %v998_v62, %v732_v1  ;;  %v6572_v52 = vld [vmem:[%s10807_s3 + $0x598] sm:$0xff] }
  0xa0   :  { %987 = vadd.xlane.f32.xlu0 %v986_v55  ;;  %502 = vadd.xlane.f32.xlu1 %v501_v40  ;;  %v514_v63 = vadd.f32 %v513_v39, %v6537_v56  ;;  %v518_v19 = vsel %vm292_vm0, %v6542_v0, 0.0  ;;  %v738_v30 = vmul.f32 %v6403_v12, %v6403_v12  ;;  %v736_v37 = vmul.f32 %v6409_v10, %v6409_v10  ;;  %v6584_v12 = vld [vmem:[%s10807_s3 + $0x5b8] sm:$0xff] }
  0xa1   :  { %v993_v3 = vadd.f32 %v992_v44, %v728_v32  ;;  %v508_v23 = vadd.f32 %v507_v24, %v6547_v25  ;;  %v739_v20 = vmul.f32 %v6426_v42, %v6426_v42  ;;  %v735_v10 = vmul.f32 %v6417_v29, %v6417_v29  ;;  %v6601_v29 = vld [vmem:[%s10807_s3 + $0x5c0] sm:$0xff]  ;;  %v6657_v40 = vld [vmem:[%s10807_s3 + $0x5d8] sm:$0xff] }
  0xa2   :  { %v1000_v6 = vadd.f32 %v999_v61, %v733_v46  ;;  %v515_v60 = vadd.f32 %v514_v63, %v6557_v13  ;;  %v740_v38 = vmul.f32 %v6443_v4, %v6443_v4  ;;  %v741_v2 = vmul.f32 %v6466_v18, %v6466_v18 }
  0xa3   :  { %v995_v42 = vadd.f32 %v994_v53, %v993_v3  ;;  %v510_v47 = vadd.f32 %v509_v58, %v508_v23  ;;  %v1007_v48 = vadd.f32 %v738_v30, %v737_v21  ;;  %v522_v4 = vadd.f32 %v6584_v12, %v6579_v7  ;;  %v6642_v53 = vld [vmem:[%s10807_s3 + $0x5d0] sm:$0xff]  ;;  %v6682_v30 = vld [vmem:[%s10807_s3 + $0x620] sm:$0xff]  ;;  %v6687_v3 = vld [vmem:[%s10807_s3 + $0x628] sm:$0xff] }
  0xa4   :  { %v1001_v11 = vadd.f32 %v1000_v6, %v734_v50  ;;  %v516_v17 = vadd.f32 %v515_v60, %v6572_v52  ;;  %v744_v41 = vmul.f32 %v6454_v5, %v6454_v5  ;;  %v1003_v26 = vsel %vm292_vm0, %v736_v37, 0.0  ;;  %v6622_v5 = vld [vmem:[%s10807_s3 + $0x5e0] sm:$0xff]  ;;  %v6694_v37 = vld [vmem:[%s10807_s3 + $0x608] sm:$0xff] }
  0xa5   :  { %996 = vadd.xlane.f32.xlu0 %v995_v42  ;;  %511 = vadd.xlane.f32.xlu1 %v510_v47  ;;  %v743_v18 = vmul.f32 %v6432_v45, %v6432_v45  ;;  %v1008_v16 = vadd.f32 %v1007_v48, %v739_v20  ;;  %v745_v9 = vmul.f32 %v6459_v31, %v6459_v31  ;;  %v6635_v31 = vld [vmem:[%s10807_s3 + $0x5f0] sm:$0xff]  ;;  %v6670_v50 = vld [vmem:[%s10807_s3 + $0x600] sm:$0xff] }
  0xa6   :  { %v1002_v32 = vadd.f32 %v1001_v11, %v735_v10  ;;  %v517_v33 = vadd.f32 %v516_v17, %v6594_v57  ;;  %v523_v14 = vadd.f32 %v522_v4, %v6601_v29  ;;  %v746_v45 = vmul.f32 %v6478_v22, %v6478_v22  ;;  %v6711_v42 = vld [vmem:[%s10807_s3 + $0x630] sm:$0xff]  ;;  %v6731_v4 = vld [vmem:[%s10807_s3 + $0x638] sm:$0xff] }
  0xa7   :  { %v742_v28 = vmul.f32 %v6483_v35, %v6483_v35  ;;  %v1009_v34 = vadd.f32 %v1008_v16, %v740_v38  ;;  %v747_v22 = vmul.f32 %v6496_v36, %v6496_v36  ;;  %v750_v1 = vmul.f32 %v6501_v27, %v6501_v27  ;;  %v6652_v35 = vld [vmem:[%s10807_s3 + $0x5f8] sm:$0xff] }
  0xa8   :  { %v1004_v51 = vadd.f32 %v1003_v26, %v1002_v32  ;;  %v519_v49 = vadd.f32 %v518_v19, %v517_v33  ;;  %v524_v58 = vadd.f32 %v523_v14, %v6614_v43  ;;  %v1016_v46 = vadd.f32 %v745_v9, %v744_v41  ;;  %v6743_v33 = vld [vmem:[%s10807_s3 + $0x658] sm:$0xff] }
  0xa9   :  { %v1010_v55 = vadd.f32 %v1009_v34, %v741_v2  ;;  %v527_v36 = vsel %vm292_vm0, %v6622_v5, 0.0  ;;  %v748_v27 = vmul.f32 %v6525_v8, %v6525_v8  ;;  %v531_v62 = vadd.f32 %v6635_v31, %v6630_v59 }
  0xaa   :  { %1005 = vadd.xlane.f32.xlu0 %v1004_v51  ;;  %520 = vadd.xlane.f32.xlu1 %v519_v49  ;;  %v1012_v39 = vsel %vm292_vm0, %v743_v18, 0.0  ;;  %v525_v44 = vadd.f32 %v524_v58, %v6642_v53  ;;  %v1017_v24 = vadd.f32 %v1016_v46, %v746_v45  ;;  %v751_v21 = vmul.f32 %v6513_v54, %v6513_v54  ;;  %v6772_v58 = vld [vmem:[%s10807_s3 + $0x648] sm:$0xff] }
  0xab   :  { %v1011_v61 = vadd.f32 %v1010_v55, %v742_v28  ;;  %v749_v8 = vmul.f32 %v6547_v25, %v6547_v25  ;;  %v532_v63 = vadd.f32 %v531_v62, %v6652_v35  ;;  %v752_v19 = vmul.f32 %v6518_v15, %v6518_v15  ;;  %v6699_v15 = vld [vmem:[%s10807_s3 + $0x618] sm:$0xff] }
  0xac   :  { %v526_v54 = vadd.f32 %v525_v44, %v6657_v40  ;;  %v1018_v23 = vadd.f32 %v1017_v24, %v747_v22  ;;  %v1021_v25 = vsel %vm292_vm0, %v750_v1, 0.0  ;;  %v753_v20 = vmul.f32 %v6537_v56, %v6537_v56  ;;  %v6716_v56 = vld [vmem:[%s10807_s3 + $0x610] sm:$0xff] }
  0xad   :  { %v1013_v10 = vadd.f32 %v1012_v39, %v1011_v61  ;;  %v533_v6 = vadd.f32 %v532_v63, %v6670_v50  ;;  %v754_v60 = vmul.f32 %v6557_v13, %v6557_v13  ;;  %v757_v38 = vmul.f32 %v6542_v0, %v6542_v0  ;;  %v6721_v13 = vld [vmem:[%s10807_s3 + $0x650] sm:$0xff] }
  0xae   :  { %v528_v47 = vadd.f32 %v527_v36, %v526_v54  ;;  %v1019_v2 = vadd.f32 %v1018_v23, %v748_v27  ;;  %v1025_v48 = vadd.f32 %v752_v19, %v751_v21  ;;  %v540_v0 = vadd.f32 %v6687_v3, %v6682_v30  ;;  %v6784_v39 = vld [vmem:[%s10807_s3 + $0x670] sm:$0xff]  ;;  %v6814_v19 = vld [vmem:[%s10807_s3 + $0x688] sm:$0xff] }
  0xaf   :  { %1014 = vadd.xlane.f32.xlu0 %v1013_v10  ;;  %v534_v11 = vadd.f32 %v533_v6, %v6694_v37  ;;  %v536_v17 = vsel %vm292_vm0, %v6699_v15, 0.0  ;;  %v758_v41 = vmul.f32 %v6579_v7, %v6579_v7  ;;  %v759_v26 = vmul.f32 %v6584_v12, %v6584_v12  ;;  %v6748_v7 = vld [vmem:[%s10807_s3 + $0x660] sm:$0xff] }
  0xb0   :  { %529 = vadd.xlane.f32.xlu1 %v528_v47  ;;  %v1020_v18 = vadd.f32 %v1019_v2, %v749_v8  ;;  %v755_v16 = vmul.f32 %v6572_v52, %v6572_v52  ;;  %v1026_v9 = vadd.f32 %v1025_v48, %v753_v20  ;;  %v541_v32 = vadd.f32 %v540_v0, %v6711_v42  ;;  %v6756_v52 = vld [vmem:[%s10807_s3 + $0x640] sm:$0xff]  ;;  %v6801_v8 = vld [vmem:[%s10807_s3 + $0x698] sm:$0xff]  ;;  %v6843_v0 = vld [vmem:[%s10807_s3 + $0x6a8] sm:$0xff] }
  0xb1   :  { %v535_v12 = vadd.f32 %v534_v11, %v6716_v56  ;;  %v756_v14 = vmul.f32 %v6594_v57, %v6594_v57  ;;  %v545_v45 = vsel %vm292_vm0, %v6721_v13, 0.0  ;;  %v760_v28 = vmul.f32 %v6601_v29, %v6601_v29  ;;  %v6767_v57 = vld [vmem:[%s10807_s3 + $0x668] sm:$0xff]  ;;  %v6826_v10 = vld [vmem:[%s10807_s3 + $0x6a0] sm:$0xff] }
  0xb2   :  { %v1022_v34 = vadd.f32 %v1021_v25, %v1020_v18  ;;  %v1027_v22 = vadd.f32 %v1026_v9, %v754_v60  ;;  %v1030_v1 = vsel %vm292_vm0, %v757_v38, 0.0  ;;  %v542_v51 = vadd.f32 %v541_v32, %v6731_v4  ;;  %v6855_v9 = vld [vmem:[%s10807_s3 + $0x6b0] sm:$0xff] }
  0xb3   :  { %v537_v49 = vadd.f32 %v536_v17, %v535_v12  ;;  %v761_v29 = vmul.f32 %v6614_v43, %v6614_v43  ;;  %v1034_v46 = vadd.f32 %v759_v26, %v758_v41  ;;  %v549_v55 = vadd.f32 %v6748_v7, %v6743_v33  ;;  %v280_v12 = vld [vmem:[%s10807_s3 + $0x6c8] sm:$0xff] }
  0xb4   :  { %1023 = vadd.xlane.f32.xlu0 %v1022_v34  ;;  %v1028_v36 = vadd.f32 %v1027_v22, %v755_v16  ;;  %v543_v27 = vadd.f32 %v542_v51, %v6756_v52  ;;  %v762_v62 = vmul.f32 %v6642_v53, %v6642_v53  ;;  %v765_v44 = vmul.f32 %v6630_v59, %v6630_v59  ;;  %v6796_v53 = vld [vmem:[%s10807_s3 + $0x690] sm:$0xff] }
  0xb5   :  { %538 = vadd.xlane.f32.xlu1 %v537_v49  ;;  %v763_v43 = vmul.f32 %v6657_v40, %v6657_v40  ;;  %v1035_v24 = vadd.f32 %v1034_v46, %v760_v28  ;;  %v550_v21 = vadd.f32 %v549_v55, %v6767_v57  ;;  %v766_v61 = vmul.f32 %v6635_v31, %v6635_v31  ;;  %v6809_v31 = vld [vmem:[%s10807_s3 + $0x678] sm:$0xff] }
  0xb6   :  { %v1029_v59 = vadd.f32 %v1028_v36, %v756_v14  ;;  %v544_v63 = vadd.f32 %v543_v27, %v6772_v58  ;;  %v764_v40 = vmul.f32 %v6622_v5, %v6622_v5  ;;  %v767_v54 = vmul.f32 %v6652_v35, %v6652_v35  ;;  %v6831_v35 = vld [vmem:[%s10807_s3 + $0x680] sm:$0xff]  ;;  %v286_v36 = vld [vmem:[%s10807_s3 + $0x6f8] sm:$0xff] }
  0xb7   :  { %v1036_v23 = vadd.f32 %v1035_v24, %v761_v29  ;;  %v551_v25 = vadd.f32 %v550_v21, %v6784_v39  ;;  %v768_v20 = vmul.f32 %v6670_v50, %v6670_v50  ;;  %v771_v5 = vmul.f32 %v6699_v15, %v6699_v15  ;;  %v282_v29 = vld [vmem:[%s10807_s3 + $0x6d8] sm:$0xff] }
  0xb8   :  { %v1031_v6 = vadd.f32 %v1030_v1, %v1029_v59  ;;  %v546_v60 = vadd.f32 %v545_v45, %v544_v63  ;;  %v1043_v38 = vadd.f32 %v766_v61, %v765_v44  ;;  %v558_v47 = vadd.f32 %v6801_v8, %v6796_v53  ;;  %v6877_v1 = vld [vmem:[%s10807_s3 + $0x6b8] sm:$0xff]  ;;  %v283_v44 = vld [vmem:[%s10807_s3 + $0x6e0] sm:$0xff] }
  0xb9   :  { %v1037_v50 = vadd.f32 %v1036_v23, %v762_v62  ;;  %v552_v2 = vadd.f32 %v551_v25, %v6809_v31  ;;  %v554_v15 = vsel %vm292_vm0, %v6814_v19, 0.0  ;;  %v769_v48 = vmul.f32 %v6694_v37, %v6694_v37 }
  0xba   :  { %1032 = vadd.xlane.f32.xlu0 %v1031_v6  ;;  %547 = vadd.xlane.f32.xlu1 %v546_v60  ;;  %v1039_v11 = vsel %vm292_vm0, %v764_v40, 0.0  ;;  %v1044_v17 = vadd.f32 %v1043_v38, %v767_v54  ;;  %v559_v41 = vadd.f32 %v558_v47, %v6826_v10  ;;  %v772_v26 = vmul.f32 %v6682_v30, %v6682_v30  ;;  %v281_v30 = vld [vmem:[%s10807_s3 + $0x6d0] sm:$0xff] }
  0xbb   :  { %v1038_v18 = vadd.f32 %v1037_v50, %v763_v43  ;;  %v553_v16 = vadd.f32 %v552_v2, %v6831_v35  ;;  %v770_v37 = vmul.f32 %v6716_v56, %v6716_v56  ;;  %v773_v32 = vmul.f32 %v6687_v3, %v6687_v3  ;;  %v6869_v56 = vld [vmem:[%s10807_s3 + $0x6c0] sm:$0xff]  ;;  %v285_v6 = vld [vmem:[%s10807_s3 + $0x6f0] sm:$0xff] }
  0xbc   :  { %v1045_v14 = vadd.f32 %v1044_v17, %v768_v20  ;;  %v1048_v45 = vsel %vm292_vm0, %v771_v5, 0.0  ;;  %v560_v28 = vadd.f32 %v559_v41, %v6843_v0  ;;  %v774_v3 = vmul.f32 %v6711_v42, %v6711_v42 }
  0xbd   :  { %v1040_v34 = vadd.f32 %v1039_v11, %v1038_v18  ;;  %v555_v22 = vadd.f32 %v554_v15, %v553_v16  ;;  %v775_v51 = vmul.f32 %v6731_v4, %v6731_v4  ;;  %v776_v49 = vmul.f32 %v6756_v52, %v6756_v52 }
  0xbe   :  { %v1046_v46 = vadd.f32 %v1045_v14, %v769_v48  ;;  %v561_v42 = vadd.f32 %v560_v28, %v6855_v9  ;;  %v1052_v55 = vadd.f32 %v773_v32, %v772_v26  ;;  %v567_v27 = vadd.f32 %v281_v30, %v280_v12 }
  0xbf   :  { %v6890_v62 = vpop.xlane.xlu1 %313  ;;  %1041 = vadd.xlane.f32.xlu0 %v1040_v34  ;;  %556 = vadd.xlane.f32.xlu1 %v555_v22  ;;  %v563_v4 = vsel %vm292_vm0, %v6869_v56, 0.0  ;;  %v778_v52 = vmul.f32 %v6721_v13, %v6721_v13  ;;  %v779_v43 = vmul.f32 %v6743_v33, %v6743_v33  ;;  %v780_v24 = vmul.f32 %v6748_v7, %v6748_v7  ;;  %v284_v13 = vld [vmem:[%s10807_s3 + $0x6e8] sm:$0xff] }
  0xc0   :  { %v1047_v21 = vadd.f32 %v1046_v46, %v770_v37  ;;  %v562_v61 = vadd.f32 %v561_v42, %v6877_v1  ;;  %v1053_v59 = vadd.f32 %v1052_v55, %v774_v3  ;;  %v568_v63 = vadd.f32 %v567_v27, %v282_v29 }
  0xc1   :  { %v296_v40 = vpop.xlane.xlu0 %295  ;;  %v777_v54 = vmul.f32 %v6772_v58, %v6772_v58  ;;  %v572_v23 = vsel %vm292_vm0, %v286_v36, 0.0  ;;  %v781_v33 = vmul.f32 %v6767_v57, %v6767_v57  ;;  %v782_v58 = vmul.f32 %v6784_v39, %v6784_v39 }
  0xc2   :  { %v1049_v25 = vadd.f32 %v1048_v45, %v1047_v21  ;;  %v564_v7 = vadd.f32 %v563_v4, %v562_v61  ;;  %v1054_v20 = vadd.f32 %v1053_v59, %v775_v51  ;;  %v569_v5 = vadd.f32 %v568_v63, %v283_v44 }
  0xc3   :  { %v1061_v60 = vadd.f32 %v780_v24, %v779_v43  ;;  %v793_v38 = vmul.f32 %v280_v12, %v280_v12  ;;  %v794_v47 = vmul.f32 %v281_v30, %v281_v30  ;;  %v1057_v57 = vsel %vm292_vm0, %v778_v52, 0.0 }
  0xc4   :  { %v323_v50 = vpop.xlane.xlu1 %322  ;;  %1050 = vadd.xlane.f32.xlu0 %v1049_v25  ;;  %565 = vadd.xlane.f32.xlu1 %v564_v7  ;;  %v1055_v2 = vadd.f32 %v1054_v20, %v776_v49  ;;  %v570_v15 = vadd.f32 %v569_v5, %v284_v13  ;;  %v795_v48 = vmul.f32 %v282_v29, %v282_v29  ;;  %v6940_v24 = vmul.f32 0.0012755102, %v296_v40 }
  0xc5   :  { %v783_v11 = vmul.f32 %v6809_v31, %v6809_v31  ;;  %v784_v17 = vmul.f32 %v6831_v35, %v6831_v35  ;;  %v785_v39 = vmul.f32 %v6814_v19, %v6814_v19  ;;  %v1062_v41 = vadd.f32 %v1061_v60, %v781_v33 }
  0xc6   :  { %v305_v26 = vpop.xlane.xlu0 %304  ;;  %v1056_v18 = vadd.f32 %v1055_v2, %v777_v54  ;;  %v571_v16 = vadd.f32 %v570_v15, %v285_v6  ;;  %v796_v37 = vmul.f32 %v283_v44, %v283_v44  ;;  %v1079_v32 = vadd.f32 %v794_v47, %v793_v38 }
  0xc7   :  { %v1063_v12 = vadd.f32 %v1062_v41, %v782_v58  ;;  %v797_v30 = vmul.f32 %v284_v13, %v284_v13  ;;  %v786_v14 = vmul.f32 %v6796_v53, %v6796_v53  ;;  %v787_v31 = vmul.f32 %v6801_v8, %v6801_v8 }
  0xc8   :  { %v332_v45 = vpop.xlane.xlu1 %331  ;;  %v1058_v28 = vadd.f32 %v1057_v57, %v1056_v18  ;;  %v573_v35 = vadd.f32 %v572_v23, %v571_v16  ;;  %v1080_v3 = vadd.f32 %v1079_v32, %v795_v48  ;;  %v788_v19 = vmul.f32 %v6826_v10, %v6826_v10 }
  0xc9   :  { %v1064_v34 = vadd.f32 %v1063_v12, %v783_v11  ;;  %v798_v22 = vmul.f32 %v285_v6, %v285_v6  ;;  %v799_v51 = vmul.f32 %v286_v36, %v286_v36  ;;  %v1066_v49 = vsel %vm292_vm0, %v785_v39, 0.0 }
  0xca   :  { %1059 = vadd.xlane.f32.xlu0 %v1058_v28  ;;  %574 = vadd.xlane.f32.xlu1 %v573_v35  ;;  %v1081_v29 = vadd.f32 %v1080_v3, %v796_v37  ;;  %v789_v53 = vmul.f32 %v6843_v0, %v6843_v0  ;;  %v1070_v46 = vadd.f32 %v787_v31, %v786_v14  ;;  %v817_v8 = vpop.xlane.xlu0 %816  ;;  %v6935_v52 = vmul.f32 0.0012755102, %v305_v26  ;;  %v4666_v3 = vld [vmem:[%s10808_s4 + $0x4] ss:$8 sps:$4 sm:$0xff]  }
  0xcb   :  { %v1065_v42 = vadd.f32 %v1064_v34, %v784_v17  ;;  %v790_v4 = vmul.f32 %v6855_v9, %v6855_v9  ;;  %v1084_v44 = vsel %vm292_vm0, %v799_v51, 0.0  ;;  %v792_v43 = vmul.f32 %v6869_v56, %v6869_v56  ;;  %3053 = vmatprep.subr.bf16.mxu1 %v4666_v3 }
  0xcc   :  { %v808_v55 = vpop.xlane.xlu1 %807  ;;  %v1082_v27 = vadd.f32 %v1081_v29, %v797_v30  ;;  %v1071_v10 = vadd.f32 %v1070_v46, %v788_v19  ;;  %v791_v21 = vmul.f32 %v6877_v1, %v6877_v1  ;;  %v6945_v9 = vmul.f32 0.0012755102, %v6890_v62  ;;  %v4668_v19 = vld [vmem:[%s10808_s4 + $0x204] ss:$8 sps:$4 sm:$0xff]   ;;  %v4671_v46 = vld [vmem:[%s10808_s4 + $0x200] ss:$8 sps:$4 sm:$0xff]  }
  0xcd   :  { %v1067_v36 = vadd.f32 %v1066_v49, %v1065_v42  ;;  %v1312_v63 = vadd.f32 %v6935_v52, %v6940_v24  ;;  %v1075_v56 = vsel %vm292_vm0, %v792_v43, 0.0  ;;  %v6955_v33 = vmul.f32 0.0012755102, %v323_v50  ;;  %3439 = vmatprep.subr.bf16.mxu0 %v4668_v19 }
  0xce   :  { %v1083_v0 = vadd.f32 %v1082_v27, %v798_v22  ;;  %v1072_v61 = vadd.f32 %v1071_v10, %v789_v53  ;;  %v826_v59 = vpop.xlane.xlu0 %825  ;;  %v1153_v62 = vmul.f32 %v6935_v52, %v6935_v52  ;;  %v1121_v20 = vmul.f32 0.0012755102, %v817_v8  ;;  %v4670_v53 = vld [vmem:[%s10808_s4] ss:$8 sps:$4 sm:$0xff]   ;;  %3440 = vmatpush1.bf16.msra.mxu0 %v4671_v46 }
  0xcf   :  { %1068 = vadd.xlane.f32.xlu0 %v1067_v36  ;;  %v6953_v40 = vadd.f32 %v1312_v63, %v6945_v9  ;;  %v1120_v5 = vmul.f32 0.0012755102, %v808_v55  ;;  %v1152_v6 = vmul.f32 %v6940_v24, %v6940_v24  ;;  %v1154_v60 = vmul.f32 %v6945_v9, %v6945_v9  ;;  %3054 = vmatpush1.bf16.msra.mxu1 %v4670_v53  ;;  %v4674_v63 = vld [vmem:[%s10808_s4 + $0x214] ss:$8 sps:$4 sm:$0xff]  }
  0xd0   :  { %v6949_v54 = vpop.xlane.xlu1 %340  ;;  %v1085_v13 = vadd.f32 %v1084_v44, %v1083_v0  ;;  %v1073_v23 = vadd.f32 %v1072_v61, %v790_v4  ;;  %v1122_v38 = vmul.f32 0.0012755102, %v826_v59  ;;  %v1185_v47 = vsub.f32 %v1121_v20, %v1153_v62  ;;  %v4672_v59 = vld [vmem:[%s10808_s4 + $0x14] ss:$8 sps:$4 sm:$0xff]   ;;  %3441 = vmatprep.subr.bf16.mxu0 %v4674_v63 }
  0xd1   :  { %v1184_v50 = vsub.f32 %v1120_v5, %v1152_v6  ;;  %v1155_v57 = vmul.f32 %v6955_v33, %v6955_v33  ;;  %v6967_v48 = vmul.f32 0.0012755102, %v332_v45  ;;  %v6969_v16 = vstv %s1394_s19  ;;  %3055 = vmatprep.subr.bf16.mxu1 %v4672_v59 }
  0xd2   :  { %1086 = vadd.xlane.f32.xlu1 %v1085_v13  ;;  %v1074_v1 = vadd.f32 %v1073_v23, %v791_v21  ;;  %v1186_v2 = vsub.f32 %v1122_v38, %v1154_v60  ;;  %v1217_v11 = vmul.f32 1.0012771, %v1185_v47  ;;  %v6971_v12 = vstv %s4352_s20 }
  0xd3   :  { %v835_v25 = vpop.xlane.xlu0 %834  ;;  %v1216_v17 = vmul.f32 1.0012771, %v1184_v50  ;;  %v1156_v45 = vmul.f32 %v6967_v48, %v6967_v48  ;;  %v7003_v21 = vmul.f32 0.0012755102, %v6949_v54  ;;  %v4676_v54 = vld [vmem:[%s10808_s4 + $0x10] ss:$8 sps:$4 sm:$0xff]  }
  0xd4   :  { %v1076_v7 = vadd.f32 %v1075_v56, %v1074_v1  ;;  %v6961_v58 = vpop.xlane.xlu1 %349  ;;  %v1123_v15 = vmul.f32 0.0012755102, %v835_v25  ;;  %v1218_v41 = vmul.f32 1.0012771, %v1186_v2  ;;  %v1249_v37 = vadd.f32 %v1217_v11, %v1153_v62  ;;  %v4677_v1 = vld [vmem:[%s10808_s4 + $0x210] ss:$8 sps:$4 sm:$0xff]   ;;  %3056 = vmatpush1.bf16.msra.mxu1 %v4676_v54 }
  0xd5   :  { %v1248_v32 = vadd.f32 %v1216_v17, %v1152_v6  ;;  %v1531_v34 = vmul.f32 %v6969_v16, %v1217_v11  ;;  %v1530_v22 = vmul.f32 %v6969_v16, %v1216_v17  ;;  %v1157_v25 = vmul.f32 %v7003_v21, %v7003_v21  ;;  %3442 = vmatpush1.bf16.msra.mxu0 %v4677_v1 }
  0xd6   :  { %1077 = vadd.xlane.f32.xlu0 %v1076_v7  ;;  %v1187_v26 = vsub.f32 %v1123_v15, %v1155_v57  ;;  %v1250_v30 = vadd.f32 %v1218_v41, %v1154_v60  ;;  %v1281_v31 = vsub.f32 %v1249_v37, %v1153_v62  ;;  %v1532_v10 = vmul.f32 %v6969_v16, %v1218_v41 }
  0xd7   :  { %v1280_v28 = vsub.f32 %v1248_v32, %v1152_v6  ;;  %v1351_v35 = vadd.f32 %v1249_v37, %v1248_v32  ;;  %v7026_v5 = vmul.f32 0.0012755102, %v6961_v58 }
  0xd8   :  { %v844_v39 = vpop.xlane.xlu0 %843  ;;  %v1219_v14 = vmul.f32 1.0012771, %v1187_v26  ;;  %v1282_v51 = vsub.f32 %v1250_v30, %v1154_v60  ;;  %v1564_v8 = vmul.f32 %v6971_v12, %v1281_v31 }
  0xd9   :  { %v359_v18 = vpop.xlane.xlu1 %358  ;;  %v1563_v42 = vmul.f32 %v6971_v12, %v1280_v28  ;;  %v6993_v55 = vadd.f32 %v1351_v35, %v1250_v30  ;;  %v1124_v27 = vmul.f32 0.0012755102, %v844_v39  ;;  %v1158_v50 = vmul.f32 %v7026_v5, %v7026_v5 }
  0xda   :  { %v6983_v49 = vadd.f32 %v1219_v14, %v1155_v57  ;;  %v1565_v36 = vmul.f32 %v6971_v12, %v1282_v51  ;;  %v6998_v43 = vadd.f32 %v1564_v8, %v1531_v34  ;;  %v1533_v23 = vmul.f32 %v6969_v16, %v1219_v14 }
  0xdb   :  { %v7000_v0 = vadd.f32 %v1563_v42, %v1530_v22  ;;  %v1188_v61 = vsub.f32 %v1124_v27, %v1156_v45  ;;  %v7033_v11 = vmul.f32 0.0012755102, %v359_v18 }
  0xdc   :  { %v1283_v44 = vsub.f32 %v6983_v49, %v1155_v57  ;;  %10916 = vst [vmem:[#allocation9_spill] sm:$0xff] %v6998_v43  ;;  %v7011_v13 = vadd.f32 %v1565_v36, %v1532_v10 }
  0xdd   :  { %v853_v29 = vpop.xlane.xlu0 %852  ;;  %10917 = vst [vmem:[#allocation10_spill] sm:$0xff] %v7000_v0  ;;  %v1220_v62 = vmul.f32 1.0012771, %v1188_v61  ;;  %v1159_v30 = vmul.f32 %v7033_v11, %v7033_v11 }
  0xde   :  { %v368_v4 = vpop.xlane.xlu1 %367  ;;  %10918 = vst [vmem:[#allocation11_spill] sm:$0xff] %v7011_v13  ;;  %v1566_v56 = vmul.f32 %v6971_v12, %v1283_v44  ;;  %v1125_v7 = vmul.f32 0.0012755102, %v853_v29 }
  0xdf   :  { %v7028_v38 = vadd.f32 %v1220_v62, %v1156_v45  ;;  %v1534_v58 = vmul.f32 %v6969_v16, %v1220_v62  ;;  %v7048_v19 = vmul.f32 0.0012755102, %v368_v4 }
  0xe0   :  { %v7023_v20 = vadd.f32 %v1566_v56, %v1533_v23  ;;  %v1189_v47 = vsub.f32 %v1125_v7, %v1157_v25 }
  0xe1   :  { %v1284_v57 = vsub.f32 %v7028_v38, %v1156_v45  ;;  %v1160_v53 = vmul.f32 %v7048_v19, %v7048_v19 }
  0xe2   :  { %10919 = vst [vmem:[#allocation12_spill] sm:$0xff] %v7023_v20  ;;  %v1221_v15 = vmul.f32 1.0012771, %v1189_v47 }
  0xe3   :  { %v862_v6 = vpop.xlane.xlu0 %861  ;;  %v377_v60 = vpop.xlane.xlu1 %376  ;;  %v1567_v39 = vmul.f32 %v6971_v12, %v1284_v57 }
  0xe4   :  { %v1126_v2 = vmul.f32 0.0012755102, %v862_v6  ;;  %v7037_v41 = vadd.f32 %v1221_v15, %v1157_v25  ;;  %v1535_v45 = vmul.f32 %v6969_v16, %v1221_v15  ;;  %v7062_v61 = vmul.f32 0.0012755102, %v377_v60 }
  0xe5   :  { %v7041_v31 = vadd.f32 %v1567_v39, %v1534_v58 }
  0xe6   :  { %v1190_v17 = vsub.f32 %v1126_v2, %v1158_v50  ;;  %v1285_v28 = vsub.f32 %v7037_v41, %v1157_v25  ;;  %v1161_v62 = vmul.f32 %v7062_v61, %v7062_v61 }
  0xe7   :  { %10920 = vst [vmem:[#allocation13_spill] sm:$0xff] %v7041_v31 }
  0xe8   :  { %v871_v26 = vpop.xlane.xlu0 %870  ;;  %v386_v37 = vpop.xlane.xlu1 %385  ;;  %v1222_v32 = vmul.f32 1.0012771, %v1190_v17  ;;  %v1568_v3 = vmul.f32 %v6971_v12, %v1285_v28 }
  0xe9   :  { %v1127_v14 = vmul.f32 0.0012755102, %v871_v26  ;;  %v7073_v60 = vmul.f32 0.0012755102, %v386_v37 }
  0xea   :  { %v7044_v18 = vadd.f32 %v1222_v32, %v1158_v50  ;;  %v7051_v29 = vadd.f32 %v1568_v3, %v1535_v45  ;;  %v1536_v42 = vmul.f32 %v6969_v16, %v1222_v32 }
  0xeb   :  { %v1191_v35 = vsub.f32 %v1127_v14, %v1159_v30  ;;  %v1162_v58 = vmul.f32 %v7073_v60, %v7073_v60 }
  0xec   :  { %v1286_v34 = vsub.f32 %v7044_v18, %v1158_v50  ;;  %10921 = vst [vmem:[#allocation14_spill] sm:$0xff] %v7051_v29 }
  0xed   :  { %v1223_v22 = vmul.f32 1.0012771, %v1191_v35  ;;  %v880_v51 = vpop.xlane.xlu0 %879 }
  0xee   :  { %v1128_v46 = vmul.f32 0.0012755102, %v880_v51  ;;  %v395_v8 = vpop.xlane.xlu1 %394  ;;  %v1569_v27 = vmul.f32 %v6971_v12, %v1286_v34 }
  0xef   :  { %v7057_v10 = vadd.f32 %v1223_v22, %v1159_v30  ;;  %v1537_v63 = vmul.f32 %v6969_v16, %v1223_v22  ;;  %v7083_v14 = vmul.f32 0.0012755102, %v395_v8 }
  0xf0   :  { %v1192_v36 = vsub.f32 %v1128_v46, %v1160_v53  ;;  %v7059_v4 = vadd.f32 %v1569_v27, %v1536_v42 }
  0xf1   :  { %v1287_v44 = vsub.f32 %v7057_v10, %v1159_v30  ;;  %v1163_v22 = vmul.f32 %v7083_v14, %v7083_v14 }
  0xf2   :  { %10922 = vst [vmem:[#allocation15_spill] sm:$0xff] %v7059_v4  ;;  %v1224_v59 = vmul.f32 1.0012771, %v1192_v36 }
  0xf3   :  { %v1570_v23 = vmul.f32 %v6971_v12, %v1287_v44  ;;  %v889_v56 = vpop.xlane.xlu0 %888  ;;  %v404_v54 = vpop.xlane.xlu1 %403 }
  0xf4   :  { %v7066_v1 = vadd.f32 %v1224_v59, %v1160_v53  ;;  %v1129_v25 = vmul.f32 0.0012755102, %v889_v56  ;;  %v1538_v50 = vmul.f32 %v6969_v16, %v1224_v59  ;;  %v7095_v27 = vmul.f32 0.0012755102, %v404_v54 }
  0xf5   :  { %v7070_v7 = vadd.f32 %v1570_v23, %v1537_v63 }
  0xf6   :  { %v1288_v6 = vsub.f32 %v7066_v1, %v1160_v53  ;;  %v1193_v47 = vsub.f32 %v1129_v25, %v1161_v62 }
  0xf7   :  { %10923 = vst [vmem:[#allocation16_spill] sm:$0xff] %v7070_v7 }
  0xf8   :  { %v1571_v2 = vmul.f32 %v6971_v12, %v1288_v6  ;;  %v1225_v57 = vmul.f32 1.0012771, %v1193_v47  ;;  %v898_v15 = vpop.xlane.xlu0 %897  ;;  %v413_v17 = vpop.xlane.xlu1 %412 }
  0xf9   :  { %v1130_v39 = vmul.f32 0.0012755102, %v898_v15  ;;  %v7106_v54 = vmul.f32 0.0012755102, %v413_v17 }
  0xfa   :  { %v7079_v26 = vadd.f32 %v1571_v2, %v1538_v50  ;;  %v7081_v32 = vadd.f32 %v1225_v57, %v1161_v62  ;;  %v1539_v3 = vmul.f32 %v6969_v16, %v1225_v57 }
  0xfb   :  { %v1194_v30 = vsub.f32 %v1130_v39, %v1162_v58 }
  0xfc   :  { %10924 = vst [vmem:[#allocation17_spill] sm:$0xff] %v7079_v26  ;;  %v1289_v37 = vsub.f32 %v7081_v32, %v1161_v62  ;;  %v1164_v62 = vmul.f32 %v7095_v27, %v7095_v27 }
  0xfd   :  { %v1226_v28 = vmul.f32 1.0012771, %v1194_v30  ;;  %v907_v35 = vpop.xlane.xlu0 %906  ;;  %v422_v45 = vpop.xlane.xlu1 %421  ;;  %v1165_v30 = vmul.f32 %v7106_v54, %v7106_v54 }
  0xfe   :  { %v1572_v34 = vmul.f32 %v6971_v12, %v1289_v37  ;;  %v1131_v51 = vmul.f32 0.0012755102, %v907_v35 }
  0xff   :  { %v7090_v53 = vadd.f32 %v1226_v28, %v1162_v58  ;;  %v1540_v44 = vmul.f32 %v6969_v16, %v1226_v28 }
 0x100   :  { %v7092_v46 = vadd.f32 %v1572_v34, %v1539_v3  ;;  %v1195_v42 = vsub.f32 %v1131_v51, %v1163_v22  ;;  %v7116_v34 = vmul.f32 0.0012755102, %v422_v45 }
 0x101   :  { %v1290_v8 = vsub.f32 %v7090_v53, %v1162_v58 }
 0x102   :  { %10925 = vst [vmem:[#allocation18_spill] sm:$0xff] %v7092_v46  ;;  %v1227_v36 = vmul.f32 1.0012771, %v1195_v42 }
 0x103   :  { %v1573_v59 = vmul.f32 %v6971_v12, %v1290_v8  ;;  %v916_v63 = vpop.xlane.xlu0 %915  ;;  %v431_v23 = vpop.xlane.xlu1 %430 }
 0x104   :  { %v7099_v56 = vadd.f32 %v1227_v36, %v1163_v22  ;;  %v1132_v25 = vmul.f32 0.0012755102, %v916_v63  ;;  %v1541_v2 = vmul.f32 %v6969_v16, %v1227_v36  ;;  %v7127_v45 = vmul.f32 0.0012755102, %v431_v23 }
 0x105   :  { %v7103_v6 = vadd.f32 %v1573_v59, %v1540_v44  ;;  %v1166_v44 = vmul.f32 %v7116_v34, %v7116_v34 }
 0x106   :  { %v1291_v47 = vsub.f32 %v7099_v56, %v1163_v22  ;;  %v1196_v50 = vsub.f32 %v1132_v25, %v1164_v62 }
 0x107   :  { %10926 = vst [vmem:[#allocation19_spill] sm:$0xff] %v7103_v6 }
 0x108   :  { %v1574_v57 = vmul.f32 %v6971_v12, %v1291_v47  ;;  %v1228_v15 = vmul.f32 1.0012771, %v1196_v50  ;;  %v925_v58 = vpop.xlane.xlu0 %924  ;;  %v440_v39 = vpop.xlane.xlu1 %439 }
 0x109   :  { %v1133_v37 = vmul.f32 0.0012755102, %v925_v58  ;;  %v1167_v58 = vmul.f32 %v7127_v45, %v7127_v45 }
 0x10a   :  { %v7112_v28 = vadd.f32 %v1574_v57, %v1541_v2  ;;  %v7114_v35 = vadd.f32 %v1228_v15, %v1164_v62  ;;  %v1542_v8 = vmul.f32 %v6969_v16, %v1228_v15 }
 0x10b   :  { %v1197_v3 = vsub.f32 %v1133_v37, %v1165_v30 }
 0x10c   :  { %10927 = vst [vmem:[#allocation20_spill] sm:$0xff] %v7112_v28  ;;  %v1292_v17 = vsub.f32 %v7114_v35, %v1164_v62 }
 0x10d   :  { %v1229_v22 = vmul.f32 1.0012771, %v1197_v3  ;;  %v934_v51 = vpop.xlane.xlu0 %933  ;;  %v449_v42 = vpop.xlane.xlu1 %448 }
 0x10e   :  { %v1575_v36 = vmul.f32 %v6971_v12, %v1292_v17  ;;  %v1134_v59 = vmul.f32 0.0012755102, %v934_v51 }
 0x10f   :  { %v7123_v63 = vadd.f32 %v1229_v22, %v1165_v30  ;;  %v1543_v57 = vmul.f32 %v6969_v16, %v1229_v22  ;;  %v4678_v22 = vld [vmem:[%s10808_s4 + $0x24] ss:$8 sps:$4 sm:$0xff]  }
 0x110   :  { %v7125_v25 = vadd.f32 %v1575_v36, %v1542_v8  ;;  %v1198_v47 = vsub.f32 %v1134_v59, %v1166_v44  ;;  %v4680_v36 = vld [vmem:[%s10808_s4 + $0x224] ss:$8 sps:$4 sm:$0xff]   ;;  %3057 = vmatprep.subr.bf16.mxu1 %v4678_v22 }
 0x111   :  { %v1293_v62 = vsub.f32 %v7123_v63, %v1165_v30  ;;  %v7142_v30 = vmul.f32 0.0012755102, %v440_v39  ;;  %v4683_v39 = vld [vmem:[%s10808_s4 + $0x220] ss:$8 sps:$4 sm:$0xff]   ;;  %3443 = vmatprep.subr.bf16.mxu0 %v4680_v36 }
 0x112   :  { %10928 = vst [vmem:[#allocation21_spill] sm:$0xff] %v7125_v25  ;;  %v1230_v50 = vmul.f32 1.0012771, %v1198_v47  ;;  %v943_v2 = vpop.xlane.xlu0 %942  ;;  %3444 = vmatpush1.bf16.msra.mxu0 %v4683_v39  ;;  %v4689_v39 = vld [vmem:[%s10808_s4 + $0x230] ss:$8 sps:$4 sm:$0xff]  }
 0x113   :  { %v1576_v15 = vmul.f32 %v6971_v12, %v1293_v62  ;;  %v1135_v37 = vmul.f32 0.0012755102, %v943_v2  ;;  %v7136_v3 = vpop.xlane.xlu1 %457  ;;  %v4682_v62 = vld [vmem:[%s10808_s4 + $0x20] ss:$8 sps:$4 sm:$0xff]  }
 0x114   :  { %v7138_v17 = vadd.f32 %v1230_v50, %v1166_v44  ;;  %3058 = vmatpush1.bf16.msra.mxu1 %v4682_v62  ;;  %v4688_v62 = vld [vmem:[%s10808_s4 + $0x30] ss:$8 sps:$4 sm:$0xff]  }
 0x115   :  { %v7140_v23 = vadd.f32 %v1576_v15, %v1543_v57  ;;  %v1199_v51 = vsub.f32 %v1135_v37, %v1167_v58  ;;  %v1168_v57 = vmul.f32 %v7142_v30, %v7142_v30 }
 0x116   :  { %v1294_v8 = vsub.f32 %v7138_v17, %v1166_v44  ;;  %v1544_v44 = vmul.f32 %v6969_v16, %v1230_v50  ;;  %v4684_v50 = vld [vmem:[%s10808_s4 + $0x34] ss:$8 sps:$4 sm:$0xff]  }
 0x117   :  { %10929 = vst [vmem:[#allocation22_spill] sm:$0xff] %v7140_v23  ;;  %v1231_v59 = vmul.f32 1.0012771, %v1199_v51  ;;  %v952_v47 = vpop.xlane.xlu0 %951  ;;  %v7163_v51 = vstv %s1391_s12  ;;  %3059 = vmatprep.subr.bf16.mxu1 %v4684_v50 }
 0x118   :  { %v1577_v2 = vmul.f32 %v6971_v12, %v1294_v8  ;;  %v1136_v15 = vmul.f32 0.0012755102, %v952_v47  ;;  %v7161_v37 = vpop.xlane.xlu1 %466  ;;  %v4686_v8 = vld [vmem:[%s10808_s4 + $0x234] ss:$8 sps:$4 sm:$0xff]   ;;  %v7176_v47 = vstv %s7130_s13  ;;  %v1400_v22 = vmul.f32 %v7163_v51, %v6945_v9  ;;  %3060 = vmatpush1.bf16.msra.mxu1 %v4688_v62 }
 0x119   :  { %v7165_v23 = vadd.f32 %v1231_v59, %v1167_v58  ;;  %3445 = vmatprep.subr.bf16.mxu0 %v4686_v8  ;;  %v1545_v6 = vmul.f32 %v6969_v16, %v1231_v59  ;;  %v4692_v59 = vld [vmem:[%s10808_s4 + $0x244] ss:$8 sps:$4 sm:$0xff]   ;;  %v1401_v8 = vmul.f32 %v7163_v51, %v6955_v33  ;;  %v1432_v4 = vmul.f32 %v7176_v47, %v6935_v52 }
 0x11a   :  { %v7167_v25 = vadd.f32 %v1577_v2, %v1544_v44  ;;  %v1200_v28 = vsub.f32 %v1136_v15, %v1168_v57  ;;  %v1433_v44 = vmul.f32 %v7176_v47, %v6945_v9  ;;  %v1398_v2 = vmul.f32 %v7163_v51, %v6940_v24  ;;  %3446 = vmatpush1.bf16.msra.mxu0 %v4689_v39  ;;  %v4695_v39 = vld [vmem:[%s10808_s4 + $0x240] ss:$8 sps:$4 sm:$0xff]  }
 0x11b   :  { %v1295_v36 = vsub.f32 %v7165_v23, %v1167_v58  ;;  %v7191_v15 = vmul.f32 0.0012755102, %v449_v42  ;;  %v1314_v58 = vadd.f32 %v6953_v40, %v6955_v33  ;;  %v1431_v9 = vmul.f32 %v7176_v47, %v6940_v24  ;;  %v4690_v40 = vld [vmem:[%s10808_s4 + $0x44] ss:$8 sps:$4 sm:$0xff]   ;;  %3447 = vmatprep.subr.bf16.mxu0 %v4692_v59 }
 0x11c   :  { %10930 = vst [vmem:[#allocation23_spill] sm:$0xff] %v7167_v25  ;;  %v1232_v25 = vmul.f32 1.0012771, %v1200_v28  ;;  %v1434_v24 = vmul.f32 %v7176_v47, %v6955_v33  ;;  %3061 = vmatprep.subr.bf16.mxu1 %v4690_v40  ;;  %v7236_v20 = vadd.f32 %v1433_v44, %v1400_v22 }
 0x11d   :  { %v1578_v46 = vmul.f32 %v6971_v12, %v1295_v36  ;;  %v961_v26 = vpop.xlane.xlu0 %960  ;;  %v7197_v7 = vpop.xlane.xlu1 %475  ;;  %v1169_v28 = vmul.f32 %v7191_v15, %v7191_v15  ;;  %v1399_v36 = vmul.f32 %v7163_v51, %v6935_v52  ;;  %v1315_v33 = vadd.f32 %v1314_v58, %v6967_v48  ;;  %v4696_v58 = vld [vmem:[%s10808_s4 + $0x54] ss:$8 sps:$4 sm:$0xff]  }
 0x11e   :  { %v7201_v42 = vadd.f32 %v1232_v25, %v1168_v57  ;;  %v1137_v50 = vmul.f32 0.0012755102, %v961_v26  ;;  %v4694_v26 = vld [vmem:[%s10808_s4 + $0x40] ss:$8 sps:$4 sm:$0xff]   ;;  %v1546_v52 = vmul.f32 %v6969_v16, %v1232_v25  ;;  %3448 = vmatpush1.bf16.msra.mxu0 %v4695_v39  ;;  %v4700_v25 = vld [vmem:[%s10808_s4 + $0x50] ss:$8 sps:$4 sm:$0xff]   ;;  %v7258_v44 = vadd.f32 %v1434_v24, %v1401_v8 }
 0x11f   :  { %v7217_v62 = vadd.f32 %v1578_v46, %v1545_v6  ;;  %v1402_v46 = vmul.f32 %v7163_v51, %v6967_v48  ;;  %v1435_v6 = vmul.f32 %v7176_v47, %v6967_v48  ;;  %3062 = vmatpush1.bf16.msra.mxu1 %v4694_v26  ;;  %v4698_v48 = vld [vmem:[%s10808_s4 + $0x254] ss:$8 sps:$4 sm:$0xff]   ;;  %v1316_v22 = vadd.f32 %v1315_v33, %v7003_v21 }
 0x120   :  { %v1296_v29 = vsub.f32 %v7201_v42, %v1168_v57  ;;  %v1201_v31 = vsub.f32 %v1137_v50, %v1169_v28  ;;  %3063 = vmatprep.subr.bf16.mxu1 %v4696_v58  ;;  %3449 = vmatprep.subr.bf16.mxu0 %v4698_v48  ;;  %v1403_v8 = vmul.f32 %v7163_v51, %v7003_v21  ;;  %v4706_v48 = vld [vmem:[%s10808_s4 + $0x60] ss:$8 sps:$4 sm:$0xff]  }
 0x121   :  { %10931 = vst [vmem:[#allocation24_spill] sm:$0xff] %v7217_v62  ;;  %v7234_v62 = vmul.f32 0.0012755102, %v7136_v3  ;;  %v7248_v3 = vadd.f32 %v1431_v9, %v1398_v2  ;;  %v4701_v2 = vld [vmem:[%s10808_s4 + $0x250] ss:$8 sps:$4 sm:$0xff]   ;;  %v7267_v9 = vadd.f32 %v1432_v4, %v1399_v36  ;;  %v7269_v33 = vadd.f32 %v1435_v6, %v1402_v46 }
 0x122   :  { %v1579_v57 = vmul.f32 %v6971_v12, %v1296_v29  ;;  %v1233_v50 = vmul.f32 1.0012771, %v1201_v31  ;;  %v970_v40 = vpop.xlane.xlu0 %969  ;;  %v7240_v59 = vpop.xlane.xlu1 %484  ;;  %v1436_v24 = vmul.f32 %v7176_v47, %v7003_v21  ;;  %3450 = vmatpush1.bf16.msra.mxu0 %v4701_v2  ;;  %v4702_v4 = vld [vmem:[%s10808_s4 + $0x64] ss:$8 sps:$4 sm:$0xff]   ;;  %v1404_v46 = vmul.f32 %v7163_v51, %v7026_v5 }
 0x123   :  { %v7253_v29 = vmul.f32 %v7234_v62, %v7234_v62  ;;  %v1138_v31 = vmul.f32 0.0012755102, %v970_v40  ;;  %v1317_v40 = vadd.f32 %v1316_v22, %v7026_v5  ;;  %3064 = vmatpush1.bf16.msra.mxu1 %v4700_v25  ;;  %v4704_v36 = vld [vmem:[%s10808_s4 + $0x264] ss:$8 sps:$4 sm:$0xff]   ;;  %v1437_v21 = vmul.f32 %v7176_v47, %v7026_v5  ;;  %v4707_v22 = vld [vmem:[%s10808_s4 + $0x260] ss:$8 sps:$4 sm:$0xff]  }
 0x124   :  { %v7260_v26 = vadd.f32 %v1579_v57, %v1546_v52  ;;  %v7262_v39 = vadd.f32 %v1233_v50, %v1169_v28  ;;  %v7278_v52 = vmul.f32 0.0012755102, %v7161_v37  ;;  %3065 = vmatprep.subr.bf16.mxu1 %v4702_v4  ;;  %3451 = vmatprep.subr.bf16.mxu0 %v4704_v36  ;;  %v4708_v36 = vld [vmem:[%s10808_s4 + $0x74] ss:$8 sps:$4 sm:$0xff]  }
 0x125   :  { %v1202_v13 = vsub.f32 %v1138_v31, %v7253_v29  ;;  %v1318_v37 = vadd.f32 %v1317_v40, %v7033_v11  ;;  %v1547_v31 = vmul.f32 %v6969_v16, %v1233_v50  ;;  %v1438_v40 = vmul.f32 %v7176_v47, %v7033_v11 }
 0x126   :  { %10932 = vst [vmem:[#allocation25_spill] sm:$0xff] %v7260_v26  ;;  %v1297_v57 = vsub.f32 %v7262_v39, %v1169_v28  ;;  %v1171_v5 = vmul.f32 %v7278_v52, %v7278_v52  ;;  %v7312_v50 = vadd.f32 %v1436_v24, %v1403_v8  ;;  %3452 = vmatpush1.bf16.msra.mxu0 %v4707_v22  ;;  %v4712_v24 = vld [vmem:[%s10808_s4 + $0x70] ss:$8 sps:$4 sm:$0xff]  }
 0x127   :  { %v1234_v6 = vmul.f32 1.0012771, %v1202_v13  ;;  %v979_v58 = vpop.xlane.xlu0 %978  ;;  %v7292_v28 = vpop.xlane.xlu1 %493  ;;  %v1405_v13 = vmul.f32 %v7163_v51, %v7033_v11  ;;  %v1319_v26 = vadd.f32 %v1318_v37, %v7048_v19  ;;  %3066 = vmatpush1.bf16.msra.mxu1 %v4706_v48  ;;  %v4710_v11 = vld [vmem:[%s10808_s4 + $0x274] ss:$8 sps:$4 sm:$0xff]   ;;  %v1406_v37 = vmul.f32 %v7163_v51, %v7048_v19  ;;  %v4713_v48 = vld [vmem:[%s10808_s4 + $0x270] ss:$8 sps:$4 sm:$0xff]  }
 0x128   :  { %v1580_v25 = vmul.f32 %v6971_v12, %v1297_v57  ;;  %v1139_v2 = vmul.f32 0.0012755102, %v979_v58  ;;  %10933 = vst [vmem:[#allocation26_spill] sm:$0xff] %v7312_v50  ;;  %v1353_v57 = vadd.f32 %v6993_v55, %v6983_v49  ;;  %v1439_v8 = vmul.f32 %v7176_v47, %v7048_v19  ;;  %3067 = vmatprep.subr.bf16.mxu1 %v4708_v36  ;;  %v4719_v36 = vld [vmem:[%s10808_s4 + $0x280] ss:$8 sps:$4 sm:$0xff]  }
 0x129   :  { %v7310_v43 = vadd.f32 %v1234_v6, %v7253_v29  ;;  %v1320_v49 = vadd.f32 %v1319_v26, %v7062_v61  ;;  %v7337_v22 = vadd.f32 %v1437_v21, %v1404_v46  ;;  %3453 = vmatprep.subr.bf16.mxu0 %v4710_v11  ;;  %v7343_v26 = vadd.f32 %v1438_v40, %v1405_v13 }
 0x12a   :  { %v7316_v58 = vadd.f32 %v1580_v25, %v1547_v31  ;;  %v1203_v4 = vsub.f32 %v1139_v2, %v1171_v5  ;;  %v1354_v31 = vadd.f32 %v1353_v57, %v7028_v38  ;;  %v7341_v25 = vmul.f32 0.0012755102, %v7197_v7  ;;  %3454 = vmatpush1.bf16.msra.mxu0 %v4713_v48 }
 0x12b   :  { %v1298_v55 = vsub.f32 %v7310_v43, %v7253_v29  ;;  %v1321_v29 = vadd.f32 %v1320_v49, %v7073_v60  ;;  %v1548_v2 = vmul.f32 %v6969_v16, %v1234_v6  ;;  %3068 = vmatpush1.bf16.msra.mxu1 %v4712_v24  ;;  %v4714_v6 = vld [vmem:[%s10808_s4 + $0x84] ss:$8 sps:$4 sm:$0xff]   ;;  %v7360_v13 = vadd.f32 %v1439_v8, %v1406_v37 }
 0x12c   :  { %10934 = vst [vmem:[#allocation27_spill] sm:$0xff] %v7316_v58  ;;  %v1235_v19 = vmul.f32 1.0012771, %v1203_v4  ;;  %v1355_v38 = vadd.f32 %v1354_v31, %v7037_v41  ;;  %v7355_v7 = vmul.f32 %v7341_v25, %v7341_v25  ;;  %v1407_v40 = vmul.f32 %v7163_v51, %v7062_v61  ;;  %v4716_v4 = vld [vmem:[%s10808_s4 + $0x284] ss:$8 sps:$4 sm:$0xff]   ;;  %3069 = vmatprep.subr.bf16.mxu1 %v4714_v6 }
 0x12d   :  { %v1581_v58 = vmul.f32 %v6971_v12, %v1298_v55  ;;  %v988_v0 = vpop.xlane.xlu0 %987  ;;  %v7348_v50 = vpop.xlane.xlu1 %502  ;;  %10935 = vst [vmem:[#allocation28_spill] sm:$0xff] %v7360_v13  ;;  %v1322_v57 = vadd.f32 %v1321_v29, %v7083_v14  ;;  %v1440_v37 = vmul.f32 %v7176_v47, %v7062_v61  ;;  %v1408_v49 = vmul.f32 %v7163_v51, %v7073_v60  ;;  %v4724_v6 = vld [vmem:[%s10808_s4 + $0x90] ss:$8 sps:$4 sm:$0xff]  }
 0x12e   :  { %v7351_v46 = vadd.f32 %v1235_v19, %v1171_v5  ;;  %v1140_v21 = vmul.f32 0.0012755102, %v988_v0  ;;  %v4718_v0 = vld [vmem:[%s10808_s4 + $0x80] ss:$8 sps:$4 sm:$0xff]   ;;  %v1356_v11 = vadd.f32 %v1355_v38, %v7044_v18  ;;  %v1441_v55 = vmul.f32 %v7176_v47, %v7073_v60  ;;  %3455 = vmatprep.subr.bf16.mxu0 %v4716_v4  ;;  %v4720_v60 = vld [vmem:[%s10808_s4 + $0x94] ss:$8 sps:$4 sm:$0xff]  }
 0x12f   :  { %v7365_v41 = vadd.f32 %v1581_v58, %v1548_v2  ;;  %v1323_v24 = vadd.f32 %v1322_v57, %v7095_v27  ;;  %v7387_v48 = vmul.f32 0.0012755102, %v7240_v59  ;;  %3070 = vmatpush1.bf16.msra.mxu1 %v4718_v0  ;;  %v1549_v61 = vmul.f32 %v6969_v16, %v1235_v19  ;;  %3456 = vmatpush1.bf16.msra.mxu0 %v4719_v36  ;;  %v4722_v59 = vld [vmem:[%s10808_s4 + $0x294] ss:$8 sps:$4 sm:$0xff]   ;;  %v4725_v36 = vld [vmem:[%s10808_s4 + $0x290] ss:$8 sps:$4 sm:$0xff]  }
 0x130   :  { %v1299_v58 = vsub.f32 %v7351_v46, %v1171_v5  ;;  %v1204_v8 = vsub.f32 %v1140_v21, %v7355_v7  ;;  %v1357_v18 = vadd.f32 %v1356_v11, %v7057_v10  ;;  %v1409_v10 = vmul.f32 %v7163_v51, %v7083_v14  ;;  %3071 = vmatprep.subr.bf16.mxu1 %v4720_v60  ;;  %v4726_v60 = vld [vmem:[%s10808_s4 + $0xa4] ss:$8 sps:$4 sm:$0xff]  }
 0x131   :  { %10936 = vst [vmem:[#allocation29_spill] sm:$0xff] %v7365_v41  ;;  %v1324_v19 = vadd.f32 %v1323_v24, %v7106_v54  ;;  %v1173_v38 = vmul.f32 %v7387_v48, %v7387_v48  ;;  %v1442_v57 = vmul.f32 %v7176_v47, %v7083_v14  ;;  %3457 = vmatprep.subr.bf16.mxu0 %v4722_v59  ;;  %v4730_v59 = vld [vmem:[%s10808_s4 + $0xa0] ss:$8 sps:$4 sm:$0xff]  }
 0x132   :  { %v1582_v5 = vmul.f32 %v6971_v12, %v1299_v58  ;;  %v1236_v31 = vmul.f32 1.0012771, %v1204_v8  ;;  %v997_v29 = vpop.xlane.xlu0 %996  ;;  %v7392_v2 = vpop.xlane.xlu1 %511  ;;  %v1410_v11 = vmul.f32 %v7163_v51, %v7095_v27  ;;  %v1443_v58 = vmul.f32 %v7176_v47, %v7095_v27  ;;  %v4728_v27 = vld [vmem:[%s10808_s4 + $0x2a4] ss:$8 sps:$4 sm:$0xff]  }
 0x133   :  { %v1141_v21 = vmul.f32 0.0012755102, %v997_v29  ;;  %v1325_v8 = vadd.f32 %v1324_v19, %v7116_v34  ;;  %3072 = vmatpush1.bf16.msra.mxu1 %v4724_v6  ;;  %v7423_v24 = vadd.f32 %v1440_v37, %v1407_v40  ;;  %3458 = vmatpush1.bf16.msra.mxu0 %v4725_v36  ;;  %v1411_v40 = vmul.f32 %v7163_v51, %v7106_v54  ;;  %v4731_v19 = vld [vmem:[%s10808_s4 + $0x2a0] ss:$8 sps:$4 sm:$0xff]  }
 0x134   :  { %v7410_v4 = vadd.f32 %v1582_v5, %v1549_v61  ;;  %v7413_v0 = vadd.f32 %v1236_v31, %v7355_v7  ;;  %v1358_v61 = vadd.f32 %v1357_v18, %v7066_v1  ;;  %v7427_v5 = vmul.f32 0.0012755102, %v7292_v28  ;;  %3073 = vmatprep.subr.bf16.mxu1 %v4726_v60  ;;  %3459 = vmatprep.subr.bf16.mxu0 %v4728_v27 }
 0x135   :  { %v1205_v14 = vsub.f32 %v1141_v21, %v1173_v38  ;;  %10938 = vst [vmem:[#allocation31_spill] sm:$0xff] %v7423_v24  ;;  %v1444_v1 = vmul.f32 %v7176_v47, %v7106_v54  ;;  %v1326_v28 = vadd.f32 %v1325_v8, %v7127_v45  ;;  %v1550_v21 = vmul.f32 %v6969_v16, %v1236_v31 }
 0x136   :  { %10937 = vst [vmem:[#allocation30_spill] sm:$0xff] %v7410_v4  ;;  %v1300_v29 = vsub.f32 %v7413_v0, %v7355_v7  ;;  %v1174_v54 = vmul.f32 %v7427_v5, %v7427_v5  ;;  %v7454_v8 = vadd.f32 %v1441_v55, %v1408_v49  ;;  %v7458_v4 = vadd.f32 %v1443_v58, %v1410_v11  ;;  %v4732_v49 = vld [vmem:[%s10808_s4 + $0xb4] ss:$8 sps:$4 sm:$0xff]   ;;  %v4736_v58 = vld [vmem:[%s10808_s4 + $0xb0] ss:$8 sps:$4 sm:$0xff]  }
 0x137   :  { %v1237_v37 = vmul.f32 1.0012771, %v1205_v14  ;;  %v1006_v18 = vpop.xlane.xlu0 %1005  ;;  %v7442_v7 = vpop.xlane.xlu1 %520  ;;  %v7456_v14 = vadd.f32 %v1442_v57, %v1409_v10  ;;  %3074 = vmatpush1.bf16.msra.mxu1 %v4730_v59  ;;  %v1359_v24 = vadd.f32 %v1358_v61, %v7081_v32  ;;  %v1327_v31 = vadd.f32 %v1326_v28, %v7142_v30  ;;  %3460 = vmatpush1.bf16.msra.mxu0 %v4731_v19  ;;  %v4734_v55 = vld [vmem:[%s10808_s4 + $0x2b4] ss:$8 sps:$4 sm:$0xff]   ;;  %v4737_v61 = vld [vmem:[%s10808_s4 + $0x2b0] ss:$8 sps:$4 sm:$0xff]  }
 0x138   :  { %v1583_v6 = vmul.f32 %v6971_v12, %v1300_v29  ;;  %v1142_v36 = vmul.f32 0.0012755102, %v1006_v18  ;;  %v7472_v10 = vadd.f32 %v1444_v1, %v1411_v40  ;;  %v1412_v57 = vmul.f32 %v7163_v51, %v7116_v34  ;;  %3075 = vmatprep.subr.bf16.mxu1 %v4732_v49  ;;  %3461 = vmatprep.subr.bf16.mxu0 %v4734_v55  ;;  %v4743_v49 = vld [vmem:[%s10808_s4 + $0x2c0] ss:$8 sps:$4 sm:$0xff]  }
 0x139   :  { %v7460_v41 = vadd.f32 %v1237_v37, %v1173_v38  ;;  %v7477_v32 = vmul.f32 0.0012755102, %v7348_v50  ;;  %v1360_v60 = vadd.f32 %v1359_v24, %v7090_v53  ;;  %v1445_v27 = vmul.f32 %v7176_v47, %v7116_v34 }
 0x13a   :  { %v7464_v29 = vadd.f32 %v1583_v6, %v1550_v21  ;;  %v1206_v13 = vsub.f32 %v1142_v36, %v1174_v54  ;;  %v1328_v40 = vadd.f32 %v1327_v31, %v7191_v15  ;;  %v1413_v34 = vmul.f32 %v7163_v51, %v7127_v45  ;;  %v4740_v21 = vld [vmem:[%s10808_s4 + $0x2c4] ss:$8 sps:$4 sm:$0xff]   ;;  %v4742_v31 = vld [vmem:[%s10808_s4 + $0xc0] ss:$8 sps:$4 sm:$0xff]  }
 0x13b   :  { %v1301_v11 = vsub.f32 %v7460_v41, %v1173_v38  ;;  %v1551_v38 = vmul.f32 %v6969_v16, %v1237_v37  ;;  %v7494_v18 = vmul.f32 %v7477_v32, %v7477_v32  ;;  %3076 = vmatpush1.bf16.msra.mxu1 %v4736_v58  ;;  %v1361_v53 = vadd.f32 %v1360_v60, %v7099_v56  ;;  %v4738_v37 = vld [vmem:[%s10808_s4 + $0xc4] ss:$8 sps:$4 sm:$0xff]  }
 0x13c   :  { %10939 = vst [vmem:[#allocation32_spill] sm:$0xff] %v7464_v29  ;;  %v1238_v1 = vmul.f32 1.0012771, %v1206_v13  ;;  %v1015_v50 = vpop.xlane.xlu0 %1014  ;;  %v1446_v13 = vmul.f32 %v7176_v47, %v7127_v45  ;;  %3462 = vmatpush1.bf16.msra.mxu0 %v4737_v61  ;;  %v1414_v56 = vmul.f32 %v7163_v51, %v7142_v30  ;;  %v1329_v6 = vadd.f32 %v1328_v40, %v7234_v62 }
 0x13d   :  { %v1584_v28 = vmul.f32 %v6971_v12, %v1301_v11  ;;  %v1143_v59 = vmul.f32 0.0012755102, %v1015_v50  ;;  %v7496_v19 = vpop.xlane.xlu1 %529  ;;  %v1362_v55 = vadd.f32 %v1361_v53, %v7114_v35  ;;  %v1447_v11 = vmul.f32 %v7176_v47, %v7142_v30  ;;  %3077 = vmatprep.subr.bf16.mxu1 %v4738_v37  ;;  %3463 = vmatprep.subr.bf16.mxu0 %v4740_v21  ;;  %v4746_v53 = vld [vmem:[%s10808_s4 + $0x2d4] ss:$8 sps:$4 sm:$0xff]  }
 0x13e   :  { %v7503_v24 = vadd.f32 %v1238_v1, %v1174_v54  ;;  %v7527_v58 = vmul.f32 0.0012755102, %v7392_v2  ;;  %v1415_v60 = vmul.f32 %v7163_v51, %v7191_v15  ;;  %v1448_v40 = vmul.f32 %v7176_v47, %v7191_v15  ;;  %v4744_v15 = vld [vmem:[%s10808_s4 + $0xd4] ss:$8 sps:$4 sm:$0xff]  }
 0x13f   :  { %v7514_v36 = vadd.f32 %v1584_v28, %v1551_v38  ;;  %v1207_v45 = vsub.f32 %v1143_v59, %v7494_v18  ;;  %v1330_v50 = vadd.f32 %v1329_v6, %v7278_v52  ;;  %3078 = vmatpush1.bf16.msra.mxu1 %v4742_v31  ;;  %v1552_v35 = vmul.f32 %v6969_v16, %v1238_v1  ;;  %v4749_v31 = vld [vmem:[%s10808_s4 + $0x2d0] ss:$8 sps:$4 sm:$0xff]  }
 0x140   :  { %v1302_v61 = vsub.f32 %v7503_v24, %v1174_v54  ;;  %v7539_v2 = vmul.f32 %v7527_v58, %v7527_v58  ;;  %3464 = vmatpush1.bf16.msra.mxu0 %v4743_v49  ;;  %v7549_v37 = vadd.f32 %v1445_v27, %v1412_v57  ;;  %v7551_v1 = vadd.f32 %v1446_v13, %v1413_v34 }
 0x141   :  { %10940 = vst [vmem:[#allocation33_spill] sm:$0xff] %v7514_v36  ;;  %v1239_v38 = vmul.f32 1.0012771, %v1207_v45  ;;  %v1024_v28 = vpop.xlane.xlu0 %1023  ;;  %v1331_v21 = vadd.f32 %v1330_v50, %v7341_v25  ;;  %v4748_v45 = vld [vmem:[%s10808_s4 + $0xd0] ss:$8 sps:$4 sm:$0xff]   ;;  %v1363_v49 = vadd.f32 %v1362_v55, %v7123_v63  ;;  %3079 = vmatprep.subr.bf16.mxu1 %v4744_v15  ;;  %3465 = vmatprep.subr.bf16.mxu0 %v4746_v53 }
 0x142   :  { %v1585_v30 = vmul.f32 %v6971_v12, %v1302_v61  ;;  %v1144_v54 = vmul.f32 0.0012755102, %v1024_v28  ;;  %v7541_v59 = vpop.xlane.xlu1 %538  ;;  %v7567_v57 = vmul.f32 0.0012755102, %v7442_v7  ;;  %v7572_v34 = vadd.f32 %v1447_v11, %v1414_v56  ;;  %v4750_v7 = vld [vmem:[%s10808_s4 + $0xe4] ss:$8 sps:$4 sm:$0xff]  }
 0x143   :  { %v7555_v6 = vadd.f32 %v1239_v38, %v7494_v18  ;;  %v7574_v13 = vadd.f32 %v1448_v40, %v1415_v60  ;;  %v1332_v50 = vadd.f32 %v1331_v21, %v7387_v48  ;;  %3080 = vmatpush1.bf16.msra.mxu1 %v4748_v45  ;;  %v4752_v55 = vld [vmem:[%s10808_s4 + $0x2e4] ss:$8 sps:$4 sm:$0xff]   ;;  %v4754_v56 = vld [vmem:[%s10808_s4 + $0xe0] ss:$8 sps:$4 sm:$0xff]   ;;  %v1364_v11 = vadd.f32 %v1363_v49, %v7138_v17 }
 0x144   :  { %v7564_v61 = vadd.f32 %v1585_v30, %v1552_v35  ;;  %v1208_v27 = vsub.f32 %v1144_v54, %v7539_v2  ;;  %v1416_v60 = vmul.f32 %v7163_v51, %v7234_v62  ;;  %3466 = vmatpush1.bf16.msra.mxu0 %v4749_v31  ;;  %v4755_v28 = vld [vmem:[%s10808_s4 + $0x2e0] ss:$8 sps:$4 sm:$0xff]   ;;  %v4756_v35 = vld [vmem:[%s10808_s4 + $0xf4] ss:$8 sps:$4 sm:$0xff]   ;;  %v1553_v17 = vmul.f32 %v6969_v16, %v1239_v38 }
 0x145   :  { %10942 = vst [vmem:[#allocation35_spill] sm:$0xff] %v7574_v13  ;;  %v1303_v63 = vsub.f32 %v7555_v6, %v7494_v18  ;;  %v1449_v18 = vmul.f32 %v7176_v47, %v7234_v62  ;;  %v1333_v30 = vadd.f32 %v1332_v50, %v7427_v5  ;;  %3081 = vmatprep.subr.bf16.mxu1 %v4750_v7  ;;  %v4758_v62 = vld [vmem:[%s10808_s4 + $0x2f4] ss:$8 sps:$4 sm:$0xff]  }
 0x146   :  { %10941 = vst [vmem:[#allocation34_spill] sm:$0xff] %v7564_v61  ;;  %v1240_v40 = vmul.f32 1.0012771, %v1208_v27  ;;  %3467 = vmatprep.subr.bf16.mxu0 %v4752_v55  ;;  %v1365_v21 = vadd.f32 %v1364_v11, %v7165_v23  ;;  %v1177_v31 = vmul.f32 %v7567_v57, %v7567_v57  ;;  %v1417_v38 = vmul.f32 %v7163_v51, %v7278_v52  ;;  %v4760_v23 = vld [vmem:[%s10808_s4 + $0xf0] ss:$8 sps:$4 sm:$0xff]  }
 0x147   :  { %v1586_v54 = vmul.f32 %v6971_v12, %v1303_v63  ;;  %v1033_v15 = vpop.xlane.xlu0 %1032  ;;  %v548_v53 = vpop.xlane.xlu1 %547  ;;  %v1450_v27 = vmul.f32 %v7176_v47, %v7278_v52  ;;  %v1334_v50 = vadd.f32 %v1333_v30, %v7477_v32  ;;  %3082 = vmatpush1.bf16.msra.mxu1 %v4754_v56  ;;  %v1418_v7 = vmul.f32 %v7163_v51, %v7341_v25  ;;  %v4761_v52 = vld [vmem:[%s10808_s4 + $0x2f0] ss:$8 sps:$4 sm:$0xff]   ;;  %v4764_v56 = vld [vmem:[%s10808_s4 + $0x104] ss:$8 sps:$4 sm:$0xff]  }
 0x148   :  { %v7607_v45 = vadd.f32 %v1240_v40, %v7539_v2  ;;  %v1145_v49 = vmul.f32 0.0012755102, %v1033_v15  ;;  %3468 = vmatpush1.bf16.msra.mxu0 %v4755_v28  ;;  %3083 = vmatprep.subr.bf16.mxu1 %v4756_v35  ;;  %v1451_v30 = vmul.f32 %v7176_v47, %v7341_v25  ;;  %v4767_v28 = vld [vmem:[%s10808_s4 + $0x304] ss:$8 sps:$4 sm:$0xff]   ;;  %v1452_v35 = vmul.f32 %v7176_v47, %v7387_v48 }
 0x149   :  { %v7616_v63 = vadd.f32 %v1586_v54, %v1553_v17  ;;  %v1419_v17 = vmul.f32 %v7163_v51, %v7387_v48  ;;  %v1335_v54 = vadd.f32 %v1334_v50, %v7527_v58  ;;  %3469 = vmatprep.subr.bf16.mxu0 %v4758_v62  ;;  %v1554_v15 = vmul.f32 %v6969_v16, %v1240_v40 }
 0x14a   :  { %v1304_v55 = vsub.f32 %v7607_v45, %v7539_v2  ;;  %v1209_v11 = vsub.f32 %v1145_v49, %v1177_v31  ;;  %v7637_v2 = vmul.f32 0.0012755102, %v7496_v19  ;;  %v7648_v19 = vmul.f32 0.0012755102, %v7541_v59 }
 0x14b   :  { %10943 = vst [vmem:[#allocation36_spill] sm:$0xff] %v7616_v63  ;;  %v1336_v50 = vadd.f32 %v1335_v54, %v7567_v57  ;;  %3084 = vmatpush1.bf16.msra.mxu1 %v4760_v23  ;;  %v1366_v29 = vadd.f32 %v1365_v21, %v7201_v42  ;;  %v7660_v54 = vadd.f32 %v1450_v27, %v1417_v38  ;;  %v7667_v21 = vmul.f32 0.0012755102, %v548_v53 }
 0x14c   :  { %v1587_v25 = vmul.f32 %v6971_v12, %v1304_v55  ;;  %v1241_v49 = vmul.f32 1.0012771, %v1209_v11  ;;  %v1042_v63 = vpop.xlane.xlu0 %1041  ;;  %v557_v61 = vpop.xlane.xlu1 %556  ;;  %v1178_v62 = vmul.f32 %v7637_v2, %v7637_v2  ;;  %3470 = vmatpush1.bf16.msra.mxu0 %v4761_v52  ;;  %3246 = vmatprep.subr.bf16.mxu1 %v4764_v56  ;;  %v7658_v11 = vadd.f32 %v1449_v18, %v1416_v60 }
 0x14d   :  { %v1146_v36 = vmul.f32 0.0012755102, %v1042_v63  ;;  %v1337_v59 = vadd.f32 %v1336_v50, %v7637_v2  ;;  %3632 = vmatprep.subr.bf16.mxu0 %v4767_v28  ;;  %v1367_v63 = vadd.f32 %v1366_v29, %v7262_v39  ;;  %v7664_v23 = vadd.f32 %v1451_v30, %v1418_v7 }
 0x14e   :  { %v7653_v48 = vadd.f32 %v1587_v25, %v1554_v15  ;;  %v7655_v40 = vadd.f32 %v1241_v49, %v1177_v31  ;;  %v7669_v15 = vadd.f32 %v1452_v35, %v1419_v17  ;;  %v1179_v18 = vmul.f32 %v7648_v19, %v7648_v19 }
 0x14f   :  { %v1210_v13 = vsub.f32 %v1146_v36, %v1178_v62  ;;  %v1338_v52 = vadd.f32 %v1337_v59, %v7648_v19  ;;  %v1555_v36 = vmul.f32 %v6969_v16, %v1241_v49  ;;  %v7676_v29 = vmul.f32 0.0012755102, %v557_v61 }
 0x150   :  { %10944 = vst [vmem:[#allocation37_spill] sm:$0xff] %v7653_v48  ;;  %v1305_v42 = vsub.f32 %v7655_v40, %v1177_v31  ;;  %v1368_v53 = vadd.f32 %v1367_v63, %v7310_v43  ;;  %v1420_v31 = vmul.f32 %v7163_v51, %v7427_v5  ;;  %v1421_v43 = vmul.f32 %v7163_v51, %v7477_v32 }
 0x151   :  { %v1242_v60 = vmul.f32 1.0012771, %v1210_v13  ;;  %v1051_v38 = vpop.xlane.xlu0 %1050  ;;  %v566_v27 = vpop.xlane.xlu1 %565  ;;  %v1453_v13 = vmul.f32 %v7176_v47, %v7427_v5  ;;  %v1339_v17 = vadd.f32 %v1338_v52, %v7667_v21  ;;  %v1454_v25 = vmul.f32 %v7176_v47, %v7477_v32 }
 0x152   :  { %v1588_v39 = vmul.f32 %v6971_v12, %v1305_v42  ;;  %v1147_v7 = vmul.f32 0.0012755102, %v1051_v38  ;;  %v7688_v35 = vmul.f32 0.0012755102, %v566_v27  ;;  %v1369_v61 = vadd.f32 %v1368_v53, %v7351_v46 }
 0x153   :  { %v7683_v56 = vadd.f32 %v1242_v60, %v1178_v62  ;;  %v1422_v5 = vmul.f32 %v7163_v51, %v7527_v58  ;;  %v1455_v50 = vmul.f32 %v7176_v47, %v7527_v58  ;;  %v1340_v59 = vadd.f32 %v1339_v17, %v7676_v29 }
 0x154   :  { %v7685_v30 = vadd.f32 %v1588_v39, %v1555_v36  ;;  %v1211_v28 = vsub.f32 %v1147_v7, %v1179_v18  ;;  %v1370_v42 = vadd.f32 %v1369_v61, %v7413_v0  ;;  %v1556_v46 = vmul.f32 %v6969_v16, %v1242_v60 }
 0x155   :  { %v1306_v49 = vsub.f32 %v7683_v56, %v1178_v62  ;;  %v1180_v32 = vmul.f32 %v7667_v21, %v7667_v21  ;;  %v1341_v36 = vadd.f32 %v1340_v59, %v7688_v35  ;;  %v7709_v7 = vadd.f32 %v1453_v13, %v1420_v31 }
 0x156   :  { %10945 = vst [vmem:[#allocation38_spill] sm:$0xff] %v7685_v30  ;;  %v1243_v63 = vmul.f32 1.0012771, %v1211_v28  ;;  %v7711_v53 = vadd.f32 %v1454_v25, %v1421_v43  ;;  %v1371_v0 = vadd.f32 %v1370_v42, %v7460_v41  ;;  %v7716_v17 = vadd.f32 %v1455_v50, %v1422_v5 }
 0x157   :  { %v1589_v52 = vmul.f32 %v6971_v12, %v1306_v49  ;;  %v1060_v38 = vpop.xlane.xlu0 %1059  ;;  %v575_v62 = vpop.xlane.xlu1 %574  ;;  %v1423_v59 = vmul.f32 %v7163_v51, %v7567_v57  ;;  %v1456_v31 = vmul.f32 %v7176_v47, %v7567_v57  ;;  %v1424_v13 = vmul.f32 %v7163_v51, %v7637_v2 }
 0x158   :  { %v7706_v27 = vadd.f32 %v1243_v63, %v1179_v18  ;;  %v1148_v39 = vmul.f32 0.0012755102, %v1060_v38  ;;  %v1119_v58 = vmul.f32 0.0012755102, %v575_v62  ;;  %10947 = vst [vmem:[#allocation40_spill] sm:$0xff] %v7716_v17  ;;  %v1372_v55 = vadd.f32 %v1371_v0, %v7503_v24 }
 0x159   :  { %v7714_v60 = vadd.f32 %v1589_v52, %v1556_v46  ;;  %v1557_v41 = vmul.f32 %v6969_v16, %v1243_v63  ;;  %v1457_v24 = vmul.f32 %v7176_v47, %v7637_v2  ;;  %v1181_v42 = vmul.f32 %v7676_v29, %v7676_v29 }
 0x15a   :  { %v1307_v28 = vsub.f32 %v7706_v27, %v1179_v18  ;;  %v1212_v61 = vsub.f32 %v1148_v39, %v1180_v32  ;;  %v1342_v49 = vadd.f32 %v1341_v36, %v1119_v58  ;;  %v1373_v50 = vadd.f32 %v1372_v55, %v7555_v6 }
 0x15b   :  { %10946 = vst [vmem:[#allocation39_spill] sm:$0xff] %v7714_v60  ;;  %v1183_v62 = vmul.f32 %v1119_v58, %v1119_v58  ;;  %v1425_v36 = vmul.f32 %v7163_v51, %v7648_v19  ;;  %v1458_v6 = vmul.f32 %v7176_v47, %v7648_v19  ;;  %v1426_v2 = vmul.f32 %v7163_v51, %v7667_v21 }
 0x15c   :  { %v1590_v43 = vmul.f32 %v6971_v12, %v1307_v28  ;;  %v1244_v25 = vmul.f32 1.0012771, %v1212_v61  ;;  %v1343_v5 = vrot.slane %v1342_v49, 4  ;;  %v1069_v18 = vpop.xlane.xlu0 %1068  ;;  %v1374_v63 = vadd.f32 %v1373_v50, %v7607_v45 }
 0x15d   :  { %v1149_v46 = vmul.f32 0.0012755102, %v1069_v18  ;;  %v1427_v45 = vmul.f32 %v7163_v51, %v7676_v29  ;;  %v10950_v17 = vstv %s7570_s8 }
 0x15e   :  { %v7733_v57 = vadd.f32 %v1590_v43, %v1557_v41  ;;  %v1276_v52 = vadd.f32 %v1244_v25, %v1180_v32  ;;  %v1344_v38 = vadd.f32 %v1343_v5, %v1342_v49  ;;  %v1459_v49 = vmul.f32 %v7176_v47, %v7667_v21 }
 0x15f   :  { %v1213_v55 = vsub.f32 %v1149_v46, %v1181_v42  ;;  %v1087_v39 = vpop.xlane.xlu1 %1086  ;;  %v1460_v41 = vmul.f32 %v7176_v47, %v7676_v29  ;;  %v1558_v19 = vmul.f32 %v6969_v16, %v1244_v25  ;;  %v1428_v46 = vmul.f32 %v7163_v51, %v7688_v35 }
 0x160   :  { %10948 = vst [vmem:[#allocation41_spill] sm:$0xff] %v7733_v57  ;;  %v1308_v0 = vsub.f32 %v1276_v52, %v1180_v32  ;;  %v1345_v28 = vrot.slane %v1344_v38, 2  ;;  %v1151_v61 = vmul.f32 0.0012755102, %v1087_v39  ;;  %v1375_v32 = vadd.f32 %v1374_v63, %v7655_v40 }
 0x161   :  { %v1245_v43 = vmul.f32 1.0012771, %v1213_v55  ;;  %v7755_v21 = vmul.f32 %v7688_v35, %v7688_v35  ;;  %v1429_v40 = vmul.f32 %v7163_v51, %v1119_v58  ;;  %v1490_v51 = vadd.f32 %v1458_v6, %v1425_v36  ;;  %v10952_v6 = vld [vmem:[#allocation26_spill] sm:$0xff] }
 0x162   :  { %v1591_v5 = vmul.f32 %v6971_v12, %v1308_v0  ;;  %v1346_v18 = vadd.f32 %v1345_v28, %v1344_v38  ;;  %v1215_v50 = vsub.f32 %v1151_v61, %v1183_v62  ;;  %v1376_v0 = vadd.f32 %v1375_v32, %v7683_v56 }
 0x163   :  { %v1277_v39 = vadd.f32 %v1245_v43, %v1181_v42  ;;  %v1078_v57 = vpop.xlane.xlu0 %1077  ;;  %v1461_v38 = vmul.f32 %v7176_v47, %v7688_v35  ;;  %v1462_v61 = vmul.f32 %v7176_v47, %v1119_v58  ;;  %v1492_v47 = vadd.f32 %v1460_v41, %v1427_v45 }
 0x164   :  { %v7757_v60 = vadd.f32 %v1591_v5, %v1558_v19  ;;  %v1347_v29 = vrot.slane %v1346_v18, 1  ;;  %v1247_v55 = vmul.f32 1.0012771, %v1215_v50  ;;  %v1150_v25 = vmul.f32 0.0012755102, %v1078_v57 }
 0x165   :  { %v1309_v63 = vsub.f32 %v1277_v39, %v1181_v42  ;;  %v1488_v19 = vadd.f32 %v1456_v31, %v1423_v59  ;;  %v1377_v5 = vadd.f32 %v1376_v0, %v7706_v27  ;;  %v1559_v57 = vmul.f32 %v6969_v16, %v1245_v43 }
 0x166   :  { %10949 = vst [vmem:[#allocation42_spill] sm:$0xff] %v7757_v60  ;;  %v1348_v28 = vadd.f32 %v1347_v29, %v1346_v18  ;;  %v1279_v30 = vadd.f32 %v1247_v55, %v1183_v62  ;;  %v1214_v48 = vsub.f32 %v1150_v25, %v7755_v21  ;;  %v1489_v50 = vadd.f32 %v1457_v24, %v1424_v13 }
 0x167   :  { %v1592_v56 = vmul.f32 %v6971_v12, %v1309_v63  ;;  %v1491_v42 = vadd.f32 %v1459_v49, %v1426_v2  ;;  %v1378_v18 = vadd.f32 %v1377_v5, %v1276_v52  ;;  %v1493_v58 = vadd.f32 %v1461_v38, %v1428_v46  ;;  %v10962_v38 = vld [vmem:[#allocation40_spill] sm:$0xff] }
 0x168   :  { %v1350_v32 = vmul.f32 0.00390625, %v1348_v28  ;;  %v1311_v35 = vsub.f32 %v1279_v30, %v1183_v62  ;;  %v1246_v60 = vmul.f32 1.0012771, %v1214_v48  ;;  %v1494_v25 = vadd.f32 %v1462_v61, %v1429_v40 }
 0x169   :  { %v7768_v29 = vadd.f32 %v1592_v56, %v1559_v57  ;;  %v1379_v31 = vadd.f32 %v1378_v18, %v1277_v39  ;;  %v1561_v27 = vmul.f32 %v6969_v16, %v1247_v55 }
 0x16a   :  { %v1496_v59 = vmul.f32 %v10950_v17, %v1350_v32  ;;  %v1594_v43 = vmul.f32 %v6971_v12, %v1311_v35  ;;  %v1278_v13 = vadd.f32 %v1246_v60, %v7755_v21  ;;  %v1560_v57 = vmul.f32 %v6969_v16, %v1246_v60  ;;  %v10972_v60 = vld [vmem:[#allocation11_spill] sm:$0xff] }
 0x16c   :  { %v7775_v24 = vadd.f32 %v1496_v59, %v1494_v25  ;;  %v7778_v48 = vadd.f32 %v1496_v59, %v7248_v3  ;;  %v7781_v52 = vadd.f32 %v1496_v59, %v7267_v9  ;;  %v7784_v62 = vadd.f32 %v1496_v59, %v7236_v20  ;;  %v10953_v9 = vld [vmem:[#allocation28_spill] sm:$0xff]  ;;  %v10954_v20 = vld [vmem:[#allocation31_spill] sm:$0xff] }
 0x16d   :  { %v7787_v17 = vadd.f32 %v1496_v59, %v7258_v44  ;;  %v7790_v36 = vadd.f32 %v1496_v59, %v7269_v33  ;;  %v7793_v2 = vadd.f32 %v1496_v59, %v10952_v6  ;;  %v7796_v49 = vadd.f32 %v1496_v59, %v7337_v22  ;;  %v10973_v6 = vld [vmem:[#allocation12_spill] sm:$0xff] }
 0x16e   :  { %10951 = vst [vmem:[#allocation43_spill] sm:$0xff] %v7775_v24  ;;  %v7799_v3 = vadd.f32 %v1496_v59, %v7343_v26  ;;  %v7802_v45 = vadd.f32 %v1496_v59, %v10953_v9  ;;  %v7805_v41 = vadd.f32 %v1496_v59, %v10954_v20  ;;  %v7808_v44 = vadd.f32 %v1496_v59, %v7454_v8  ;;  %v10955_v8 = vld [vmem:[#allocation35_spill] sm:$0xff]  ;;  %v10974_v20 = vld [vmem:[#allocation13_spill] sm:$0xff]  ;;  %v10993_v24 = vld [vmem:[#allocation36_spill] sm:$0xff] }
 0x16f   :  { %v7811_v33 = vadd.f32 %v1496_v59, %v7456_v14  ;;  %v7814_v46 = vadd.f32 %v1496_v59, %v7458_v4  ;;  %v7817_v22 = vadd.f32 %v1496_v59, %v7472_v10  ;;  %v7820_v26 = vadd.f32 %v1496_v59, %v7549_v37 }
 0x170   :  { %v7823_v39 = vadd.f32 %v1496_v59, %v7551_v1  ;;  %v7826_v55 = vadd.f32 %v1496_v59, %v7572_v34  ;;  %v7829_v0 = vadd.f32 %v1496_v59, %v10955_v8  ;;  %v7832_v14 = vadd.f32 %v1496_v59, %v7658_v11 }
 0x171   :  { %v7835_v4 = vadd.f32 %v1496_v59, %v7660_v54  ;;  %v7838_v10 = vadd.f32 %v1496_v59, %v7664_v23  ;;  %v7841_v37 = vadd.f32 %v1496_v59, %v7669_v15  ;;  %v7844_v1 = vadd.f32 %v1496_v59, %v7709_v7 }
 0x172   :  { %10956 = vst [vmem:[#allocation26_spill] sm:$0xff] %v7832_v14  ;;  %v7847_v34 = vadd.f32 %v1496_v59, %v7711_v53  ;;  %v7850_v40 = vadd.f32 %v1496_v59, %v10962_v38  ;;  %v7852_v11 = vadd.f32 %v1496_v59, %v1488_v19  ;;  %v7854_v63 = vadd.f32 %v1496_v59, %v1489_v50  ;;  %v10975_v38 = vld [vmem:[#allocation14_spill] sm:$0xff] }
 0x173   :  { %10957 = vst [vmem:[#allocation28_spill] sm:$0xff] %v7835_v4  ;;  %10958 = vst [vmem:[#allocation31_spill] sm:$0xff] %v7838_v10  ;;  %v7856_v54 = vadd.f32 %v1496_v59, %v1490_v51  ;;  %v7858_v23 = vadd.f32 %v1496_v59, %v1491_v42  ;;  %v7860_v28 = vadd.f32 %v1496_v59, %v1492_v47 }
 0x174   :  { %10959 = vst [vmem:[#allocation35_spill] sm:$0xff] %v7841_v37  ;;  %10960 = vst [vmem:[#allocation44_spill] sm:$0xff] %v7844_v1  ;;  %v7862_v15 = vadd.f32 %v1496_v59, %v1493_v58  ;;  %v1626_v7 = vadd.f32 %v1594_v43, %v1561_v27  ;;  %v1310_v61 = vsub.f32 %v1278_v13, %v7755_v21  ;;  %v1627_v59 = vstv %s4353_s26 }
 0x175   :  { %10961 = vst [vmem:[#allocation45_spill] sm:$0xff] %v7847_v34  ;;  %10963 = vst [vmem:[#allocation40_spill] sm:$0xff] %v7850_v40  ;;  %v1380_v53 = vadd.f32 %v1379_v31, %v1278_v13  ;;  %v1389_v25 = vmul.f32 %v1350_v32, %v1350_v32  ;;  %v10970_v31 = vld [vmem:[#allocation10_spill] sm:$0xff]  ;;  %v10971_v13 = vld [vmem:[#allocation9_spill] sm:$0xff]  ;;  %v7947_v34 = vstv %s1693_s27  ;;  %v7949_v37 = vstv %s4354_s28 }
 0x176   :  { %10964 = vst [vmem:[#allocation46_spill] sm:$0xff] %v7852_v11  ;;  %10965 = vst [vmem:[#allocation47_spill] sm:$0xff] %v7854_v63  ;;  %v1593_v19 = vmul.f32 %v6971_v12, %v1310_v61  ;;  %v10997_v63 = vld [vmem:[#allocation41_spill] sm:$0xff] }
 0x177   :  { %10966 = vst [vmem:[#allocation48_spill] sm:$0xff] %v7856_v54  ;;  %10967 = vst [vmem:[#allocation49_spill] sm:$0xff] %v7858_v23  ;;  %v1381_v5 = vadd.f32 %v1380_v53, %v1279_v30  ;;  %v10976_v53 = vld [vmem:[#allocation15_spill] sm:$0xff]  ;;  %v10994_v54 = vld [vmem:[#allocation37_spill] sm:$0xff] }
 0x178   :  { %10968 = vst [vmem:[#allocation50_spill] sm:$0xff] %v7860_v28  ;;  %10969 = vst [vmem:[#allocation51_spill] sm:$0xff] %v7862_v15  ;;  %v1625_v50 = vadd.f32 %v1593_v19, %v1560_v57  ;;  %v10977_v57 = vld [vmem:[#allocation16_spill] sm:$0xff]  ;;  %v10995_v28 = vld [vmem:[#allocation38_spill] sm:$0xff] }
 0x179   :  { %v1382_v56 = vrot.slane %v1381_v5, 4  ;;  %v10996_v23 = vld [vmem:[#allocation39_spill] sm:$0xff] }
 0x17b   :  { %v1383_v35 = vadd.f32 %v1382_v56, %v1381_v5  ;;  %v10978_v56 = vld [vmem:[#allocation17_spill] sm:$0xff] }
 0x17d   :  { %v1384_v51 = vrot.slane %v1383_v35, 2 }
 0x17f   :  { %v1385_v42 = vadd.f32 %v1384_v51, %v1383_v35  ;;  %v10979_v35 = vld [vmem:[#allocation18_spill] sm:$0xff] }
 0x181   :  { %v1386_v18 = vrot.slane %v1385_v42, 1 }
 0x183   :  { %v1387_v47 = vadd.f32 %v1386_v18, %v1385_v42  ;;  %v10980_v42 = vld [vmem:[#allocation19_spill] sm:$0xff] }
 0x185   :  { %v1388_v58 = vmul.f32 0.00390625, %v1387_v47  ;;  %v10981_v47 = vld [vmem:[#allocation20_spill] sm:$0xff] }
 0x187   :  { %v1390_v27 = vsub.f32 %v1388_v58, %v1389_v25  ;;  %v10982_v58 = vld [vmem:[#allocation21_spill] sm:$0xff] }
 0x189   :  { %v1628_v43 = vmul.f32 %v1627_v59, %v1390_v27  ;;  %v10983_v27 = vld [vmem:[#allocation22_spill] sm:$0xff] }
 0x18b   :  { %v1659_v21 = vadd.f32 %v1628_v43, %v1625_v50  ;;  %v1629_v30 = vadd.f32 %v1628_v43, %v10970_v31  ;;  %v1630_v16 = vadd.f32 %v1628_v43, %v10971_v13  ;;  %v1631_v12 = vadd.f32 %v1628_v43, %v10972_v60  ;;  %v10984_v13 = vld [vmem:[#allocation23_spill] sm:$0xff] }
 0x18c   :  { %v1632_v9 = vadd.f32 %v1628_v43, %v10973_v6  ;;  %v1633_v8 = vadd.f32 %v1628_v43, %v10974_v20  ;;  %v1634_v61 = vadd.f32 %v1628_v43, %v10975_v38  ;;  %v7874_v5 = vadd.f32 %v1628_v43, %v10976_v53  ;;  %v10985_v6 = vld [vmem:[#allocation24_spill] sm:$0xff]  ;;  %v10986_v38 = vld [vmem:[#allocation25_spill] sm:$0xff] }
 0x18d   :  { %v1691_v32 = vmax.f32 %v1659_v21, 0.0  ;;  %v7877_v19 = vadd.f32 %v1628_v43, %v10977_v57  ;;  %v7880_v50 = vadd.f32 %v1628_v43, %v10978_v56  ;;  %v7883_v51 = vadd.f32 %v1628_v43, %v10979_v35  ;;  %v10987_v57 = vld [vmem:[#allocation27_spill] sm:$0xff]  ;;  %v10988_v35 = vld [vmem:[#allocation29_spill] sm:$0xff] }
 0x18e   :  { %v7886_v18 = vadd.f32 %v1628_v43, %v10980_v42  ;;  %v7889_v25 = vadd.f32 %v1628_v43, %v10981_v47  ;;  %v7892_v59 = vadd.f32 %v1628_v43, %v10982_v58  ;;  %v7895_v21 = vadd.f32 %v1628_v43, %v10983_v27  ;;  %v10989_v47 = vld [vmem:[#allocation30_spill] sm:$0xff] }
 0x18f   :  { %v1725_v31 = vadd.f32 1e-05, %v1691_v32  ;;  %v7898_v60 = vadd.f32 %v1628_v43, %v10984_v13  ;;  %v7901_v20 = vadd.f32 %v1628_v43, %v10985_v6  ;;  %v7904_v53 = vadd.f32 %v1628_v43, %v10986_v38  ;;  %v10990_v32 = vld [vmem:[#allocation32_spill] sm:$0xff]  ;;  %v10991_v13 = vld [vmem:[#allocation33_spill] sm:$0xff]  ;;  %v10992_v38 = vld [vmem:[#allocation34_spill] sm:$0xff] }
 0x190   :  { %v7907_v56 = vadd.f32 %v1628_v43, %v10987_v57  ;;  %v7910_v42 = vadd.f32 %v1628_v43, %v10988_v35  ;;  %v7913_v58 = vadd.f32 %v1628_v43, %v10989_v47  ;;  %v7916_v27 = vadd.f32 %v1628_v43, %v10990_v32 }
 0x191   :  { %4813 = vrsqrt.f32 %v1725_v31  ;;  %v7919_v6 = vadd.f32 %v1628_v43, %v10991_v13  ;;  %v7922_v15 = vadd.f32 %v1628_v43, %v10992_v38  ;;  %v7925_v57 = vadd.f32 %v1628_v43, %v10993_v24  ;;  %v10998_v13 = vld [vmem:[#allocation42_spill] sm:$0xff] }
 0x192   :  { %v7928_v35 = vadd.f32 %v1628_v43, %v10994_v54  ;;  %v7931_v47 = vadd.f32 %v1628_v43, %v10995_v28  ;;  %v7934_v32 = vadd.f32 %v1628_v43, %v10996_v23  ;;  %v7937_v31 = vadd.f32 %v1628_v43, %v10997_v63 }
 0x193   :  { %v7940_v11 = vadd.f32 %v1628_v43, %v10998_v13  ;;  %v7943_v38 = vadd.f32 %v1628_v43, %v7768_v29  ;;  %v7945_v24 = vadd.f32 %v1628_v43, %v1626_v7  ;;  %v1661_v40 = vmax.f32 %v1629_v30, 0.0 }
 0x194   :  { %v1662_v54 = vmax.f32 %v1630_v16, 0.0  ;;  %v1663_v28 = vmax.f32 %v1631_v12, 0.0  ;;  %v1664_v1 = vmax.f32 %v1632_v9, 0.0  ;;  %v1665_v23 = vmax.f32 %v1633_v8, 0.0 }
 0x195   :  { %v1666_v10 = vmax.f32 %v1634_v61, 0.0  ;;  %v1667_v63 = vmax.f32 %v7874_v5, 0.0  ;;  %v1668_v13 = vmax.f32 %v7877_v19, 0.0  ;;  %v1669_v4 = vmax.f32 %v7880_v50, 0.0 }
 0x196   :  { %v1670_v29 = vmax.f32 %v7883_v51, 0.0  ;;  %v1671_v7 = vmax.f32 %v7886_v18, 0.0  ;;  %v1672_v43 = vmax.f32 %v7889_v25, 0.0  ;;  %v1673_v16 = vmax.f32 %v7892_v59, 0.0 }
 0x197   :  { %v1674_v12 = vmax.f32 %v7895_v21, 0.0  ;;  %v1695_v9 = vadd.f32 1e-05, %v1661_v40  ;;  %v1696_v8 = vadd.f32 1e-05, %v1662_v54  ;;  %v1675_v5 = vmax.f32 %v7898_v60, 0.0 }
 0x198   :  { %v1697_v19 = vadd.f32 1e-05, %v1663_v28  ;;  %v1698_v50 = vadd.f32 1e-05, %v1664_v1  ;;  %v1676_v51 = vmax.f32 %v7901_v20, 0.0  ;;  %v1677_v18 = vmax.f32 %v7904_v53, 0.0 }
 0x199   :  { %v1699_v14 = vadd.f32 1e-05, %v1665_v23  ;;  %4815 = vrsqrt.f32 %v1695_v9  ;;  %v1678_v25 = vmax.f32 %v7907_v56, 0.0  ;;  %v1679_v59 = vmax.f32 %v7910_v42, 0.0 }
 0x19a   :  { %v1700_v21 = vadd.f32 1e-05, %v1666_v10  ;;  %4817 = vrsqrt.f32 %v1696_v8  ;;  %v1680_v40 = vmax.f32 %v7913_v58, 0.0  ;;  %v1681_v54 = vmax.f32 %v7916_v27, 0.0 }
 0x19b   :  { %v4814_v30 = vpop.eup %4813  ;;  %4819 = vrsqrt.f32 %v1697_v19  ;;  %v1682_v1 = vmax.f32 %v7919_v6, 0.0  ;;  %v1683_v60 = vmax.f32 %v7922_v15, 0.0  ;;  %v1702_v20 = vadd.f32 1e-05, %v1668_v13 }
 0x19c   :  { %v7960_v61 = vmul.f32 %v4814_v30, %v7947_v34  ;;  %v1701_v30 = vadd.f32 1e-05, %v1667_v63  ;;  %4821 = vrsqrt.f32 %v1698_v50  ;;  %v1684_v53 = vmax.f32 %v7925_v57, 0.0 }
 0x19d   :  { %v1685_v56 = vmax.f32 %v7928_v35, 0.0  ;;  %v1703_v28 = vadd.f32 1e-05, %v1669_v4  ;;  %4823 = vrsqrt.f32 %v1699_v14  ;;  %v1686_v10 = vmax.f32 %v7931_v47, 0.0 }
 0x19e   :  { %v1687_v42 = vmax.f32 %v7934_v32, 0.0  ;;  %v1704_v58 = vadd.f32 1e-05, %v1670_v29  ;;  %4825 = vrsqrt.f32 %v1700_v21  ;;  %v1688_v27 = vmax.f32 %v7937_v31, 0.0 }
 0x19f   :  { %v1689_v6 = vmax.f32 %v7940_v11, 0.0  ;;  %v1705_v23 = vadd.f32 1e-05, %v1671_v7  ;;  %4827 = vrsqrt.f32 %v1701_v30  ;;  %v1690_v15 = vmax.f32 %v7943_v38, 0.0 }
 0x1a0   :  { %v1692_v57 = vmax.f32 %v7945_v24, 0.0  ;;  %v1706_v63 = vadd.f32 1e-05, %v1672_v43  ;;  %4829 = vrsqrt.f32 %v1702_v20  ;;  %v1707_v4 = vadd.f32 1e-05, %v1673_v16 }
 0x1a1   :  { %v1708_v14 = vadd.f32 1e-05, %v1674_v12  ;;  %v1709_v35 = vadd.f32 1e-05, %v1675_v5  ;;  %4831 = vrsqrt.f32 %v1703_v28  ;;  %v1710_v47 = vadd.f32 1e-05, %v1676_v51 }
 0x1a2   :  { %v1711_v32 = vadd.f32 1e-05, %v1677_v18  ;;  %v1712_v13 = vadd.f32 1e-05, %v1678_v25  ;;  %4833 = vrsqrt.f32 %v1704_v58  ;;  %v1713_v31 = vadd.f32 1e-05, %v1679_v59 }
 0x1a3   :  { %v4816_v29 = vpop.eup %4815  ;;  %v1714_v9 = vadd.f32 1e-05, %v1680_v40  ;;  %v1715_v11 = vadd.f32 1e-05, %v1681_v54  ;;  %4835 = vrsqrt.f32 %v1705_v23  ;;  %v1716_v8 = vadd.f32 1e-05, %v1682_v1 }
 0x1a4   :  { %v4818_v7 = vpop.eup %4817  ;;  %v1717_v38 = vadd.f32 1e-05, %v1683_v60  ;;  %4837 = vrsqrt.f32 %v1706_v63  ;;  %v7980_v24 = vmul.f32 %v4816_v29, %v7947_v34  ;;  %v7982_v16 = vadd.f32 1e-05, %v1684_v53  ;;  %v4881_v1 = vld [vmem:[%s10807_s3 + $0x8] sm:$0xff] }
 0x1a5   :  { %v4820_v43 = vpop.eup %4819  ;;  %v7984_v12 = vadd.f32 1e-05, %v1685_v56  ;;  %4839 = vrsqrt.f32 %v1707_v4  ;;  %v7987_v5 = vmul.f32 %v4818_v7, %v7947_v34  ;;  %v7989_v50 = vadd.f32 1e-05, %v1686_v10  ;;  %v4882_v60 = vld [vmem:[%s10807_s3 + $0x28] sm:$0xff]  ;;  %v4883_v56 = vld [vmem:[%s10807_s3 + $0x40] sm:$0xff] }
 0x1a6   :  { %v4822_v19 = vpop.eup %4821  ;;  %v7991_v51 = vadd.f32 1e-05, %v1687_v42  ;;  %4841 = vrsqrt.f32 %v1708_v14  ;;  %v1792_v18 = vmul.f32 %v7980_v24, %v7778_v48  ;;  %v7995_v59 = vadd.f32 1e-05, %v1688_v27  ;;  %v4884_v10 = vld [vmem:[%s10807_s3 + $0x60] sm:$0xff] }
 0x1a7   :  { %v4824_v25 = vpop.eup %4823  ;;  %v7997_v21 = vadd.f32 1e-05, %v1689_v6  ;;  %4843 = vrsqrt.f32 %v1709_v35  ;;  %v1793_v40 = vmul.f32 %v7987_v5, %v7781_v52  ;;  %v1858_v48 = vmul.f32 %v4881_v1, %v7980_v24 }
 0x1a8   :  { %v4826_v54 = vpop.eup %4825  ;;  %4845 = vrsqrt.f32 %v1710_v47  ;;  %v8002_v30 = vsub.f32 %v7949_v37, %v1792_v18  ;;  %v1862_v20 = vmul.f32 %v4882_v60, %v7980_v24  ;;  %v1865_v28 = vmul.f32 %v4883_v56, %v7987_v5 }
 0x1a9   :  { %v4828_v53 = vpop.eup %4827  ;;  %4847 = vrsqrt.f32 %v1711_v32  ;;  %v8013_v52 = vsub.f32 %v7949_v37, %v1793_v40  ;;  %v1869_v42 = vmul.f32 %v4884_v10, %v7987_v5  ;;  %v8023_v27 = vadd.f32 1e-05, %v1690_v15  ;;  %v4885_v15 = vld [vmem:[%s10807_s3] sm:$0xff] }
 0x1aa   :  { %v4830_v58 = vpop.eup %4829  ;;  %4849 = vrsqrt.f32 %v1712_v13  ;;  %v2082_v6 = vadd.f32 %v1858_v48, %v8002_v30  ;;  %v2086_v23 = vadd.f32 %v1862_v20, %v8002_v30  ;;  %v8027_v4 = vadd.f32 1e-05, %v1692_v57  ;;  %v4886_v57 = vld [vmem:[%s10807_s3 + $0x38] sm:$0xff] }
 0x1ab   :  { %10999 = vst [vmem:[#allocation10_spill] sm:$0xff] %v8013_v52  ;;  %v4832_v63 = vpop.eup %4831  ;;  %4851 = vrsqrt.f32 %v1713_v31  ;;  %v2089_v14 = vadd.f32 %v1865_v28, %v8013_v52  ;;  %v2093_v35 = vadd.f32 %v1869_v42, %v8013_v52  ;;  %v8032_v32 = vmul.f32 %v4820_v43, %v7947_v34  ;;  %v4888_v20 = vld [vmem:[%s10807_s3 + $0x58] sm:$0xff] }
 0x1ac   :  { %v4834_v47 = vpop.eup %4833  ;;  %4853 = vrsqrt.f32 %v1714_v9  ;;  %v1857_v13 = vmul.f32 %v4885_v15, %v7980_v24  ;;  %v1864_v29 = vmul.f32 %v4886_v57, %v7987_v5  ;;  %v8045_v9 = vmul.f32 %v4822_v19, %v7947_v34  ;;  %v4762_v19 = vld [vmem:[%s10808_s4 + $0x100] ss:$8 sps:$4 sm:$0xff]   ;;  %v4770_v42 = vld [vmem:[%s10808_s4 + $0x114] ss:$8 sps:$4 sm:$0xff]  }
 0x1ad   :  { %11000 = vst [vmem:[#allocation9_spill] sm:$0xff] %v8032_v32  ;;  %v8042_v31 = vpop.eup %4835  ;;  %4855 = vrsqrt.f32 %v1715_v11  ;;  %v2306_v7 = vpack.c.bf16 %v2089_v14, %v2082_v6  ;;  %v2310_v43 = vpack.c.bf16 %v2093_v35, %v2086_v23  ;;  %v8050_v40 = vmul.f32 %v4824_v25, %v7947_v34  ;;  %v4765_v35 = vld [vmem:[%s10808_s4 + $0x300] ss:$8 sps:$4 sm:$0xff]  }
 0x1ae   :  { %11001 = vst [vmem:[#allocation11_spill] sm:$0xff] %v8045_v9  ;;  %v8047_v18 = vpop.eup %4837  ;;  %4857 = vrsqrt.f32 %v1716_v8  ;;  %v2081_v1 = vadd.f32 %v1857_v13, %v8002_v30  ;;  %v2088_v48 = vadd.f32 %v1864_v29, %v8013_v52  ;;  %v8057_v11 = vmul.f32 %v4826_v54, %v7947_v34  ;;  %v4887_v8 = vld [vmem:[%s10807_s3 + $0x20] sm:$0xff] }
 0x1af   :  { %v8054_v60 = vpop.eup %4839  ;;  %4859 = vrsqrt.f32 %v1717_v38  ;;  %3085 = vmatprep.mubr.bf16.mxu1 %v2306_v7  ;;  %3471 = vmatprep.mubr.bf16.mxu0 %v2310_v43  ;;  %v1861_v25 = vmul.f32 %v4887_v8, %v7980_v24  ;;  %v1868_v38 = vmul.f32 %v4888_v20, %v7987_v5  ;;  %v8074_v56 = vmul.f32 %v4828_v53, %v7947_v34  ;;  %v4890_v7 = vld [vmem:[%s10807_s3 + $0xb0] sm:$0xff]  ;;  %v4891_v8 = vld [vmem:[%s10807_s3 + $0x98] sm:$0xff] }
 0x1b0   :  { %11002 = vst [vmem:[#allocation12_spill] sm:$0xff] %v8057_v11  ;;  %v8070_v54 = vpop.eup %4841  ;;  %4861 = vrsqrt.f32 %v7982_v16  ;;  %v2305_v28 = vpack.c.bf16 %v2088_v48, %v2081_v1  ;;  %v1794_v10 = vmul.f32 %v8032_v32, %v7784_v62  ;;  %v8085_v23 = vmul.f32 %v4830_v58, %v7947_v34  ;;  %v4773_v1 = vld [vmem:[%s10808_s4 + $0x124] ss:$8 sps:$4 sm:$0xff]  }
 0x1b1   :  { %11003 = vst [vmem:[#allocation13_spill] sm:$0xff] %v8074_v56  ;;  %v8081_v6 = vpop.eup %4843  ;;  %4863 = vrsqrt.f32 %v7984_v12  ;;  %v2085_v16 = vadd.f32 %v1861_v25, %v8002_v30  ;;  %v2092_v53 = vadd.f32 %v1868_v38, %v8013_v52  ;;  %v8093_v62 = vmul.f32 %v4832_v63, %v7947_v34  ;;  %v4889_v63 = vld [vmem:[%s10807_s3 + $0x78] sm:$0xff] }
 0x1b2   :  { %11004 = vst [vmem:[#allocation14_spill] sm:$0xff] %v8085_v23  ;;  %v8089_v14 = vpop.eup %4845  ;;  %4865 = vrsqrt.f32 %v7989_v50  ;;  %3086 = vmatmul.mubr.bf16.vlgmr.msra.gmra.mrb[0].mxu1 %v2305_v28  ;;  %v1795_v12 = vmul.f32 %v8045_v9, %v7787_v17  ;;  %v8101_v58 = vsub.f32 %v7949_v37, %v1794_v10  ;;  %v8105_v13 = vmul.f32 %v4834_v47, %v7947_v34  ;;  %v4768_v17 = vld [vmem:[%s10808_s4 + $0x110] ss:$8 sps:$4 sm:$0xff]  }
 0x1b3   :  { %v4848_v15 = vpop.eup %4847  ;;  %4867 = vrsqrt.f32 %v7991_v51  ;;  %3247 = vmatpush1.bf16.msra.mxu1 %v4762_v19  ;;  %v2309_v50 = vpack.c.bf16 %v2092_v53, %v2085_v16  ;;  %v1872_v57 = vmul.f32 %v4889_v63, %v8032_v32  ;;  %v1879_v43 = vmul.f32 %v4890_v7, %v8045_v9  ;;  %v4892_v28 = vld [vmem:[%s10807_s3 + $0xd0] sm:$0xff] }
 0x1b4   :  { %11005 = vst [vmem:[#allocation15_spill] sm:$0xff] %v8101_v58  ;;  %v4850_v29 = vpop.eup %4849  ;;  %4869 = vrsqrt.f32 %v7995_v59  ;;  %v8116_v51 = vmul.f32 %v4848_v15, %v7947_v34  ;;  %v8119_v47 = vsub.f32 %v7949_v37, %v1795_v12  ;;  %3248 = vmatprep.subr.bf16.mxu1 %v4770_v42  ;;  %v1876_v25 = vmul.f32 %v4891_v8, %v8032_v32  ;;  %v4893_v53 = vld [vmem:[%s10807_s3 + $0x70] sm:$0xff]  ;;  %v4771_v12 = vld [vmem:[%s10808_s4 + $0x120] ss:$8 sps:$4 sm:$0xff]  }
 0x1b5   :  { %v4852_v48 = vpop.eup %4851  ;;  %4871 = vrsqrt.f32 %v7997_v21  ;;  %v8130_v59 = vmul.f32 %v4850_v29, %v7947_v34  ;;  %3472 = vmatmul.mubr.bf16.vlgmr.msra.gmra.mrb[0].mxu0 %v2309_v50  ;;  %v2096_v19 = vadd.f32 %v1872_v57, %v8101_v58  ;;  %v1883_v10 = vmul.f32 %v4892_v28, %v8045_v9  ;;  %v4894_v57 = vld [vmem:[%s10807_s3 + $0xa8] sm:$0xff] }
 0x1b6   :  { %11006 = vst [vmem:[#allocation16_spill] sm:$0xff] %v8116_v51  ;;  %11007 = vst [vmem:[#allocation17_spill] sm:$0xff] %v8119_v47  ;;  %v4854_v20 = vpop.eup %4853  ;;  %4873 = vrsqrt.f32 %v8023_v27  ;;  %v8139_v38 = vmul.f32 %v4852_v48, %v7947_v34  ;;  %3633 = vmatpush1.bf16.msra.mxu0 %v4765_v35  ;;  %v2103_v21 = vadd.f32 %v1879_v43, %v8119_v47  ;;  %v4895_v48 = vld [vmem:[%s10807_s3 + $0x90] sm:$0xff]  ;;  %v4896_v8 = vld [vmem:[%s10807_s3 + $0xc8] sm:$0xff] }
 0x1b7   :  { %11008 = vst [vmem:[#allocation18_spill] sm:$0xff] %v8130_v59  ;;  %v4856_v42 = vpop.eup %4855  ;;  %4875 = vrsqrt.f32 %v8027_v4  ;;  %v8148_v16 = vmul.f32 %v4854_v20, %v7947_v34  ;;  %v2100_v27 = vadd.f32 %v1876_v25, %v8101_v58  ;;  %v1871_v35 = vmul.f32 %v4893_v53, %v8032_v32  ;;  %3249 = vmatpush1.bf16.msra.mxu1 %v4768_v17 }
 0x1b8   :  { %11009 = vst [vmem:[#allocation19_spill] sm:$0xff] %v8139_v38  ;;  %v4858_v15 = vpop.eup %4857  ;;  %v8159_v50 = vmul.f32 %v4856_v42, %v7947_v34  ;;  %v2313_v4 = vpack.c.bf16 %v2103_v21, %v2096_v19  ;;  %v2107_v63 = vadd.f32 %v1883_v10, %v8119_v47  ;;  %v1878_v29 = vmul.f32 %v4894_v57, %v8045_v9 }
 0x1b9   :  { %11010 = vst [vmem:[#allocation20_spill] sm:$0xff] %v8148_v16  ;;  %3250 = vmatprep.subr.bf16.mxu1 %v4773_v1  ;;  %v4860_v7 = vpop.eup %4859  ;;  %v8167_v17 = vmul.f32 %v4858_v15, %v7947_v34  ;;  %v2095_v43 = vadd.f32 %v1871_v35, %v8101_v58  ;;  %v1875_v19 = vmul.f32 %v4895_v48, %v8032_v32  ;;  %v4776_v1 = vld [vmem:[%s10808_s4 + $0x134] ss:$8 sps:$4 sm:$0xff]  }
 0x1ba   :  { %11011 = vst [vmem:[#allocation21_spill] sm:$0xff] %v8159_v50  ;;  %v1882_v25 = vmul.f32 %v4896_v8, %v8045_v9  ;;  %v4862_v20 = vpop.eup %4861  ;;  %v8182_v21 = vmul.f32 %v4860_v7, %v7947_v34  ;;  %3095 = vmatprep.mubr.bf16.mxu1 %v2313_v4  ;;  %v2317_v28 = vpack.c.bf16 %v2107_v63, %v2100_v27  ;;  %v4897_v63 = vld [vmem:[%s10807_s3 + $0xe8] sm:$0xff] }
 0x1bb   :  { %11012 = vst [vmem:[#allocation22_spill] sm:$0xff] %v8167_v17  ;;  %v2102_v10 = vadd.f32 %v1878_v29, %v8119_v47  ;;  %v1796_v42 = vmul.f32 %v8050_v40, %v7790_v36  ;;  %v4864_v53 = vpop.eup %4863  ;;  %v8188_v35 = vmul.f32 %v4862_v20, %v7947_v34  ;;  %v2099_v15 = vadd.f32 %v1875_v19, %v8101_v58 }
 0x1bc   :  { %11013 = vst [vmem:[#allocation23_spill] sm:$0xff] %v8182_v21  ;;  %v2106_v57 = vadd.f32 %v1882_v25, %v8119_v47  ;;  %v1797_v48 = vmul.f32 %v8057_v11, %v7793_v2  ;;  %3251 = vmatpush1.bf16.msra.mxu1 %v4771_v12  ;;  %v4866_v7 = vpop.eup %4865  ;;  %v8195_v27 = vmul.f32 %v4864_v53, %v7947_v34  ;;  %v4774_v2 = vld [vmem:[%s10808_s4 + $0x130] ss:$8 sps:$4 sm:$0xff]   ;;  %v4898_v25 = vld [vmem:[%s10807_s3 + $0x120] sm:$0xff] }
 0x1bd   :  { %11014 = vst [vmem:[#allocation24_spill] sm:$0xff] %v8188_v35  ;;  %3481 = vmatprep.mubr.bf16.mxu0 %v2317_v28  ;;  %v2312_v4 = vpack.c.bf16 %v2102_v10, %v2095_v43  ;;  %v8198_v36 = vsub.f32 %v7949_v37, %v1796_v42  ;;  %v1886_v29 = vmul.f32 %v4897_v63, %v8050_v40  ;;  %v4868_v12 = vpop.eup %4867  ;;  %v4779_v28 = vld [vmem:[%s10808_s4 + $0x144] ss:$8 sps:$4 sm:$0xff]  }
 0x1be   :  { %11015 = vst [vmem:[#allocation25_spill] sm:$0xff] %v8195_v27  ;;  %v8208_v19 = vmul.f32 %v4866_v7, %v7947_v34  ;;  %v2316_v8 = vpack.c.bf16 %v2106_v57, %v2099_v15  ;;  %v8211_v43 = vsub.f32 %v7949_v37, %v1797_v48  ;;  %v1893_v20 = vmul.f32 %v4898_v25, %v8057_v11  ;;  %v4870_v10 = vpop.eup %4869  ;;  %v4899_v15 = vld [vmem:[%s10807_s3 + $0x108] sm:$0xff]  ;;  %v4902_v25 = vld [vmem:[%s10807_s3 + $0x118] sm:$0xff] }
 0x1bf   :  { %11016 = vst [vmem:[#allocation27_spill] sm:$0xff] %v8198_v36  ;;  %3252 = vmatprep.subr.bf16.mxu1 %v4776_v1  ;;  %v8221_v42 = vmul.f32 %v4868_v12, %v7947_v34  ;;  %3096 = vmatmul.mubr.bf16.gmra.mrb[4].mxu1 %v2312_v4  ;;  %v2110_v53 = vadd.f32 %v1886_v29, %v8198_v36  ;;  %v4900_v1 = vld [vmem:[%s10807_s3 + $0x140] sm:$0xff]  ;;  %v4872_v7 = vpop.eup %4871 }
 0x1c0   :  { %11017 = vst [vmem:[#allocation29_spill] sm:$0xff] %v8208_v19  ;;  %11018 = vst [vmem:[#allocation30_spill] sm:$0xff] %v8211_v43  ;;  %v1890_v57 = vmul.f32 %v4899_v15, %v8050_v40  ;;  %v1897_v48 = vmul.f32 %v4900_v1, %v8057_v11  ;;  %v8233_v63 = vmul.f32 %v4870_v10, %v7947_v34  ;;  %3482 = vmatmul.mubr.bf16.gmra.mrb[4].mxu0 %v2316_v8  ;;  %v4901_v29 = vld [vmem:[%s10807_s3 + $0xe0] sm:$0xff]  ;;  %v4874_v1 = vpop.eup %4873 }
 0x1c1   :  { %v2117_v4 = vadd.f32 %v1893_v20, %v8211_v43  ;;  %v1885_v12 = vmul.f32 %v4901_v29, %v8050_v40  ;;  %v1892_v15 = vmul.f32 %v4902_v25, %v8057_v11  ;;  %v8245_v47 = vmul.f32 %v4872_v7, %v7947_v34  ;;  %v4903_v10 = vld [vmem:[%s10807_s3 + $0x100] sm:$0xff]  ;;  %3253 = vmatpush1.bf16.msra.mxu1 %v4774_v2  ;;  %v4876_v58 = vpop.eup %4875  ;;  %v4904_v2 = vld [vmem:[%s10807_s3 + $0x138] sm:$0xff] }
 0x1c2   :  { %v2114_v8 = vadd.f32 %v1890_v57, %v8198_v36  ;;  %v2121_v20 = vadd.f32 %v1897_v48, %v8211_v43  ;;  %v1889_v29 = vmul.f32 %v4903_v10, %v8050_v40  ;;  %v8254_v9 = vmul.f32 %v4874_v1, %v7947_v34  ;;  %v4777_v57 = vld [vmem:[%s10808_s4 + $0x140] ss:$8 sps:$4 sm:$0xff]   ;;  %3254 = vmatprep.subr.bf16.mxu1 %v4779_v28 }
 0x1c3   :  { %v2320_v25 = vpack.c.bf16 %v2117_v4, %v2110_v53  ;;  %v2109_v32 = vadd.f32 %v1885_v12, %v8198_v36  ;;  %v2116_v7 = vadd.f32 %v1892_v15, %v8211_v43  ;;  %v8262_v48 = vmul.f32 %v4876_v58, %v7947_v34  ;;  %v4905_v58 = vld [vmem:[%s10807_s3 + $0x158] sm:$0xff] }
 0x1c4   :  { %v2324_v52 = vpack.c.bf16 %v2121_v20, %v2114_v8  ;;  %v1896_v1 = vmul.f32 %v4904_v2, %v8057_v11  ;;  %v2113_v53 = vadd.f32 %v1889_v29, %v8198_v36  ;;  %v1798_v12 = vmul.f32 %v8074_v56, %v7796_v49  ;;  %v4782_v8 = vld [vmem:[%s10808_s4 + $0x154] ss:$8 sps:$4 sm:$0xff]  }
 0x1c5   :  { %3105 = vmatprep.mubr.bf16.mxu1 %v2320_v25  ;;  %v2319_v4 = vpack.c.bf16 %v2116_v7, %v2109_v32  ;;  %v1799_v28 = vmul.f32 %v8085_v23, %v7799_v3  ;;  %v1900_v15 = vmul.f32 %v4905_v58, %v8074_v56  ;;  %v4906_v49 = vld [vmem:[%s10807_s3 + $0x190] sm:$0xff]  ;;  %v4907_v3 = vld [vmem:[%s10807_s3 + $0x178] sm:$0xff]  ;;  %v4910_v58 = vld [vmem:[%s10807_s3 + $0x188] sm:$0xff]  ;;  %3255 = vmatpush1.bf16.msra.mxu1 %v4777_v57 }
 0x1c6   :  { %3491 = vmatprep.mubr.bf16.mxu0 %v2324_v52  ;;  %v2120_v20 = vadd.f32 %v1896_v1, %v8211_v43  ;;  %v1907_v32 = vmul.f32 %v4906_v49, %v8085_v23  ;;  %v1904_v10 = vmul.f32 %v4907_v3, %v8074_v56  ;;  %v4908_v29 = vld [vmem:[%s10807_s3 + $0x1b0] sm:$0xff]  ;;  %v8294_v25 = vsub.f32 %v7949_v37, %v1798_v12 }
 0x1c7   :  { %v1911_v52 = vmul.f32 %v4908_v29, %v8085_v23  ;;  %v8297_v7 = vsub.f32 %v7949_v37, %v1799_v28  ;;  %v4909_v2 = vld [vmem:[%s10807_s3 + $0x150] sm:$0xff]  ;;  %v1906_v49 = vmul.f32 %v4910_v58, %v8085_v23  ;;  %3106 = vmatmul.mubr.bf16.gmra.mrb[8].mxu1 %v2319_v4  ;;  %v1800_v57 = vmul.f32 %v8093_v62, %v7802_v45  ;;  %v4785_v4 = vld [vmem:[%s10808_s4 + $0x164] ss:$8 sps:$4 sm:$0xff]  }
 0x1c8   :  { %v1899_v1 = vmul.f32 %v4909_v2, %v8074_v56  ;;  %v4780_v12 = vld [vmem:[%s10808_s4 + $0x150] ss:$8 sps:$4 sm:$0xff]   ;;  %v2323_v28 = vpack.c.bf16 %v2120_v20, %v2113_v53  ;;  %v4912_v2 = vld [vmem:[%s10807_s3 + $0x1a8] sm:$0xff]  ;;  %v2124_v53 = vadd.f32 %v1900_v15, %v8294_v25  ;;  %v2128_v58 = vadd.f32 %v1904_v10, %v8294_v25  ;;  %3256 = vmatprep.subr.bf16.mxu1 %v4782_v8 }
 0x1c9   :  { %v4911_v3 = vld [vmem:[%s10807_s3 + $0x170] sm:$0xff]  ;;  %v1910_v43 = vmul.f32 %v4912_v2, %v8085_v23  ;;  %v2131_v20 = vadd.f32 %v1907_v32, %v8297_v7  ;;  %v2130_v2 = vadd.f32 %v1906_v49, %v8297_v7  ;;  %v1801_v15 = vmul.f32 %v8105_v13, %v7805_v41  ;;  %3257 = vmatpush1.bf16.msra.mxu1 %v4780_v12  ;;  %v4783_v8 = vld [vmem:[%s10808_s4 + $0x160] ss:$8 sps:$4 sm:$0xff]  }
 0x1ca   :  { %v1903_v29 = vmul.f32 %v4911_v3, %v8074_v56  ;;  %v2135_v3 = vadd.f32 %v1911_v52, %v8297_v7  ;;  %3492 = vmatmul.mubr.bf16.gmra.mrb[8].mxu0 %v2323_v28  ;;  %v2123_v56 = vadd.f32 %v1899_v1, %v8294_v25  ;;  %v8334_v32 = vsub.f32 %v7949_v37, %v1800_v57  ;;  %v4913_v41 = vld [vmem:[%s10807_s3 + $0x1c8] sm:$0xff]  ;;  %v4914_v1 = vld [vmem:[%s10807_s3 + $0x200] sm:$0xff] }
 0x1cb   :  { %v2134_v23 = vadd.f32 %v1910_v43, %v8297_v7  ;;  %v2327_v36 = vpack.c.bf16 %v2131_v20, %v2124_v53  ;;  %v8341_v10 = vmul.f32 %v8042_v31, %v7947_v34  ;;  %v8345_v43 = vmul.f32 %v8047_v18, %v7947_v34  ;;  %3258 = vmatprep.subr.bf16.mxu1 %v4785_v4  ;;  %v4915_v18 = vld [vmem:[%s10807_s3 + $0x1e8] sm:$0xff]  ;;  %v4916_v28 = vld [vmem:[%s10807_s3 + $0x220] sm:$0xff] }
 0x1cc   :  { %v2127_v45 = vadd.f32 %v1903_v29, %v8294_v25  ;;  %v2331_v11 = vpack.c.bf16 %v2135_v3, %v2128_v58  ;;  %v1914_v52 = vmul.f32 %v4913_v41, %v8093_v62  ;;  %v1921_v49 = vmul.f32 %v4914_v1, %v8105_v13 }
 0x1cd   :  { %3115 = vmatprep.mubr.bf16.mxu1 %v2327_v36  ;;  %v8356_v31 = vsub.f32 %v7949_v37, %v1801_v15  ;;  %v1918_v12 = vmul.f32 %v4915_v18, %v8093_v62  ;;  %v1925_v29 = vmul.f32 %v4916_v28, %v8105_v13  ;;  %v4788_v36 = vld [vmem:[%s10808_s4 + $0x174] ss:$8 sps:$4 sm:$0xff]   ;;  %v8375_v57 = vmul.f32 %v8070_v54, %v7947_v34 }
 0x1ce   :  { %3501 = vmatprep.mubr.bf16.mxu0 %v2331_v11  ;;  %v8371_v11 = vmul.f32 %v8054_v60, %v7947_v34  ;;  %v2326_v4 = vpack.c.bf16 %v2130_v2, %v2123_v56  ;;  %v2138_v53 = vadd.f32 %v1914_v52, %v8334_v32  ;;  %v2330_v20 = vpack.c.bf16 %v2134_v23, %v2127_v45  ;;  %v4917_v60 = vld [vmem:[%s10807_s3 + $0x1c0] sm:$0xff]  ;;  %v4918_v54 = vld [vmem:[%s10807_s3 + $0x1f8] sm:$0xff] }
 0x1cf   :  { %v2145_v58 = vadd.f32 %v1921_v49, %v8356_v31  ;;  %v2142_v3 = vadd.f32 %v1918_v12, %v8334_v32  ;;  %v2149_v15 = vadd.f32 %v1925_v29, %v8356_v31  ;;  %3259 = vmatpush1.bf16.msra.mxu1 %v4783_v8  ;;  %v1913_v41 = vmul.f32 %v4917_v60, %v8093_v62  ;;  %v4919_v23 = vld [vmem:[%s10807_s3 + $0x1e0] sm:$0xff]  ;;  %v4786_v8 = vld [vmem:[%s10808_s4 + $0x170] ss:$8 sps:$4 sm:$0xff]  }
 0x1d0   :  { %3116 = vmatmul.mubr.bf16.gmra.mrb[12].mxu1 %v2326_v4  ;;  %v1920_v56 = vmul.f32 %v4918_v54, %v8105_v13  ;;  %v1917_v2 = vmul.f32 %v4919_v23, %v8093_v62  ;;  %v1802_v45 = vmul.f32 %v8341_v10, %v7808_v44  ;;  %v4920_v49 = vld [vmem:[%s10807_s3 + $0x218] sm:$0xff]  ;;  %v1803_v12 = vmul.f32 %v8345_v43, %v7811_v33  ;;  %v4791_v44 = vld [vmem:[%s10808_s4 + $0x184] ss:$8 sps:$4 sm:$0xff]  }
 0x1d1   :  { %v2334_v52 = vpack.c.bf16 %v2145_v58, %v2138_v53  ;;  %v2338_v1 = vpack.c.bf16 %v2149_v15, %v2142_v3  ;;  %v1924_v18 = vmul.f32 %v4920_v49, %v8105_v13  ;;  %3260 = vmatprep.subr.bf16.mxu1 %v4788_v36  ;;  %v2137_v28 = vadd.f32 %v1913_v41, %v8334_v32  ;;  %v4921_v53 = vld [vmem:[%s10807_s3 + $0x238] sm:$0xff]  ;;  %v4922_v36 = vld [vmem:[%s10807_s3 + $0x270] sm:$0xff] }
 0x1d2   :  { %3502 = vmatmul.mubr.bf16.gmra.mrb[12].mxu0 %v2330_v20  ;;  %v2144_v29 = vadd.f32 %v1920_v56, %v8356_v31  ;;  %v8410_v4 = vsub.f32 %v7949_v37, %v1802_v45  ;;  %v1928_v58 = vmul.f32 %v4921_v53, %v8341_v10  ;;  %v8417_v33 = vsub.f32 %v7949_v37, %v1803_v12  ;;  %v4923_v3 = vld [vmem:[%s10807_s3 + $0x258] sm:$0xff]  ;;  %v4924_v56 = vld [vmem:[%s10807_s3 + $0x290] sm:$0xff] }
 0x1d3   :  { %3125 = vmatprep.mubr.bf16.mxu1 %v2334_v52  ;;  %3511 = vmatprep.mubr.bf16.mxu0 %v2338_v1  ;;  %v1935_v20 = vmul.f32 %v4922_v36, %v8345_v43  ;;  %v1932_v15 = vmul.f32 %v4923_v3, %v8341_v10  ;;  %v2141_v60 = vadd.f32 %v1917_v2, %v8334_v32  ;;  %v4927_v36 = vld [vmem:[%s10807_s3 + $0x2a8] sm:$0xff]  ;;  %v4928_v3 = vld [vmem:[%s10807_s3 + $0x2e0] sm:$0xff] }
 0x1d4   :  { %v2148_v41 = vadd.f32 %v1924_v18, %v8356_v31  ;;  %v2152_v54 = vadd.f32 %v1928_v58, %v8410_v4  ;;  %v1939_v23 = vmul.f32 %v4924_v56, %v8345_v43  ;;  %3261 = vmatpush1.bf16.msra.mxu1 %v4786_v8  ;;  %v2333_v1 = vpack.c.bf16 %v2144_v29, %v2137_v28  ;;  %v4925_v28 = vld [vmem:[%s10807_s3 + $0x230] sm:$0xff] }
 0x1d5   :  { %v2159_v45 = vadd.f32 %v1935_v20, %v8417_v33  ;;  %v2156_v52 = vadd.f32 %v1932_v15, %v8410_v4  ;;  %3262 = vmatprep.subr.bf16.mxu1 %v4791_v44  ;;  %v1804_v2 = vmul.f32 %v8371_v11, %v7814_v46  ;;  %v8441_v18 = vmul.f32 %v8081_v6, %v7947_v34  ;;  %v4926_v6 = vld [vmem:[%s10807_s3 + $0x268] sm:$0xff]  ;;  %v4929_v56 = vld [vmem:[%s10807_s3 + $0x250] sm:$0xff] }
 0x1d6   :  { %v2163_v49 = vadd.f32 %v1939_v23, %v8417_v33  ;;  %v8445_v12 = vmul.f32 %v8089_v14, %v7947_v34  ;;  %v1805_v53 = vmul.f32 %v8375_v57, %v7817_v22  ;;  %v2337_v44 = vpack.c.bf16 %v2148_v41, %v2141_v60  ;;  %v4789_v22 = vld [vmem:[%s10808_s4 + $0x180] ss:$8 sps:$4 sm:$0xff]   ;;  %v4794_v60 = vld [vmem:[%s10808_s4 + $0x194] ss:$8 sps:$4 sm:$0xff]  }
 0x1d7   :  { %v2341_v8 = vpack.c.bf16 %v2159_v45, %v2152_v54  ;;  %v1927_v46 = vmul.f32 %v4925_v28, %v8341_v10  ;;  %v1934_v29 = vmul.f32 %v4926_v6, %v8345_v43  ;;  %v8458_v34 = vsub.f32 %v7949_v37, %v1804_v2  ;;  %v4930_v45 = vld [vmem:[%s10807_s3 + $0x288] sm:$0xff] }
 0x1d8   :  { %3126 = vmatmul.mubr.bf16.gmra.mrb[16].mxu1 %v2333_v1  ;;  %v2345_v14 = vpack.c.bf16 %v2163_v49, %v2156_v52  ;;  %v8464_v58 = vsub.f32 %v7949_v37, %v1805_v53  ;;  %v1942_v20 = vmul.f32 %v4927_v36, %v8371_v11  ;;  %v1949_v15 = vmul.f32 %v4928_v3, %v8375_v57  ;;  %v4931_v2 = vld [vmem:[%s10807_s3 + $0x2c8] sm:$0xff]  ;;  %v4932_v53 = vld [vmem:[%s10807_s3 + $0x300] sm:$0xff] }
 0x1d9   :  { %3135 = vmatprep.mubr.bf16.mxu1 %v2341_v8  ;;  %v2151_v41 = vadd.f32 %v1927_v46, %v8410_v4  ;;  %v2158_v54 = vadd.f32 %v1934_v29, %v8417_v33  ;;  %v1931_v23 = vmul.f32 %v4929_v56, %v8341_v10  ;;  %v1938_v52 = vmul.f32 %v4930_v45, %v8345_v43  ;;  %v4792_v45 = vld [vmem:[%s10808_s4 + $0x190] ss:$8 sps:$4 sm:$0xff]  }
 0x1da   :  { %3512 = vmatmul.mubr.bf16.gmra.mrb[16].mxu0 %v2337_v44  ;;  %v2166_v1 = vadd.f32 %v1942_v20, %v8458_v34  ;;  %v2173_v49 = vadd.f32 %v1949_v15, %v8464_v58  ;;  %v1946_v8 = vmul.f32 %v4931_v2, %v8371_v11  ;;  %v1953_v44 = vmul.f32 %v4932_v53, %v8375_v57  ;;  %v4937_v2 = vld [vmem:[%s10807_s3 + $0x2f8] sm:$0xff]  ;;  %v4938_v53 = vld [vmem:[%s10807_s3 + $0x350] sm:$0xff] }
 0x1db   :  { %3521 = vmatprep.mubr.bf16.mxu0 %v2345_v14  ;;  %v2155_v28 = vadd.f32 %v1931_v23, %v8410_v4  ;;  %v2162_v46 = vadd.f32 %v1938_v52, %v8417_v33  ;;  %v1806_v6 = vmul.f32 %v8441_v18, %v7820_v26  ;;  %3263 = vmatpush1.bf16.msra.mxu1 %v4789_v22  ;;  %v4933_v26 = vld [vmem:[%s10807_s3 + $0x2a0] sm:$0xff] }
 0x1dc   :  { %v2170_v29 = vadd.f32 %v1946_v8, %v8458_v34  ;;  %v2177_v14 = vadd.f32 %v1953_v44, %v8464_v58  ;;  %v1807_v36 = vmul.f32 %v8445_v12, %v7823_v39  ;;  %3264 = vmatprep.subr.bf16.mxu1 %v4794_v60  ;;  %v2340_v20 = vpack.c.bf16 %v2158_v54, %v2151_v41  ;;  %v4934_v39 = vld [vmem:[%s10807_s3 + $0x2d8] sm:$0xff] }
 0x1dd   :  { %v8506_v3 = vsub.f32 %v7949_v37, %v1806_v6  ;;  %v2348_v15 = vpack.c.bf16 %v2173_v49, %v2166_v1  ;;  %v2344_v23 = vpack.c.bf16 %v2162_v46, %v2155_v28  ;;  %v1941_v22 = vmul.f32 %v4933_v26, %v8371_v11  ;;  %v4935_v41 = vld [vmem:[%s10807_s3 + $0x318] sm:$0xff]  ;;  %v4936_v1 = vld [vmem:[%s10807_s3 + $0x2c0] sm:$0xff] }
 0x1de   :  { %v8509_v56 = vsub.f32 %v7949_v37, %v1807_v36  ;;  %v1948_v60 = vmul.f32 %v4934_v39, %v8375_v57  ;;  %v1956_v54 = vmul.f32 %v4935_v41, %v8441_v18  ;;  %v2352_v52 = vpack.c.bf16 %v2177_v14, %v2170_v29  ;;  %v4797_v28 = vld [vmem:[%s10808_s4 + $0x1a4] ss:$8 sps:$4 sm:$0xff]   ;;  %v4939_v14 = vld [vmem:[%s10807_s3 + $0x338] sm:$0xff] }
 0x1df   :  { %11019 = vst [vmem:[#allocation32_spill] sm:$0xff] %v8506_v3  ;;  %v1945_v49 = vmul.f32 %v4936_v1, %v8371_v11  ;;  %v1952_v8 = vmul.f32 %v4937_v2, %v8375_v57  ;;  %v1963_v44 = vmul.f32 %v4938_v53, %v8445_v12  ;;  %v2165_v46 = vadd.f32 %v1941_v22, %v8458_v34  ;;  %v4941_v1 = vld [vmem:[%s10807_s3 + $0x310] sm:$0xff] }
 0x1e0   :  { %11020 = vst [vmem:[#allocation33_spill] sm:$0xff] %v8509_v56  ;;  %3136 = vmatmul.mubr.bf16.gmra.mrb[20].mxu1 %v2340_v20  ;;  %v2172_v6 = vadd.f32 %v1948_v60, %v8464_v58  ;;  %v2180_v29 = vadd.f32 %v1956_v54, %v8506_v3  ;;  %v1960_v36 = vmul.f32 %v4939_v14, %v8441_v18  ;;  %v4795_v14 = vld [vmem:[%s10808_s4 + $0x1a0] ss:$8 sps:$4 sm:$0xff]  }
 0x1e1   :  { %3145 = vmatprep.mubr.bf16.mxu1 %v2348_v15  ;;  %v2187_v20 = vadd.f32 %v1963_v44, %v8509_v56  ;;  %v4940_v15 = vld [vmem:[%s10807_s3 + $0x370] sm:$0xff]  ;;  %v1808_v26 = vmul.f32 %v8116_v51, %v7826_v55  ;;  %v1809_v22 = vmul.f32 %v8130_v59, %v7829_v0  ;;  %v2169_v39 = vadd.f32 %v1945_v49, %v8458_v34  ;;  %v4942_v0 = vld [vmem:[%s10807_s3 + $0x348] sm:$0xff] }
 0x1e2   :  { %3522 = vmatmul.mubr.bf16.gmra.mrb[20].mxu0 %v2344_v23  ;;  %v1967_v23 = vmul.f32 %v4940_v15, %v8445_v12  ;;  %v2176_v60 = vadd.f32 %v1952_v8, %v8464_v58  ;;  %3265 = vmatpush1.bf16.msra.mxu1 %v4792_v45  ;;  %v2184_v41 = vadd.f32 %v1960_v36, %v8506_v3  ;;  %v4945_v15 = vld [vmem:[%s10807_s3 + $0x388] sm:$0xff] }
 0x1e3   :  { %3531 = vmatprep.mubr.bf16.mxu0 %v2352_v52  ;;  %3266 = vmatprep.subr.bf16.mxu1 %v4797_v28  ;;  %v2347_v52 = vpack.c.bf16 %v2172_v6, %v2165_v46  ;;  %v1955_v55 = vmul.f32 %v4941_v1, %v8441_v18  ;;  %v2355_v2 = vpack.c.bf16 %v2187_v20, %v2180_v29  ;;  %v4943_v28 = vld [vmem:[%s10807_s3 + $0x330] sm:$0xff]  ;;  %v4944_v6 = vld [vmem:[%s10807_s3 + $0x368] sm:$0xff]  ;;  %v4948_v1 = vld [vmem:[%s10807_s3 + $0x3e0] sm:$0xff] }
 0x1e4   :  { %v2191_v54 = vadd.f32 %v1967_v23, %v8509_v56  ;;  %v1962_v49 = vmul.f32 %v4942_v0, %v8445_v12  ;;  %v8570_v45 = vsub.f32 %v7949_v37, %v1808_v26  ;;  %v8573_v8 = vsub.f32 %v7949_v37, %v1809_v22  ;;  %v4946_v26 = vld [vmem:[%s10807_s3 + $0x3c0] sm:$0xff] }
 0x1e5   :  { %v2351_v53 = vpack.c.bf16 %v2176_v60, %v2169_v39  ;;  %v2179_v44 = vadd.f32 %v1955_v55, %v8506_v3  ;;  %v1959_v46 = vmul.f32 %v4943_v28, %v8441_v18  ;;  %v1966_v29 = vmul.f32 %v4944_v6, %v8445_v12  ;;  %v4800_v39 = vld [vmem:[%s10808_s4 + $0x1b4] ss:$8 sps:$4 sm:$0xff]  }
 0x1e6   :  { %11021 = vst [vmem:[#allocation34_spill] sm:$0xff] %v8570_v45  ;;  %11022 = vst [vmem:[#allocation36_spill] sm:$0xff] %v8573_v8  ;;  %v2359_v36 = vpack.c.bf16 %v2191_v54, %v2184_v41  ;;  %v2186_v20 = vadd.f32 %v1962_v49, %v8509_v56  ;;  %v1970_v23 = vmul.f32 %v4945_v15, %v8116_v51  ;;  %v4947_v54 = vld [vmem:[%s10807_s3 + $0x3a8] sm:$0xff]  ;;  %v11024_v28 = vld [vmem:[#allocation28_spill] sm:$0xff]  ;;  %3267 = vmatpush1.bf16.msra.mxu1 %v4795_v14 }
 0x1e7   :  { %v1977_v22 = vmul.f32 %v4946_v26, %v8130_v59  ;;  %v2183_v60 = vadd.f32 %v1959_v46, %v8506_v3  ;;  %v2190_v41 = vadd.f32 %v1966_v29, %v8509_v56  ;;  %v1981_v55 = vmul.f32 %v4948_v1, %v8130_v59  ;;  %v11023_v49 = vld [vmem:[#allocation26_spill] sm:$0xff]  ;;  %3268 = vmatprep.subr.bf16.mxu1 %v4800_v39  ;;  %v4952_v14 = vld [vmem:[%s10807_s3 + $0x3d8] sm:$0xff] }
 0x1e8   :  { %3146 = vmatmul.mubr.bf16.gmra.mrb[24].mxu1 %v2347_v52  ;;  %v1974_v52 = vmul.f32 %v4947_v54, %v8116_v51  ;;  %v1811_v46 = vmul.f32 %v8148_v16, %v11024_v28  ;;  %v2354_v15 = vpack.c.bf16 %v2186_v20, %v2179_v44  ;;  %v1980_v20 = vmul.f32 %v4952_v14, %v8130_v59  ;;  %v4956_v14 = vld [vmem:[%s10807_s3 + $0x450] sm:$0xff]  ;;  %v4995_v56 = vld [vmem:[%s10807_s3 + $0x5b8] sm:$0xff] }
 0x1e9   :  { %3155 = vmatprep.mubr.bf16.mxu1 %v2355_v2  ;;  %v2194_v2 = vadd.f32 %v1970_v23, %v8570_v45  ;;  %v2201_v0 = vadd.f32 %v1977_v22, %v8573_v8  ;;  %v2205_v29 = vadd.f32 %v1981_v55, %v8573_v8  ;;  %v2358_v26 = vpack.c.bf16 %v2190_v41, %v2183_v60  ;;  %v4950_v22 = vld [vmem:[%s10807_s3 + $0x3b8] sm:$0xff] }
 0x1ea   :  { %3532 = vmatmul.mubr.bf16.gmra.mrb[24].mxu0 %v2351_v53  ;;  %v1810_v53 = vmul.f32 %v8139_v38, %v11023_v49  ;;  %v2198_v6 = vadd.f32 %v1974_v52, %v8570_v45  ;;  %v1976_v54 = vmul.f32 %v4950_v22, %v8130_v59  ;;  %v4951_v52 = vld [vmem:[%s10807_s3 + $0x3a0] sm:$0xff]  ;;  %v8638_v1 = vsub.f32 %v7949_v37, %v1811_v46  ;;  %v4954_v46 = vld [vmem:[%s10807_s3 + $0x430] sm:$0xff] }
 0x1eb   :  { %3541 = vmatprep.mubr.bf16.mxu0 %v2359_v36  ;;  %v4949_v36 = vld [vmem:[%s10807_s3 + $0x380] sm:$0xff]  ;;  %v1973_v44 = vmul.f32 %v4951_v52, %v8116_v51  ;;  %v2362_v39 = vpack.c.bf16 %v2201_v0, %v2194_v2  ;;  %v4798_v2 = vld [vmem:[%s10808_s4 + $0x1b0] ss:$8 sps:$4 sm:$0xff]  }
 0x1ec   :  { %v1969_v23 = vmul.f32 %v4949_v36, %v8116_v51  ;;  %v8635_v41 = vsub.f32 %v7949_v37, %v1810_v53  ;;  %11026 = vst [vmem:[#allocation38_spill] sm:$0xff] %v8638_v1  ;;  %v2366_v55 = vpack.c.bf16 %v2205_v29, %v2198_v6  ;;  %v2200_v49 = vadd.f32 %v1976_v54, %v8573_v8  ;;  %v4953_v0 = vld [vmem:[%s10807_s3 + $0x3f8] sm:$0xff]  ;;  %v11027_v29 = vld [vmem:[#allocation31_spill] sm:$0xff]  ;;  %v4803_v54 = vld [vmem:[%s10808_s4 + $0x1c4] ss:$8 sps:$4 sm:$0xff]  }
 0x1ed   :  { %v2197_v28 = vadd.f32 %v1973_v44, %v8570_v45  ;;  %v2204_v36 = vadd.f32 %v1980_v20, %v8573_v8  ;;  %v1984_v53 = vmul.f32 %v4953_v0, %v8139_v38  ;;  %v1991_v6 = vmul.f32 %v4954_v46, %v8148_v16  ;;  %v4955_v52 = vld [vmem:[%s10807_s3 + $0x418] sm:$0xff]  ;;  %3269 = vmatpush1.bf16.msra.mxu1 %v4798_v2  ;;  %v4961_v2 = vld [vmem:[%s10807_s3 + $0x468] sm:$0xff] }
 0x1ee   :  { %v2193_v60 = vadd.f32 %v1969_v23, %v8570_v45  ;;  %11025 = vst [vmem:[#allocation37_spill] sm:$0xff] %v8635_v41  ;;  %v11028_v23 = vld [vmem:[#allocation35_spill] sm:$0xff]  ;;  %v1988_v44 = vmul.f32 %v4955_v52, %v8139_v38  ;;  %v1995_v20 = vmul.f32 %v4956_v14, %v8148_v16  ;;  %3270 = vmatprep.subr.bf16.mxu1 %v4803_v54 }
 0x1ef   :  { %v1813_v22 = vmul.f32 %v8167_v17, %v11028_v23  ;;  %v2215_v23 = vadd.f32 %v1991_v6, %v8638_v1  ;;  %v4959_v52 = vld [vmem:[%s10807_s3 + $0x410] sm:$0xff] }
 0x1f0   :  { %3156 = vmatmul.mubr.bf16.gmra.mrb[28].mxu1 %v2354_v15  ;;  %v1812_v15 = vmul.f32 %v8159_v50, %v11027_v29  ;;  %v2208_v29 = vadd.f32 %v1984_v53, %v8635_v41  ;;  %v1987_v14 = vmul.f32 %v4959_v52, %v8139_v38  ;;  %v2212_v45 = vadd.f32 %v1988_v44, %v8635_v41 }
 0x1f1   :  { %3165 = vmatprep.mubr.bf16.mxu1 %v2362_v39  ;;  %v4957_v39 = vld [vmem:[%s10807_s3 + $0x3f0] sm:$0xff]  ;;  %v8705_v44 = vsub.f32 %v7949_v37, %v1813_v22  ;;  %v11032_v22 = vld [vmem:[#allocation45_spill] sm:$0xff] }
 0x1f2   :  { %3542 = vmatmul.mubr.bf16.gmra.mrb[28].mxu0 %v2358_v26  ;;  %v1983_v0 = vmul.f32 %v4957_v39, %v8139_v38  ;;  %v4958_v26 = vld [vmem:[%s10807_s3 + $0x428] sm:$0xff]  ;;  %v8702_v38 = vsub.f32 %v7949_v37, %v1812_v15  ;;  %v1815_v54 = vmul.f32 %v8188_v35, %v11032_v22 }
 0x1f3   :  { %v1990_v46 = vmul.f32 %v4958_v26, %v8148_v16  ;;  %3551 = vmatprep.mubr.bf16.mxu0 %v2366_v55  ;;  %v4960_v39 = vld [vmem:[%s10807_s3 + $0x448] sm:$0xff]  ;;  %v2219_v55 = vadd.f32 %v1995_v20, %v8638_v1  ;;  %v8696_v26 = vadd.f32 %v1987_v14, %v8635_v41  ;;  %11030 = vst [vmem:[#allocation41_spill] sm:$0xff] %v8705_v44 }
 0x1f4   :  { %v1994_v8 = vmul.f32 %v4960_v39, %v8148_v16  ;;  %v8690_v53 = vadd.f32 %v1983_v0, %v8635_v41  ;;  %11029 = vst [vmem:[#allocation39_spill] sm:$0xff] %v8702_v38  ;;  %v2361_v20 = vpack.c.bf16 %v2200_v49, %v2193_v60  ;;  %v11031_v0 = vld [vmem:[#allocation44_spill] sm:$0xff]  ;;  %v1998_v14 = vmul.f32 %v4961_v2, %v8159_v50 }
 0x1f5   :  { %v8693_v6 = vadd.f32 %v1990_v46, %v8638_v1  ;;  %v1814_v39 = vmul.f32 %v8182_v21, %v11031_v0  ;;  %v2369_v46 = vpack.c.bf16 %v2215_v23, %v2208_v29  ;;  %v2365_v60 = vpack.c.bf16 %v2204_v36, %v2197_v28  ;;  %v4963_v29 = vld [vmem:[%s10807_s3 + $0x488] sm:$0xff]  ;;  %v4964_v0 = vld [vmem:[%s10807_s3 + $0x4c0] sm:$0xff]  ;;  %v4810_v41 = vld [vmem:[%s10808_s4 + $0x1f0] ss:$8 sps:$4 sm:$0xff]  }
 0x1f6   :  { %v8699_v52 = vadd.f32 %v1994_v8, %v8638_v1  ;;  %v4962_v8 = vld [vmem:[%s10807_s3 + $0x4a0] sm:$0xff]  ;;  %v2373_v49 = vpack.c.bf16 %v2219_v55, %v2212_v45  ;;  %v2002_v23 = vmul.f32 %v4963_v29, %v8159_v50  ;;  %v2009_v2 = vmul.f32 %v4964_v0, %v8167_v17  ;;  %v4969_v0 = vld [vmem:[%s10807_s3 + $0x4d8] sm:$0xff] }
 0x1f7   :  { %v2005_v15 = vmul.f32 %v4962_v8, %v8167_v17  ;;  %v4801_v8 = vld [vmem:[%s10808_s4 + $0x1c0] ss:$8 sps:$4 sm:$0xff]   ;;  %v2368_v45 = vpack.c.bf16 %v8693_v6, %v8690_v53  ;;  %v2222_v36 = vadd.f32 %v1998_v14, %v8702_v38 }
 0x1f8   :  { %3166 = vmatmul.mubr.bf16.gmra.mrb[32].mxu1 %v2361_v20  ;;  %v2372_v28 = vpack.c.bf16 %v8699_v52, %v8696_v26  ;;  %v4806_v20 = vld [vmem:[%s10808_s4 + $0x1d4] ss:$8 sps:$4 sm:$0xff]   ;;  %v2226_v22 = vadd.f32 %v2002_v23, %v8702_v38  ;;  %v2233_v29 = vadd.f32 %v2009_v2, %v8705_v44  ;;  %v4965_v53 = vld [vmem:[%s10807_s3 + $0x460] sm:$0xff]  ;;  %v8746_v26 = vsub.f32 %v7949_v37, %v1814_v39 }
 0x1f9   :  { %3175 = vmatprep.mubr.bf16.mxu1 %v2369_v46  ;;  %v2229_v55 = vadd.f32 %v2005_v15, %v8705_v44  ;;  %v1997_v6 = vmul.f32 %v4965_v53, %v8159_v50  ;;  %v4966_v52 = vld [vmem:[%s10807_s3 + $0x498] sm:$0xff]  ;;  %v4967_v14 = vld [vmem:[%s10807_s3 + $0x480] sm:$0xff]  ;;  %v2012_v2 = vmul.f32 %v4969_v0, %v8182_v21  ;;  %3271 = vmatpush1.bf16.msra.mxu1 %v4801_v8 }
 0x1fa   :  { %3552 = vmatmul.mubr.bf16.gmra.mrb[32].mxu0 %v2365_v60  ;;  %11033 = vst [vmem:[#allocation42_spill] sm:$0xff] %v8746_v26  ;;  %v2004_v46 = vmul.f32 %v4966_v52, %v8167_v17  ;;  %v2001_v15 = vmul.f32 %v4967_v14, %v8159_v50  ;;  %v4968_v60 = vld [vmem:[%s10807_s3 + $0x4b8] sm:$0xff]  ;;  %v11036_v14 = vld [vmem:[#allocation46_spill] sm:$0xff]  ;;  %3272 = vmatprep.subr.bf16.mxu1 %v4806_v20 }
 0x1fb   :  { %3561 = vmatprep.mubr.bf16.mxu0 %v2373_v49  ;;  %v2008_v39 = vmul.f32 %v4968_v60, %v8167_v17  ;;  %v8761_v49 = vsub.f32 %v7949_v37, %v1815_v54  ;;  %v8764_v23 = vadd.f32 %v1997_v6, %v8702_v38  ;;  %v11035_v53 = vld [vmem:[#allocation40_spill] sm:$0xff]  ;;  %v1817_v50 = vmul.f32 %v8208_v19, %v11036_v14  ;;  %v4970_v17 = vld [vmem:[%s10807_s3 + $0x510] sm:$0xff] }
 0x1fc   :  { %v1816_v52 = vmul.f32 %v8195_v27, %v11035_v53  ;;  %v2376_v60 = vpack.c.bf16 %v2229_v55, %v2222_v36  ;;  %v8775_v54 = vadd.f32 %v2004_v46, %v8705_v44  ;;  %v8778_v6 = vadd.f32 %v2001_v15, %v8702_v38  ;;  %v4971_v36 = vld [vmem:[%s10807_s3 + $0x4f8] sm:$0xff]  ;;  %v4974_v15 = vld [vmem:[%s10807_s3 + $0x508] sm:$0xff] }
 0x1fd   :  { %11034 = vst [vmem:[#allocation26_spill] sm:$0xff] %v8761_v49  ;;  %v2019_v0 = vmul.f32 %v4970_v17, %v8188_v35  ;;  %v2380_v1 = vpack.c.bf16 %v2233_v29, %v2226_v22  ;;  %v8785_v53 = vadd.f32 %v2008_v39, %v8705_v44  ;;  %v8788_v8 = vadd.f32 %v2012_v2, %v8746_v26  ;;  %v4972_v17 = vld [vmem:[%s10807_s3 + $0x530] sm:$0xff] }
 0x1fe   :  { %v2016_v55 = vmul.f32 %v4971_v36, %v8182_v21  ;;  %v2023_v20 = vmul.f32 %v4972_v17, %v8188_v35  ;;  %v4973_v22 = vld [vmem:[%s10807_s3 + $0x4d0] sm:$0xff]  ;;  %v2018_v39 = vmul.f32 %v4974_v15, %v8188_v35  ;;  %v8816_v17 = vsub.f32 %v7949_v37, %v1816_v52 }
 0x1ff   :  { %v2243_v46 = vadd.f32 %v2019_v0, %v8761_v49  ;;  %v2011_v29 = vmul.f32 %v4973_v22, %v8182_v21  ;;  %v4975_v2 = vld [vmem:[%s10807_s3 + $0x4f0] sm:$0xff]  ;;  %v4976_v0 = vld [vmem:[%s10807_s3 + $0x528] sm:$0xff]  ;;  %v8819_v22 = vsub.f32 %v7949_v37, %v1817_v50 }
 0x200   :  { %3176 = vmatmul.mubr.bf16.gmra.mrb[36].mxu1 %v2368_v45  ;;  %v2015_v14 = vmul.f32 %v4975_v2, %v8182_v21  ;;  %v2022_v36 = vmul.f32 %v4976_v0, %v8188_v35  ;;  %v4804_v45 = vld [vmem:[%s10808_s4 + $0x1d0] ss:$8 sps:$4 sm:$0xff]   ;;  %v2240_v15 = vadd.f32 %v2016_v55, %v8746_v26  ;;  %v2247_v2 = vadd.f32 %v2023_v20, %v8761_v49  ;;  %v4809_v50 = vld [vmem:[%s10808_s4 + $0x1e4] ss:$8 sps:$4 sm:$0xff]   ;;  %v4812_v35 = vld [vmem:[%s10808_s4 + $0x1f4] ss:$8 sps:$4 sm:$0xff]  }
 0x201   :  { %3185 = vmatprep.mubr.bf16.mxu1 %v2376_v60  ;;  %v8827_v21 = vadd.f32 %v2011_v29, %v8746_v26  ;;  %v8830_v0 = vadd.f32 %v2018_v39, %v8761_v49  ;;  %v4977_v55 = vld [vmem:[%s10807_s3 + $0x548] sm:$0xff]  ;;  %v4978_v29 = vld [vmem:[%s10807_s3 + $0x580] sm:$0xff]  ;;  %3273 = vmatpush1.bf16.msra.mxu1 %v4804_v45 }
 0x202   :  { %3562 = vmatmul.mubr.bf16.gmra.mrb[36].mxu0 %v2372_v28  ;;  %v8836_v52 = vadd.f32 %v2015_v14, %v8746_v26  ;;  %v8839_v60 = vadd.f32 %v2022_v36, %v8761_v49  ;;  %v2026_v20 = vmul.f32 %v4977_v55, %v8195_v27  ;;  %v2033_v39 = vmul.f32 %v4978_v29, %v8208_v19  ;;  %v4981_v45 = vld [vmem:[%s10807_s3 + $0x540] sm:$0xff] }
 0x203   :  { %3571 = vmatprep.mubr.bf16.mxu0 %v2380_v1  ;;  %v2375_v28 = vpack.c.bf16 %v8775_v54, %v8764_v23  ;;  %v2379_v14 = vpack.c.bf16 %v8785_v53, %v8778_v6  ;;  %v2383_v36 = vpack.c.bf16 %v2243_v46, %v8788_v8  ;;  %v2387_v26 = vpack.c.bf16 %v2247_v2, %v2240_v15  ;;  %v4979_v1 = vld [vmem:[%s10807_s3 + $0x568] sm:$0xff]  ;;  %v4980_v23 = vld [vmem:[%s10807_s3 + $0x5a0] sm:$0xff]  ;;  %v11037_v6 = vld [vmem:[#allocation47_spill] sm:$0xff] }
 0x204   :  { %v8855_v49 = vadd.f32 %v2026_v20, %v8816_v17  ;;  %v8858_v55 = vadd.f32 %v2033_v39, %v8819_v22  ;;  %v2030_v29 = vmul.f32 %v4979_v1, %v8195_v27  ;;  %v2037_v54 = vmul.f32 %v4980_v23, %v8208_v19  ;;  %3274 = vmatprep.subr.bf16.mxu1 %v4809_v50  ;;  %v11038_v2 = vld [vmem:[#allocation49_spill] sm:$0xff]  ;;  %v4982_v1 = vld [vmem:[%s10807_s3 + $0x578] sm:$0xff] }
 0x205   :  { %v1818_v53 = vmul.f32 %v8221_v42, %v11037_v6  ;;  %v8878_v15 = vmul.f32 %v4981_v45, %v8195_v27  ;;  %v1820_v20 = vmul.f32 %v8245_v47, %v11038_v2  ;;  %v8892_v23 = vmul.f32 %v4982_v1, %v8208_v19  ;;  %v11039_v6 = vld [vmem:[#allocation50_spill] sm:$0xff] }
 0x206   :  { %v8883_v39 = vadd.f32 %v2030_v29, %v8816_v17  ;;  %v8886_v50 = vadd.f32 %v2037_v54, %v8819_v22  ;;  %v1821_v45 = vmul.f32 %v8254_v9, %v11039_v6  ;;  %v4807_v2 = vld [vmem:[%s10808_s4 + $0x1e0] ss:$8 sps:$4 sm:$0xff]   ;;  %v2390_v29 = vpack.c.bf16 %v8858_v55, %v8855_v49  ;;  %v11040_v54 = vld [vmem:[#allocation48_spill] sm:$0xff] }
 0x207   :  { %v1819_v46 = vmul.f32 %v8233_v63, %v11040_v54  ;;  %v8904_v8 = vsub.f32 %v7949_v37, %v1820_v20  ;;  %v4983_v1 = vld [vmem:[%s10807_s3 + $0x628] sm:$0xff]  ;;  %v4984_v55 = vld [vmem:[%s10807_s3 + $0x660] sm:$0xff]  ;;  %3275 = vmatpush1.bf16.msra.mxu1 %v4807_v2  ;;  %v4990_v2 = vld [vmem:[%s10807_s3 + $0x678] sm:$0xff] }
 0x208   :  { %3186 = vmatmul.mubr.bf16.gmra.mrb[40].mxu1 %v2375_v28  ;;  %v2054_v6 = vmul.f32 %v4983_v1, %v8245_v47  ;;  %v8914_v28 = vsub.f32 %v7949_v37, %v1818_v53  ;;  %v8917_v49 = vsub.f32 %v7949_v37, %v1821_v45  ;;  %v2061_v20 = vmul.f32 %v4984_v55, %v8254_v9  ;;  %v4985_v54 = vld [vmem:[%s10807_s3 + $0x648] sm:$0xff]  ;;  %v4986_v53 = vld [vmem:[%s10807_s3 + $0x680] sm:$0xff] }
 0x209   :  { %3195 = vmatprep.mubr.bf16.mxu1 %v2383_v36  ;;  %v2058_v1 = vmul.f32 %v4985_v54, %v8245_v47  ;;  %v2065_v45 = vmul.f32 %v4986_v53, %v8254_v9  ;;  %v4987_v55 = vld [vmem:[%s10807_s3 + $0x620] sm:$0xff]  ;;  %v4988_v54 = vld [vmem:[%s10807_s3 + $0x658] sm:$0xff]  ;;  %3276 = vmatprep.subr.bf16.mxu1 %v4812_v35 }
 0x20a   :  { %3572 = vmatmul.mubr.bf16.gmra.mrb[40].mxu0 %v2379_v14  ;;  %v8928_v36 = vadd.f32 %v2054_v6, %v8904_v8  ;;  %v2053_v44 = vmul.f32 %v4987_v55, %v8245_v47  ;;  %v2060_v14 = vmul.f32 %v4988_v54, %v8254_v9  ;;  %v8943_v6 = vadd.f32 %v2061_v20, %v8917_v49  ;;  %v4989_v53 = vld [vmem:[%s10807_s3 + $0x640] sm:$0xff] }
 0x20b   :  { %3581 = vmatprep.mubr.bf16.mxu0 %v2387_v26  ;;  %v8946_v38 = vadd.f32 %v2058_v1, %v8904_v8  ;;  %v2057_v55 = vmul.f32 %v4989_v53, %v8245_v47  ;;  %v8956_v54 = vadd.f32 %v2065_v45, %v8917_v49  ;;  %v2064_v1 = vmul.f32 %v4990_v2, %v8254_v9 }
 0x20c   :  { %v8959_v26 = vadd.f32 %v2053_v44, %v8904_v8  ;;  %v8962_v20 = vadd.f32 %v2060_v14, %v8917_v49  ;;  %v8969_v53 = vsub.f32 %v7949_v37, %v1819_v46  ;;  %v11041_v44 = vld [vmem:[#allocation43_spill] sm:$0xff]  ;;  %3277 = vmatpush1.bf16.msra.mxu1 %v4810_v41  ;;  %v11042_v45 = vpack.c.bf16 %v8830_v0, %v8827_v21 }
 0x20d   :  { %v8974_v16 = vadd.f32 %v2057_v55, %v8904_v8  ;;  %v1823_v14 = vmul.f32 %v8262_v48, %v11041_v44  ;;  %v8983_v35 = vadd.f32 %v2064_v1, %v8917_v49  ;;  %v4991_v46 = vld [vmem:[%s10807_s3 + $0x6d0] sm:$0xff]  ;;  %v4993_v1 = vld [vmem:[%s10807_s3 + $0x6c8] sm:$0xff] }
 0x20e   :  { %v2075_v2 = vmul.f32 %v4991_v46, %v8262_v48  ;;  %v4992_v44 = vld [vmem:[%s10807_s3 + $0x6f0] sm:$0xff]  ;;  %v2074_v51 = vmul.f32 %v4993_v1, %v8262_v48  ;;  %v4994_v46 = vld [vmem:[%s10807_s3 + $0x6e8] sm:$0xff]  ;;  %v2040_v1 = vmul.f32 %v4995_v56, %v8221_v42 }
 0x20f   :  { %v8990_v55 = vsub.f32 %v7949_v37, %v1823_v14  ;;  %v2079_v59 = vmul.f32 %v4992_v44, %v8262_v48  ;;  %v2078_v14 = vmul.f32 %v4994_v46, %v8262_v48  ;;  %v2394_v44 = vpack.c.bf16 %v8886_v50, %v8883_v39  ;;  %v4996_v41 = vld [vmem:[%s10807_s3 + $0x5f0] sm:$0xff] }
 0x210   :  { %3196 = vmatmul.mubr.bf16.gmra.mrb[44].mxu1 %v11042_v45  ;;  %v2047_v3 = vmul.f32 %v4996_v41, %v8233_v63  ;;  %v11043_v50 = vpack.c.bf16 %v8839_v60, %v8836_v52  ;;  %v2249_v45 = vadd.f32 %v8878_v15, %v8816_v17  ;;  %v2264_v52 = vadd.f32 %v2040_v1, %v8914_v28  ;;  %v4999_v15 = vld [vmem:[%s10807_s3 + $0x5d8] sm:$0xff]  ;;  %v5000_v41 = vld [vmem:[%s10807_s3 + $0x610] sm:$0xff] }
 0x211   :  { %3205 = vmatprep.mubr.bf16.mxu1 %v2390_v29  ;;  %v2299_v21 = vadd.f32 %v2075_v2, %v8990_v55  ;;  %v9021_v0 = vadd.f32 %v2079_v59, %v8990_v55  ;;  %v9024_v39 = vadd.f32 %v2074_v51, %v8990_v55  ;;  %v9027_v56 = vadd.f32 %v2078_v14, %v8990_v55  ;;  %v4997_v59 = vld [vmem:[%s10807_s3 + $0x560] sm:$0xff]  ;;  %v4998_v2 = vld [vmem:[%s10807_s3 + $0x598] sm:$0xff] }
 0x212   :  { %3582 = vmatmul.mubr.bf16.gmra.mrb[44].mxu0 %v11043_v50  ;;  %v2256_v29 = vadd.f32 %v8892_v23, %v8819_v22  ;;  %v2029_v51 = vmul.f32 %v4997_v59, %v8195_v27  ;;  %v2036_v14 = vmul.f32 %v4998_v2, %v8208_v19  ;;  %v2271_v60 = vadd.f32 %v2047_v3, %v8969_v53 }
 0x213   :  { %3591 = vmatprep.mubr.bf16.mxu0 %v2394_v44  ;;  %v2044_v23 = vmul.f32 %v4999_v15, %v8221_v42  ;;  %v2051_v50 = vmul.f32 %v5000_v41, %v8233_v63  ;;  %v5001_v15 = vld [vmem:[%s10807_s3 + $0x5b0] sm:$0xff]  ;;  %v5004_v41 = vld [vmem:[%s10807_s3 + $0x608] sm:$0xff] }
 0x214   :  { %v2253_v59 = vadd.f32 %v2029_v51, %v8816_v17  ;;  %v2260_v44 = vadd.f32 %v2036_v14, %v8819_v22  ;;  %v2389_v2 = vpack.c.bf16 %v2256_v29, %v2249_v45  ;;  %v2397_v46 = vpack.c.bf16 %v2271_v60, %v2264_v52  ;;  %v5002_v51 = vld [vmem:[%s10807_s3 + $0x5e8] sm:$0xff]  ;;  %v5003_v52 = vld [vmem:[%s10807_s3 + $0x5d0] sm:$0xff] }
 0x215   :  { %v2268_v1 = vadd.f32 %v2044_v23, %v8914_v28  ;;  %v2275_v3 = vadd.f32 %v2051_v50, %v8969_v53  ;;  %v2039_v27 = vmul.f32 %v5001_v15, %v8221_v42  ;;  %v2046_v14 = vmul.f32 %v5002_v51, %v8233_v63  ;;  %v5005_v15 = vld [vmem:[%s10807_s3 + $0x698] sm:$0xff] }
 0x216   :  { %v2393_v19 = vpack.c.bf16 %v2260_v44, %v2253_v59  ;;  %v2043_v60 = vmul.f32 %v5003_v52, %v8221_v42  ;;  %v2050_v50 = vmul.f32 %v5004_v41, %v8233_v63  ;;  %v2068_v51 = vmul.f32 %v5005_v15, %v7960_v61 }
 0x217   :  { %v2401_v23 = vpack.c.bf16 %v2275_v3, %v2268_v1  ;;  %v2263_v45 = vadd.f32 %v2039_v27, %v8914_v28  ;;  %v2270_v29 = vadd.f32 %v2046_v14, %v8969_v53  ;;  %v11046_v14 = vpack.c.bf16 %v8956_v54, %v8946_v38  ;;  %v5007_v38 = vld [vmem:[%s10807_s3 + $0x690] sm:$0xff] }
 0x218   :  { %3206 = vmatmul.mubr.bf16.gmra.mrb[48].mxu1 %v2389_v2  ;;  %v2267_v27 = vadd.f32 %v2043_v60, %v8914_v28  ;;  %v2274_v59 = vadd.f32 %v2050_v50, %v8969_v53  ;;  %v11045_v2 = vpack.c.bf16 %v8943_v6, %v8928_v36  ;;  %v2067_v54 = vmul.f32 %v5007_v38, %v7960_v61  ;;  %v5008_v60 = vld [vmem:[%s10807_s3 + $0x18] sm:$0xff]  ;;  %v5015_v38 = vld [vmem:[%s10807_s3 + $0x30] sm:$0xff] }
 0x219   :  { %3215 = vmatprep.mubr.bf16.mxu1 %v2397_v46  ;;  %v11044_v46 = vld [vmem:[#allocation51_spill] sm:$0xff]  ;;  %v2396_v44 = vpack.c.bf16 %v2270_v29, %v2263_v45  ;;  %v11047_v29 = vpack.c.bf16 %v8962_v20, %v8959_v26  ;;  %v1860_v41 = vmul.f32 %v5008_v60, %v7980_v24 }
 0x21a   :  { %3592 = vmatmul.mubr.bf16.gmra.mrb[48].mxu0 %v2393_v19  ;;  %v1822_v19 = vmul.f32 %v7960_v61, %v11044_v46  ;;  %v2400_v3 = vpack.c.bf16 %v2274_v59, %v2267_v27  ;;  %v5009_v26 = vld [vmem:[%s10807_s3 + $0x50] sm:$0xff]  ;;  %v11049_v27 = vld [vmem:[#allocation10_spill] sm:$0xff] }
 0x21b   :  { %3601 = vmatprep.mubr.bf16.mxu0 %v2401_v23  ;;  %v5006_v23 = vld [vmem:[%s10807_s3 + $0x6b8] sm:$0xff]  ;;  %v1867_v20 = vmul.f32 %v5009_v26, %v7987_v5  ;;  %v11052_v26 = vld [vmem:[#allocation15_spill] sm:$0xff] }
 0x21c   :  { %v9081_v1 = vsub.f32 %v7949_v37, %v1822_v19  ;;  %v2072_v36 = vmul.f32 %v5006_v23, %v7960_v61  ;;  %v2084_v19 = vadd.f32 %v1860_v41, %v8002_v30  ;;  %v5148_v41 = vmov 0  }
 0x21d   :  { %v2091_v59 = vadd.f32 %v1867_v20, %v11049_v27 }
 0x21e   :  { %v2292_v37 = vadd.f32 %v2068_v51, %v9081_v1  ;;  %v2296_v6 = vadd.f32 %v2072_v36, %v9081_v1  ;;  %v2291_v50 = vadd.f32 %v2067_v54, %v9081_v1  ;;  %v5012_v51 = vld [vmem:[%s10807_s3 + $0x48] sm:$0xff]  ;;  %v11051_v36 = vld [vmem:[#allocation11_spill] sm:$0xff]  ;;  %v1863_v54 = vmul.f32 %v5015_v38, %v7980_v24 }
 0x21f   :  { %v11056_v38 = vld [vmem:[#allocation30_spill] sm:$0xff] }
 0x220   :  { %3216 = vmatmul.mubr.bf16.gmra.mrb[52].mxu1 %v2396_v44  ;;  %v2411_v45 = vpack.c.bf16 %v2299_v21, %v2292_v37  ;;  %v2415_v52 = vpack.c.bf16 %v9021_v0, %v2296_v6  ;;  %v11048_v21 = vpack.c.bf16 %v8983_v35, %v8974_v16  ;;  %v5010_v0 = vld [vmem:[%s10807_s3 + $0x6b0] sm:$0xff]  ;;  %v11050_v37 = vld [vmem:[#allocation9_spill] sm:$0xff] }
 0x221   :  { %3225 = vmatprep.mubr.bf16.mxu1 %v11045_v2  ;;  %v2071_v46 = vmul.f32 %v5010_v0, %v7960_v61  ;;  %v2308_v2 = vpack.c.bf16 %v2091_v59, %v2084_v19  ;;  %v5011_v35 = vld [vmem:[%s10807_s3 + $0x10] sm:$0xff]  ;;  %v2087_v0 = vadd.f32 %v1863_v54, %v8002_v30 }
 0x222   :  { %3602 = vmatmul.mubr.bf16.gmra.mrb[52].mxu0 %v2400_v3  ;;  %v2410_v3 = vpack.c.bf16 %v9024_v39, %v2291_v50  ;;  %v1859_v15 = vmul.f32 %v5011_v35, %v7980_v24  ;;  %v5013_v39 = vld [vmem:[%s10807_s3 + $0x88] sm:$0xff]  ;;  %v11054_v35 = vld [vmem:[#allocation12_spill] sm:$0xff] }
 0x223   :  { %3611 = vmatprep.mubr.bf16.mxu0 %v11046_v14  ;;  %v2295_v44 = vadd.f32 %v2071_v46, %v9081_v1  ;;  %v1866_v14 = vmul.f32 %v5012_v51, %v7987_v5  ;;  %v1874_v23 = vmul.f32 %v5013_v39, %v11050_v37  ;;  %v5021_v39 = vld [vmem:[%s10807_s3 + $0xa0] sm:$0xff] }
 0x225   :  { %v2414_v16 = vpack.c.bf16 %v9027_v56, %v2295_v44  ;;  %v5014_v56 = vld [vmem:[%s10807_s3 + $0xc0] sm:$0xff]  ;;  %v2098_v20 = vadd.f32 %v1874_v23, %v11052_v26  ;;  %v1877_v23 = vmul.f32 %v5021_v39, %v11050_v37 }
 0x226   :  { %v1881_v6 = vmul.f32 %v5014_v56, %v11051_v36  ;;  %v5017_v44 = vld [vmem:[%s10807_s3 + $0x80] sm:$0xff]  ;;  %v5022_v56 = vld [vmem:[%s10807_s3 + $0xd8] sm:$0xff] }
 0x227   :  { %v5029_v39 = vld [vmem:[%s10807_s3 + $0x160] sm:$0xff] }
 0x228   :  { %3226 = vmatmul.mubr.bf16.gmra.mrb[56].mxu1 %v11047_v29  ;;  %v2090_v29 = vadd.f32 %v1866_v14, %v11049_v27 }
 0x229   :  { %3235 = vmatprep.mubr.bf16.mxu1 %v2411_v45  ;;  %v2083_v45 = vadd.f32 %v1859_v15, %v8002_v30  ;;  %v5019_v30 = vld [vmem:[%s10807_s3 + $0xf8] sm:$0xff] }
 0x22a   :  { %3612 = vmatmul.mubr.bf16.gmra.mrb[56].mxu0 %v11048_v21  ;;  %v11053_v21 = vld [vmem:[#allocation17_spill] sm:$0xff] }
 0x22b   :  { %3621 = vmatprep.mubr.bf16.mxu0 %v2415_v52  ;;  %v5016_v52 = vld [vmem:[%s10807_s3 + $0x68] sm:$0xff]  ;;  %v2105_v50 = vadd.f32 %v1881_v6, %v11053_v21  ;;  %v2307_v19 = vpack.c.bf16 %v2090_v29, %v2083_v45  ;;  %v1884_v6 = vmul.f32 %v5022_v56, %v11051_v36  ;;  %v11055_v45 = vld [vmem:[#allocation27_spill] sm:$0xff] }
 0x22c   :  { %v1870_v60 = vmul.f32 %v5016_v52, %v7987_v5  ;;  %v1873_v5 = vmul.f32 %v5017_v44, %v11050_v37  ;;  %v2101_v52 = vadd.f32 %v1877_v23, %v11052_v26  ;;  %v5023_v37 = vld [vmem:[%s10807_s3 + $0xf0] sm:$0xff] }
 0x22d   :  { %v2315_v59 = vpack.c.bf16 %v2105_v50, %v2098_v20  ;;  %v1887_v20 = vmul.f32 %v5023_v37, %v8050_v40  ;;  %v5032_v37 = vld [vmem:[%s10807_s3 + $0x180] sm:$0xff] }
 0x22e   :  { %v2094_v46 = vadd.f32 %v1870_v60, %v11049_v27  ;;  %v1888_v27 = vmul.f32 %v5019_v30, %v8050_v40  ;;  %v2097_v51 = vadd.f32 %v1873_v5, %v11052_v26  ;;  %v2108_v60 = vadd.f32 %v1884_v6, %v11053_v21  ;;  %v5025_v26 = vld [vmem:[%s10807_s3 + $0x110] sm:$0xff] }
 0x230   :  { %3236 = vmatmul.mubr.bf16.gmra.mrb[60].mxu1 %v2410_v3  ;;  %v2311_v24 = vpack.c.bf16 %v2094_v46, %v2087_v0  ;;  %v5018_v3 = vld [vmem:[%s10807_s3 + $0xb8] sm:$0xff]  ;;  %v2112_v29 = vadd.f32 %v1888_v27, %v11055_v45  ;;  %v2318_v44 = vpack.c.bf16 %v2108_v60, %v2101_v52  ;;  %v11058_v27 = vld [vmem:[#allocation14_spill] sm:$0xff] }
 0x231   :  { %3278 = vmatprep.mubr.bf16.mxu1 %v2308_v2  ;;  %v1880_v2 = vmul.f32 %v5018_v3, %v11051_v36  ;;  %v5024_v36 = vld [vmem:[%s10807_s3 + $0x128] sm:$0xff] }
 0x232   :  { %3622 = vmatmul.mubr.bf16.gmra.mrb[60].mxu0 %v2414_v16  ;;  %v5020_v16 = vld [vmem:[%s10807_s3 + $0x130] sm:$0xff]  ;;  %v1894_v0 = vmul.f32 %v5024_v36, %v11054_v35  ;;  %v5027_v3 = vld [vmem:[%s10807_s3 + $0x168] sm:$0xff] }
 0x233   :  { %3664 = vmatprep.mubr.bf16.mxu0 %v5148_v41  ;;  %v1895_v15 = vmul.f32 %v5020_v16, %v11054_v35  ;;  %v2104_v14 = vadd.f32 %v1880_v2, %v11053_v21  ;;  %v1891_v21 = vmul.f32 %v5025_v26, %v8050_v40  ;;  %v11057_v2 = vld [vmem:[#allocation13_spill] sm:$0xff] }
 0x234   :  { %v2118_v5 = vadd.f32 %v1894_v0, %v11056_v38  ;;  %v1902_v30 = vmul.f32 %v5027_v3, %v11057_v2  ;;  %v5028_v40 = vld [vmem:[%s10807_s3 + $0x1a0] sm:$0xff]  ;;  %v1901_v23 = vmul.f32 %v5029_v39, %v11057_v2  ;;  %v5034_v0 = vld [vmem:[%s10807_s3 + $0x670] sm:$0xff] }
 0x235   :  { %v2119_v54 = vadd.f32 %v1895_v15, %v11056_v38  ;;  %v2314_v50 = vpack.c.bf16 %v2104_v14, %v2097_v51  ;;  %v1909_v16 = vmul.f32 %v5028_v40, %v11058_v27  ;;  %v2115_v15 = vadd.f32 %v1891_v21, %v11055_v45  ;;  %v5035_v21 = vld [vmem:[%s10807_s3 + $0x630] sm:$0xff] }
 0x236   :  { %v2126_v51 = vadd.f32 %v1902_v30, %v8294_v25  ;;  %v5038_v30 = vld [vmem:[%s10807_s3 + $0x650] sm:$0xff] }
 0x237   :  { %v2322_v46 = vpack.c.bf16 %v2119_v54, %v2112_v29  ;;  %v2133_v14 = vadd.f32 %v1909_v16, %v8297_v7  ;;  %v5031_v54 = vld [vmem:[%s10807_s3 + $0x638] sm:$0xff]  ;;  %v2059_v40 = vmul.f32 %v5038_v30, %v8245_v47  ;;  %v5048_v30 = vld [vmem:[%s10807_s3 + $0x1f0] sm:$0xff] }
 0x238   :  { %3279 = vmatmul.mubr.bf16.vlgmr.msra.gmra.mrb[0].mxu1 %v2307_v19  ;;  %v2111_v19 = vadd.f32 %v1887_v20, %v11055_v45  ;;  %v5030_v45 = vld [vmem:[%s10807_s3 + $0x198] sm:$0xff]  ;;  %v2056_v52 = vmul.f32 %v5031_v54, %v8245_v47  ;;  %v1905_v20 = vmul.f32 %v5032_v37, %v11057_v2 }
 0x239   :  { %3288 = vmatprep.mubr.bf16.mxu1 %v2315_v59  ;;  %v5026_v59 = vld [vmem:[%s10807_s3 + $0x148] sm:$0xff]  ;;  %v1908_v29 = vmul.f32 %v5030_v45, %v11058_v27  ;;  %v2329_v60 = vpack.c.bf16 %v2133_v14, %v2126_v51 }
 0x23a   :  { %4453 = vmatmul.mubr.msk.bf16.vlgmr.msra.gmra.mrb[0].mxu0 %vm292_vm0, %v2311_v24  ;;  %v1898_v24 = vmul.f32 %v5026_v59, %v11054_v35  ;;  %v2321_v56 = vpack.c.bf16 %v2118_v5, %v2111_v19  ;;  %v9250_v26 = vadd.f32 %v2056_v52, %v8904_v8  ;;  %v2055_v59 = vmul.f32 %v5035_v21, %v8245_v47  ;;  %v5037_v5 = vld [vmem:[%s10807_s3 + $0x1d8] sm:$0xff]  ;;  %v5041_v47 = vld [vmem:[%s10807_s3 + $0x6e0] sm:$0xff] }
 0x23b   :  { %3674 = vmatprep.mubr.bf16.mxu0 %v5148_v41  ;;  %v2132_v19 = vadd.f32 %v1908_v29, %v8297_v7  ;;  %v1916_v3 = vmul.f32 %v5037_v5, %v8093_v62  ;;  %v2077_v39 = vmul.f32 %v5041_v47, %v8262_v48  ;;  %v5042_v52 = vld [vmem:[%s10807_s3 + $0x6d8] sm:$0xff] }
 0x23c   :  { %v2122_v35 = vadd.f32 %v1898_v24, %v11056_v38  ;;  %v2125_v38 = vadd.f32 %v1901_v23, %v8294_v25  ;;  %v5036_v24 = vld [vmem:[%s10807_s3 + $0x668] sm:$0xff]  ;;  %v9280_v51 = vadd.f32 %v2055_v59, %v8904_v8 }
 0x23e   :  { %v2325_v6 = vpack.c.bf16 %v2122_v35, %v2115_v15  ;;  %v5040_v15 = vld [vmem:[%s10807_s3 + $0x210] sm:$0xff]  ;;  %v2328_v21 = vpack.c.bf16 %v2132_v19, %v2125_v38  ;;  %v5047_v19 = vld [vmem:[%s10807_s3 + $0x280] sm:$0xff] }
 0x23f   :  { %v1923_v35 = vmul.f32 %v5040_v15, %v8105_v13 }
 0x240   :  { %3289 = vmatmul.mubr.bf16.gmra.mrb[4].mxu1 %v2314_v50  ;;  %v5033_v50 = vld [vmem:[%s10807_s3 + $0x1b8] sm:$0xff] }
 0x241   :  { %3298 = vmatprep.mubr.bf16.mxu1 %v2322_v46  ;;  %v1912_v36 = vmul.f32 %v5033_v50, %v11058_v27  ;;  %v2063_v46 = vmul.f32 %v5034_v0, %v8254_v9  ;;  %v5039_v27 = vld [vmem:[%s10807_s3 + $0x688] sm:$0xff]  ;;  %v2147_v29 = vadd.f32 %v1923_v35, %v8356_v31  ;;  %v5043_v50 = vld [vmem:[%s10807_s3 + $0x6f8] sm:$0xff] }
 0x242   :  { %4454 = vmatmul.mubr.msk.bf16.gmra.mrb[4].mxu0 %vm292_vm0, %v2318_v44  ;;  %v2062_v44 = vmul.f32 %v5036_v24, %v8254_v9  ;;  %v2066_v16 = vmul.f32 %v5039_v27, %v8254_v9  ;;  %v2140_v9 = vadd.f32 %v1916_v3, %v8334_v32  ;;  %v2080_v0 = vmul.f32 %v5043_v50, %v8262_v48  ;;  %v5049_v27 = vld [vmem:[%s10807_s3 + $0x228] sm:$0xff] }
 0x243   :  { %3684 = vmatprep.mubr.bf16.mxu0 %v5148_v41  ;;  %v9265_v2 = vadd.f32 %v2063_v46, %v8917_v49 }
 0x244   :  { %v9283_v14 = vadd.f32 %v2062_v44, %v8917_v49  ;;  %v9297_v45 = vadd.f32 %v2066_v16, %v8917_v49  ;;  %v2136_v49 = vadd.f32 %v1912_v36, %v8297_v7  ;;  %v9322_v59 = vadd.f32 %v2080_v0, %v8990_v55  ;;  %v5044_v7 = vld [vmem:[%s10807_s3 + $0x1d0] sm:$0xff] }
 0x245   :  { %v2406_v23 = vpack.c.bf16 %v9265_v2, %v9250_v26  ;;  %v2336_v24 = vpack.c.bf16 %v2147_v29, %v2140_v9  ;;  %v1937_v44 = vmul.f32 %v5047_v19, %v8345_v43  ;;  %v1926_v16 = vmul.f32 %v5049_v27, %v8105_v13 }
 0x246   :  { %v2405_v54 = vpack.c.bf16 %v9283_v14, %v9280_v51 }
 0x247   :  { %v2161_v35 = vadd.f32 %v1937_v44, %v8417_v33 }
 0x248   :  { %3299 = vmatmul.mubr.bf16.gmra.mrb[8].mxu1 %v2321_v56  ;;  %v9294_v56 = vadd.f32 %v2059_v40, %v8904_v8  ;;  %v2076_v8 = vmul.f32 %v5042_v52, %v8262_v48  ;;  %v5045_v48 = vld [vmem:[%s10807_s3 + $0x208] sm:$0xff]  ;;  %v1919_v40 = vmul.f32 %v5048_v30, %v8093_v62  ;;  %v5050_v52 = vld [vmem:[%s10807_s3 + $0x240] sm:$0xff] }
 0x249   :  { %3308 = vmatprep.mubr.bf16.mxu1 %v2329_v60  ;;  %v2129_v60 = vadd.f32 %v1905_v20, %v8294_v25  ;;  %v1915_v20 = vmul.f32 %v5044_v7, %v8093_v62  ;;  %v1922_v36 = vmul.f32 %v5045_v48, %v8105_v13  ;;  %v1929_v13 = vmul.f32 %v5050_v52, %v8341_v10  ;;  %v5055_v7 = vld [vmem:[%s10807_s3 + $0x298] sm:$0xff]  ;;  %v11060_v52 = vld [vmem:[#allocation33_spill] sm:$0xff] }
 0x24a   :  { %4455 = vmatmul.mubr.msk.bf16.gmra.mrb[8].mxu0 %vm292_vm0, %v2325_v6  ;;  %v9304_v6 = vadd.f32 %v2077_v39, %v8990_v55  ;;  %v2409_v37 = vpack.c.bf16 %v9297_v45, %v9294_v56  ;;  %v9319_v46 = vadd.f32 %v2076_v8, %v8990_v55  ;;  %v5046_v55 = vld [vmem:[%s10807_s3 + $0x248] sm:$0xff]  ;;  %v2143_v47 = vadd.f32 %v1919_v40, %v8334_v32  ;;  %v5051_v8 = vld [vmem:[%s10807_s3 + $0x278] sm:$0xff]  ;;  %v5059_v40 = vld [vmem:[%s10807_s3 + $0x360] sm:$0xff] }
 0x24b   :  { %3694 = vmatprep.mubr.bf16.mxu0 %v5148_v41  ;;  %v2332_v25 = vpack.c.bf16 %v2136_v49, %v2129_v60  ;;  %v1930_v38 = vmul.f32 %v5046_v55, %v8341_v10  ;;  %v2139_v5 = vadd.f32 %v1915_v20, %v8334_v32  ;;  %v2146_v3 = vadd.f32 %v1922_v36, %v8356_v31  ;;  %v5052_v32 = vld [vmem:[%s10807_s3 + $0x2b8] sm:$0xff]  ;;  %v5053_v49 = vld [vmem:[%s10807_s3 + $0x2f0] sm:$0xff] }
 0x24c   :  { %v2150_v39 = vadd.f32 %v1926_v16, %v8356_v31  ;;  %v1936_v60 = vmul.f32 %v5051_v8, %v8345_v43  ;;  %v1944_v31 = vmul.f32 %v5052_v32, %v8371_v11  ;;  %v1951_v50 = vmul.f32 %v5053_v49, %v8375_v57  ;;  %v5062_v49 = vld [vmem:[%s10807_s3 + $0x320] sm:$0xff] }
 0x24d   :  { %v2154_v15 = vadd.f32 %v1930_v38, %v8410_v4  ;;  %v2335_v9 = vpack.c.bf16 %v2146_v3, %v2139_v5  ;;  %v2153_v0 = vadd.f32 %v1929_v13, %v8410_v4  ;;  %v1940_v20 = vmul.f32 %v5055_v7, %v8345_v43  ;;  %v5056_v5 = vld [vmem:[%s10807_s3 + $0x2b0] sm:$0xff]  ;;  %v5057_v3 = vld [vmem:[%s10807_s3 + $0x2e8] sm:$0xff] }
 0x24e   :  { %v2339_v62 = vpack.c.bf16 %v2150_v39, %v2143_v47  ;;  %v2168_v48 = vadd.f32 %v1944_v31, %v8458_v34  ;;  %v2175_v36 = vadd.f32 %v1951_v50, %v8464_v58  ;;  %v1943_v43 = vmul.f32 %v5056_v5, %v8371_v11  ;;  %v5061_v39 = vld [vmem:[%s10807_s3 + $0x308] sm:$0xff]  ;;  %v5063_v50 = vld [vmem:[%s10807_s3 + $0x358] sm:$0xff] }
 0x24f   :  { %v2343_v29 = vpack.c.bf16 %v2161_v35, %v2154_v15  ;;  %v2164_v38 = vadd.f32 %v1940_v20, %v8417_v33  ;;  %v1950_v30 = vmul.f32 %v5057_v3, %v8375_v57  ;;  %v1965_v27 = vmul.f32 %v5059_v40, %v8445_v12  ;;  %v5060_v35 = vld [vmem:[%s10807_s3 + $0x2d0] sm:$0xff]  ;;  %v11064_v5 = vld [vmem:[#allocation36_spill] sm:$0xff] }
 0x250   :  { %3309 = vmatmul.mubr.bf16.gmra.mrb[12].mxu1 %v2328_v21  ;;  %v2160_v21 = vadd.f32 %v1936_v60, %v8417_v33  ;;  %v2350_v44 = vpack.c.bf16 %v2175_v36, %v2168_v48  ;;  %v2167_v16 = vadd.f32 %v1943_v43, %v8458_v34  ;;  %v1947_v47 = vmul.f32 %v5060_v35, %v8371_v11  ;;  %v5066_v36 = vld [vmem:[%s10807_s3 + $0x340] sm:$0xff]  ;;  %v5068_v40 = vld [vmem:[%s10807_s3 + $0x390] sm:$0xff] }
 0x251   :  { %3318 = vmatprep.mubr.bf16.mxu1 %v2336_v24  ;;  %v5054_v24 = vld [vmem:[%s10807_s3 + $0x260] sm:$0xff]  ;;  %v2174_v15 = vadd.f32 %v1950_v30, %v8464_v58  ;;  %v2189_v13 = vadd.f32 %v1965_v27, %v11060_v52  ;;  %v5069_v27 = vld [vmem:[%s10807_s3 + $0x3c8] sm:$0xff]  ;;  %v11065_v35 = vld [vmem:[#allocation19_spill] sm:$0xff] }
 0x252   :  { %4456 = vmatmul.mubr.msk.bf16.gmra.mrb[12].mxu0 %vm292_vm0, %v2332_v25  ;;  %v1933_v25 = vmul.f32 %v5054_v24, %v8341_v10  ;;  %v2342_v19 = vpack.c.bf16 %v2160_v21, %v2153_v0  ;;  %v2171_v8 = vadd.f32 %v1947_v47, %v8458_v34  ;;  %v1964_v0 = vmul.f32 %v5063_v50, %v8445_v12  ;;  %v5064_v34 = vld [vmem:[%s10807_s3 + $0x398] sm:$0xff]  ;;  %v5065_v24 = vld [vmem:[%s10807_s3 + $0x3d0] sm:$0xff] }
 0x253   :  { %3704 = vmatprep.mubr.bf16.mxu0 %v5148_v41  ;;  %v2349_v32 = vpack.c.bf16 %v2174_v15, %v2167_v16  ;;  %v5070_v15 = vld [vmem:[%s10807_s3 + $0x408] sm:$0xff] }
 0x254   :  { %v2157_v55 = vadd.f32 %v1933_v25, %v8410_v4  ;;  %v5058_v4 = vld [vmem:[%s10807_s3 + $0x328] sm:$0xff]  ;;  %v2188_v48 = vadd.f32 %v1964_v0, %v11060_v52  ;;  %v1986_v47 = vmul.f32 %v5070_v15, %v11065_v35 }
 0x255   :  { %v1958_v33 = vmul.f32 %v5058_v4, %v8441_v18  ;;  %v11062_v25 = vld [vmem:[#allocation18_spill] sm:$0xff] }
 0x256   :  { %v2346_v10 = vpack.c.bf16 %v2164_v38, %v2157_v55  ;;  %v1979_v7 = vmul.f32 %v5065_v24, %v11062_v25  ;;  %v1961_v55 = vmul.f32 %v5066_v36, %v8441_v18  ;;  %v5067_v38 = vld [vmem:[%s10807_s3 + $0x378] sm:$0xff]  ;;  %v1978_v16 = vmul.f32 %v5069_v27, %v11062_v25  ;;  %v5074_v24 = vld [vmem:[%s10807_s3 + $0x400] sm:$0xff] }
 0x257   :  { %v11069_v36 = vld [vmem:[#allocation21_spill] sm:$0xff] }
 0x258   :  { %3319 = vmatmul.mubr.bf16.gmra.mrb[16].mxu1 %v2335_v9  ;;  %v1954_v9 = vmul.f32 %v5061_v39, %v8375_v57  ;;  %v1957_v57 = vmul.f32 %v5062_v49, %v8441_v18  ;;  %v2203_v43 = vadd.f32 %v1979_v7, %v11064_v5  ;;  %v5071_v39 = vld [vmem:[%s10807_s3 + $0x440] sm:$0xff]  ;;  %v11068_v49 = vld [vmem:[#allocation38_spill] sm:$0xff]  ;;  %v5075_v7 = vld [vmem:[%s10807_s3 + $0x438] sm:$0xff] }
 0x259   :  { %3328 = vmatprep.mubr.bf16.mxu1 %v2343_v29  ;;  %v11059_v29 = vld [vmem:[#allocation32_spill] sm:$0xff] }
 0x25a   :  { %4457 = vmatmul.mubr.msk.bf16.gmra.mrb[16].mxu0 %vm292_vm0, %v2339_v62  ;;  %v2182_v62 = vadd.f32 %v1958_v33, %v11059_v29  ;;  %v2178_v60 = vadd.f32 %v1954_v9, %v8464_v58  ;;  %v11061_v58 = vld [vmem:[#allocation16_spill] sm:$0xff]  ;;  %v2181_v20 = vadd.f32 %v1957_v57, %v11059_v29  ;;  %v2185_v3 = vadd.f32 %v1961_v55, %v11059_v29 }
 0x25b   :  { %3714 = vmatprep.mubr.bf16.mxu0 %v5148_v41  ;;  %v1972_v21 = vmul.f32 %v5064_v34, %v11061_v58  ;;  %v11066_v9 = vld [vmem:[#allocation20_spill] sm:$0xff] }
 0x25c   :  { %v2357_v31 = vpack.c.bf16 %v2189_v13, %v2182_v62  ;;  %v2353_v11 = vpack.c.bf16 %v2178_v60, %v2171_v8  ;;  %v2356_v4 = vpack.c.bf16 %v2188_v48, %v2181_v20  ;;  %v1993_v29 = vmul.f32 %v5071_v39, %v11066_v9  ;;  %v5072_v13 = vld [vmem:[%s10807_s3 + $0x3b0] sm:$0xff]  ;;  %v5073_v60 = vld [vmem:[%s10807_s3 + $0x3e8] sm:$0xff]  ;;  %v5076_v48 = vld [vmem:[%s10807_s3 + $0x478] sm:$0xff] }
 0x25d   :  { %v1975_v8 = vmul.f32 %v5072_v13, %v11061_v58  ;;  %v1992_v20 = vmul.f32 %v5075_v7, %v11066_v9  ;;  %v2000_v55 = vmul.f32 %v5076_v48, %v11069_v36  ;;  %v5080_v39 = vld [vmem:[%s10807_s3 + $0x470] sm:$0xff] }
 0x25e   :  { %v2217_v57 = vadd.f32 %v1993_v29, %v11068_v49  ;;  %v5081_v29 = vld [vmem:[%s10807_s3 + $0x4a8] sm:$0xff]  ;;  %v11073_v13 = vld [vmem:[#allocation23_spill] sm:$0xff] }
 0x260   :  { %3329 = vmatmul.mubr.bf16.gmra.mrb[20].mxu1 %v2342_v19  ;;  %v1968_v19 = vmul.f32 %v5067_v38, %v8445_v12  ;;  %v1971_v12 = vmul.f32 %v5068_v40, %v11061_v58  ;;  %v5077_v38 = vld [vmem:[%s10807_s3 + $0x4b0] sm:$0xff]  ;;  %v11072_v40 = vld [vmem:[#allocation41_spill] sm:$0xff] }
 0x261   :  { %3338 = vmatprep.mubr.bf16.mxu1 %v2350_v44  ;;  %v11063_v44 = vld [vmem:[#allocation34_spill] sm:$0xff] }
 0x262   :  { %4458 = vmatmul.mubr.msk.bf16.gmra.mrb[20].mxu0 %vm292_vm0, %v2346_v10  ;;  %v2196_v10 = vadd.f32 %v1972_v21, %v11063_v44  ;;  %v2192_v30 = vadd.f32 %v1968_v19, %v11060_v52  ;;  %v2195_v62 = vadd.f32 %v1971_v12, %v11063_v44  ;;  %v2202_v52 = vadd.f32 %v1978_v16, %v11064_v5  ;;  %v11070_v19 = vld [vmem:[#allocation22_spill] sm:$0xff] }
 0x263   :  { %3724 = vmatprep.mubr.bf16.mxu0 %v5148_v41  ;;  %v2199_v50 = vadd.f32 %v1975_v8, %v11063_v44  ;;  %v2007_v44 = vmul.f32 %v5077_v38, %v11070_v19  ;;  %v5086_v38 = vld [vmem:[%s10807_s3 + $0x4e0] sm:$0xff] }
 0x264   :  { %v2364_v33 = vpack.c.bf16 %v2203_v43, %v2196_v10  ;;  %v2360_v18 = vpack.c.bf16 %v2192_v30, %v2185_v3  ;;  %v2363_v34 = vpack.c.bf16 %v2202_v52, %v2195_v62  ;;  %v5078_v43 = vld [vmem:[%s10807_s3 + $0x420] sm:$0xff]  ;;  %v5079_v30 = vld [vmem:[%s10807_s3 + $0x458] sm:$0xff]  ;;  %v2006_v62 = vmul.f32 %v5081_v29, %v11070_v19  ;;  %v5082_v52 = vld [vmem:[%s10807_s3 + $0x4e8] sm:$0xff] }
 0x265   :  { %v1989_v3 = vmul.f32 %v5078_v43, %v11065_v35  ;;  %v2231_v12 = vadd.f32 %v2007_v44, %v11072_v40  ;;  %v2014_v8 = vmul.f32 %v5082_v52, %v11073_v13  ;;  %v5087_v44 = vld [vmem:[%s10807_s3 + $0x518] sm:$0xff]  ;;  %v11077_v43 = vld [vmem:[#allocation25_spill] sm:$0xff] }
 0x268   :  { %3339 = vmatmul.mubr.bf16.gmra.mrb[24].mxu1 %v2349_v32  ;;  %v1982_v32 = vmul.f32 %v5073_v60, %v11062_v25  ;;  %v1985_v25 = vmul.f32 %v5074_v24, %v11065_v35  ;;  %v5083_v60 = vld [vmem:[%s10807_s3 + $0x520] sm:$0xff]  ;;  %v11076_v24 = vld [vmem:[#allocation26_spill] sm:$0xff] }
 0x269   :  { %3348 = vmatprep.mubr.bf16.mxu1 %v2357_v31  ;;  %v11067_v31 = vld [vmem:[#allocation37_spill] sm:$0xff] }
 0x26a   :  { %4459 = vmatmul.mubr.msk.bf16.gmra.mrb[24].mxu0 %vm292_vm0, %v2353_v11  ;;  %v2210_v11 = vadd.f32 %v1986_v47, %v11067_v31  ;;  %v2206_v0 = vadd.f32 %v1982_v32, %v11064_v5  ;;  %v2209_v10 = vadd.f32 %v1985_v25, %v11067_v31  ;;  %v2216_v5 = vadd.f32 %v1992_v20, %v11068_v49  ;;  %v11074_v32 = vld [vmem:[#allocation24_spill] sm:$0xff] }
 0x26b   :  { %3734 = vmatprep.mubr.bf16.mxu0 %v5148_v41  ;;  %v2213_v27 = vadd.f32 %v1989_v3, %v11067_v31  ;;  %v2021_v31 = vmul.f32 %v5083_v60, %v11074_v32  ;;  %v5093_v60 = vld [vmem:[%s10807_s3 + $0x588] sm:$0xff] }
 0x26c   :  { %v2371_v21 = vpack.c.bf16 %v2217_v57, %v2210_v11  ;;  %v2367_v58 = vpack.c.bf16 %v2206_v0, %v2199_v50  ;;  %v2370_v15 = vpack.c.bf16 %v2216_v5, %v2209_v10  ;;  %v5084_v57 = vld [vmem:[%s10807_s3 + $0x490] sm:$0xff]  ;;  %v5085_v0 = vld [vmem:[%s10807_s3 + $0x4c8] sm:$0xff]  ;;  %v2020_v10 = vmul.f32 %v5087_v44, %v11074_v32  ;;  %v5088_v5 = vld [vmem:[%s10807_s3 + $0x558] sm:$0xff] }
 0x26d   :  { %v2003_v50 = vmul.f32 %v5084_v57, %v11069_v36  ;;  %v2245_v25 = vadd.f32 %v2021_v31, %v11076_v24  ;;  %v2028_v3 = vmul.f32 %v5088_v5, %v11077_v43  ;;  %v5094_v31 = vld [vmem:[%s10807_s3 + $0x5c8] sm:$0xff] }
 0x270   :  { %3349 = vmatmul.mubr.bf16.gmra.mrb[28].mxu1 %v2356_v4  ;;  %v1996_v4 = vmul.f32 %v5079_v30, %v11066_v9  ;;  %v1999_v9 = vmul.f32 %v5080_v39, %v11069_v36  ;;  %v5089_v30 = vld [vmem:[%s10807_s3 + $0x590] sm:$0xff] }
 0x271   :  { %3358 = vmatprep.mubr.bf16.mxu1 %v2364_v33  ;;  %v11071_v33 = vld [vmem:[#allocation39_spill] sm:$0xff] }
 0x272   :  { %4460 = vmatmul.mubr.msk.bf16.gmra.mrb[28].mxu0 %vm292_vm0, %v2360_v18  ;;  %v2224_v18 = vadd.f32 %v2000_v55, %v11071_v33  ;;  %v2220_v16 = vadd.f32 %v1996_v4, %v11068_v49  ;;  %v2223_v11 = vadd.f32 %v1999_v9, %v11071_v33  ;;  %v2230_v49 = vadd.f32 %v2006_v62, %v11072_v40  ;;  %v11078_v4 = vld [vmem:[#allocation29_spill] sm:$0xff] }
 0x273   :  { %3744 = vmatprep.mubr.bf16.mxu0 %v5148_v41  ;;  %v2227_v7 = vadd.f32 %v2003_v50, %v11071_v33  ;;  %v2035_v33 = vmul.f32 %v5089_v30, %v11078_v4  ;;  %v5101_v30 = vld [vmem:[%s10807_s3 + $0x618] sm:$0xff] }
 0x274   :  { %v2378_v47 = vpack.c.bf16 %v2231_v12, %v2224_v18  ;;  %v2374_v35 = vpack.c.bf16 %v2220_v16, %v2213_v27  ;;  %v2377_v48 = vpack.c.bf16 %v2230_v49, %v2223_v11  ;;  %v5090_v12 = vld [vmem:[%s10807_s3 + $0x500] sm:$0xff]  ;;  %v5091_v16 = vld [vmem:[%s10807_s3 + $0x538] sm:$0xff]  ;;  %v2042_v11 = vmul.f32 %v5094_v31, %v8221_v42 }
 0x275   :  { %v2017_v27 = vmul.f32 %v5090_v12, %v11073_v13  ;;  %v5095_v49 = vld [vmem:[%s10807_s3 + $0x600] sm:$0xff] }
 0x276   :  { %v2049_v57 = vmul.f32 %v5095_v49, %v8233_v63 }
 0x278   :  { %3359 = vmatmul.mubr.bf16.gmra.mrb[32].mxu1 %v2363_v34  ;;  %v2010_v34 = vmul.f32 %v5085_v0, %v11070_v19  ;;  %v2013_v19 = vmul.f32 %v5086_v38, %v11073_v13  ;;  %v5092_v13 = vld [vmem:[%s10807_s3 + $0x550] sm:$0xff] }
 0x279   :  { %3368 = vmatprep.mubr.bf16.mxu1 %v2371_v21  ;;  %v11075_v21 = vld [vmem:[#allocation42_spill] sm:$0xff] }
 0x27a   :  { %4461 = vmatmul.mubr.msk.bf16.gmra.mrb[32].mxu0 %vm292_vm0, %v2367_v58  ;;  %v2238_v58 = vadd.f32 %v2014_v8, %v11075_v21  ;;  %v2234_v20 = vadd.f32 %v2010_v34, %v11072_v40  ;;  %v2237_v18 = vadd.f32 %v2013_v19, %v11075_v21  ;;  %v2244_v40 = vadd.f32 %v2020_v10, %v11076_v24  ;;  %v5096_v34 = vld [vmem:[%s10807_s3 + $0x570] sm:$0xff]  ;;  %v5098_v19 = vld [vmem:[%s10807_s3 + $0x5c0] sm:$0xff]  ;;  %v5099_v10 = vld [vmem:[%s10807_s3 + $0x5f8] sm:$0xff] }
 0x27b   :  { %3754 = vmatprep.mubr.bf16.mxu0 %v5148_v41  ;;  %v2241_v39 = vadd.f32 %v2017_v27, %v11075_v21  ;;  %v2027_v8 = vmul.f32 %v5092_v13, %v11077_v43  ;;  %v2031_v21 = vmul.f32 %v5096_v34, %v11077_v43  ;;  %v2041_v44 = vmul.f32 %v5098_v19, %v8221_v42  ;;  %v5100_v43 = vld [vmem:[%s10807_s3 + $0x5e0] sm:$0xff] }
 0x27c   :  { %v2385_v55 = vpack.c.bf16 %v2245_v25, %v2238_v58  ;;  %v2381_v36 = vpack.c.bf16 %v2234_v20, %v2227_v7  ;;  %v2384_v29 = vpack.c.bf16 %v2244_v40, %v2237_v18  ;;  %v5097_v58 = vld [vmem:[%s10807_s3 + $0x5a8] sm:$0xff]  ;;  %v2266_v25 = vadd.f32 %v2042_v11, %v8914_v28 }
 0x27d   :  { %v2251_v50 = vadd.f32 %v2027_v8, %v8816_v17  ;;  %v2273_v7 = vadd.f32 %v2049_v57, %v8969_v53  ;;  %v2255_v20 = vadd.f32 %v2031_v21, %v8816_v17  ;;  %v2048_v5 = vmul.f32 %v5099_v10, %v8233_v63 }
 0x280   :  { %3369 = vmatmul.mubr.bf16.gmra.mrb[36].mxu1 %v2370_v15  ;;  %v2024_v15 = vmul.f32 %v5091_v16, %v11074_v32  ;;  %v2034_v32 = vmul.f32 %v5093_v60, %v11078_v4 }
 0x281   :  { %3378 = vmatprep.mubr.bf16.mxu1 %v2378_v47  ;;  %v2252_v47 = vadd.f32 %v2028_v3, %v8816_v17  ;;  %v2265_v17 = vadd.f32 %v2041_v44, %v8914_v28  ;;  %v2045_v3 = vmul.f32 %v5100_v43, %v8221_v42  ;;  %v5102_v42 = vld [vmem:[%s10807_s3 + $0x6a8] sm:$0xff] }
 0x282   :  { %4462 = vmatmul.mubr.msk.bf16.gmra.mrb[36].mxu0 %vm292_vm0, %v2374_v35  ;;  %v2259_v35 = vadd.f32 %v2035_v33, %v8819_v22  ;;  %v2248_v9 = vadd.f32 %v2024_v15, %v11076_v24  ;;  %v2258_v0 = vadd.f32 %v2034_v32, %v8819_v22  ;;  %v2038_v24 = vmul.f32 %v5097_v58, %v11078_v4 }
 0x283   :  { %3764 = vmatprep.mubr.bf16.mxu0 %v5148_v41  ;;  %v2052_v4 = vmul.f32 %v5101_v30, %v8233_v63  ;;  %v2269_v33 = vadd.f32 %v2045_v3, %v8914_v28  ;;  %v2070_v27 = vmul.f32 %v5102_v42, %v7960_v61 }
 0x284   :  { %v2392_v62 = vpack.c.bf16 %v2259_v35, %v2252_v47  ;;  %v2388_v52 = vpack.c.bf16 %v2248_v9, %v2241_v39 }
 0x285   :  { %v2276_v18 = vadd.f32 %v2052_v4, %v8969_v53  ;;  %v2294_v63 = vadd.f32 %v2070_v27, %v9081_v1 }
 0x287   :  { %v2402_v12 = vpack.c.bf16 %v2276_v18, %v2269_v33  ;;  %v2413_v28 = vpack.c.bf16 %v9304_v6, %v2294_v63 }
 0x288   :  { %3379 = vmatmul.mubr.bf16.gmra.mrb[40].mxu1 %v2377_v48  ;;  %v2262_v48 = vadd.f32 %v2038_v24, %v8819_v22  ;;  %v2272_v22 = vadd.f32 %v2048_v5, %v8969_v53  ;;  %v5103_v53 = vld [vmem:[%s10807_s3 + $0x6a0] sm:$0xff] }
 0x289   :  { %3388 = vmatprep.mubr.bf16.mxu1 %v2385_v55  ;;  %v2391_v55 = vpack.c.bf16 %v2258_v0, %v2251_v50  ;;  %v2069_v26 = vmul.f32 %v5103_v53, %v7960_v61 }
 0x28a   :  { %4463 = vmatmul.mubr.msk.bf16.gmra.mrb[40].mxu0 %vm292_vm0, %v2381_v36  ;;  %v2399_v36 = vpack.c.bf16 %v2273_v7, %v2266_v25  ;;  %v2395_v38 = vpack.c.bf16 %v2262_v48, %v2255_v20  ;;  %v2398_v40 = vpack.c.bf16 %v2272_v22, %v2265_v17 }
 0x28b   :  { %3774 = vmatprep.mubr.bf16.mxu0 %v5148_v41  ;;  %v2293_v2 = vadd.f32 %v2069_v26, %v9081_v1 }
 0x290   :  { %3389 = vmatmul.mubr.bf16.gmra.mrb[44].mxu1 %v2384_v29 }
 0x291   :  { %3398 = vmatprep.mubr.bf16.mxu1 %v2392_v62 }
 0x292   :  { %4464 = vmatmul.mubr.msk.bf16.gmra.mrb[44].mxu0 %vm292_vm0, %v2388_v52 }
 0x293   :  { %3784 = vmatprep.mubr.bf16.mxu0 %v5148_v41 }
 0x298   :  { %3399 = vmatmul.mubr.bf16.gmra.mrb[48].mxu1 %v2391_v55 }
 0x299   :  { %3408 = vmatprep.mubr.bf16.mxu1 %v2399_v36 }
 0x29a   :  { %4465 = vmatmul.mubr.msk.bf16.gmra.mrb[48].mxu0 %vm292_vm0, %v2395_v38 }
 0x29b   :  { %3794 = vmatprep.mubr.bf16.mxu0 %v5148_v41 }
 0x2a0   :  { %3409 = vmatmul.mubr.bf16.gmra.mrb[52].mxu1 %v2398_v40 }
 0x2a1   :  { %3418 = vmatprep.mubr.bf16.mxu1 %v2406_v23  ;;  %v5104_v23 = vld [vmem:[%s10807_s3 + $0x6c0] sm:$0xff] }
 0x2a2   :  { %4466 = vmatmul.mubr.msk.bf16.gmra.mrb[52].mxu0 %vm292_vm0, %v2402_v12  ;;  %v2073_v51 = vmul.f32 %v5104_v23, %v7960_v61 }
 0x2a3   :  { %3804 = vmatprep.mubr.bf16.mxu0 %v5148_v41 }
 0x2a4   :  { %v2297_v14 = vadd.f32 %v2073_v51, %v9081_v1 }
 0x2a6   :  { %v2416_v6 = vpack.c.bf16 %v9322_v59, %v2297_v14 }
 0x2a8   :  { %3419 = vmatmul.mubr.bf16.gmra.mrb[56].mxu1 %v2405_v54  ;;  %v2412_v54 = vpack.c.bf16 %v9319_v46, %v2293_v2 }
 0x2a9   :  { %3428 = vmatprep.mubr.bf16.mxu1 %v2413_v28 }
 0x2aa   :  { %4467 = vmatmul.mubr.msk.bf16.gmra.mrb[56].mxu0 %vm292_vm0, %v2409_v37 }
 0x2ab   :  { %3814 = vmatprep.mubr.bf16.mxu0 %v5148_v41 }
 0x2b0   :  { %3429 = vmatmul.mubr.bf16.gmra.mrb[60].mxu1 %v2412_v54 }
 0x2b2   :  { %4468 = vmatmul.mubr.msk.bf16.gmra.mrb[60].mxu0 %vm292_vm0, %v2416_v6 }
 0x30b   :  { %v3280_v56 = vpop.f32.mrb[0].mxu1 }
 0x30c   :  { %v3282_v45 = vpop.f32.mrb[1].mxu1 }
 0x30d   :  { %v3666_v37 = vpop.f32.mrb[0].mxu0  ;;  %v3284_v16 = vpop.f32.mrb[2].mxu1 }
 0x30e   :  { %v9666_v15 = vadd.f32 %v3666_v37, %v3280_v56  ;;  %v3668_v47 = vpop.f32.mrb[1].mxu0  ;;  %v3286_v35 = vpop.f32.mrb[3].mxu1 }
 0x30f   :  { %v9668_v61 = vadd.f32 %v3668_v47, %v3282_v45  ;;  %v3670_v41 = vpop.f32.mrb[2].mxu0 }
 0x310   :  { %v9670_v39 = vadd.f32 %v3670_v41, %v3284_v16  ;;  %v3672_v1 = vpop.f32.mrb[3].mxu0 }
 0x311   :  { %v9672_v46 = vadd.f32 %v3672_v1, %v3286_v35 }
 0x312   :  { %v3825_v3 = vadd.f32 %v9670_v39, %v9666_v15 }
 0x313   :  { %v3290_v9 = vpop.f32.mrb[4].mxu1  ;;  %v3862_v42 = vadd.f32 %v9672_v46, %v9668_v61 }
 0x314   :  { %v3292_v59 = vpop.f32.mrb[5].mxu1 }
 0x315   :  { %v3676_v29 = vpop.f32.mrb[4].mxu0  ;;  %v3294_v62 = vpop.f32.mrb[6].mxu1 }
 0x316   :  { %v9674_v52 = vadd.f32 %v3676_v29, %v3290_v9  ;;  %v3678_v13 = vpop.f32.mrb[5].mxu0  ;;  %v3296_v8 = vpop.f32.mrb[7].mxu1 }
 0x317   :  { %v9676_v60 = vadd.f32 %v3678_v13, %v3292_v59  ;;  %v3680_v32 = vpop.f32.mrb[6].mxu0 }
 0x318   :  { %v9678_v31 = vadd.f32 %v3680_v32, %v3294_v62  ;;  %v3682_v11 = vpop.f32.mrb[7].mxu0  ;;  %v3826_v18 = vadd.f32 %v9674_v52, %v3825_v3 }
 0x319   :  { %v9680_v49 = vadd.f32 %v3682_v11, %v3296_v8  ;;  %v3863_v23 = vadd.f32 %v9676_v60, %v3862_v42 }
 0x31a   :  { %v3827_v28 = vadd.f32 %v9678_v31, %v3826_v18 }
 0x31b   :  { %v3300_v57 = vpop.f32.mrb[8].mxu1  ;;  %v3864_v37 = vadd.f32 %v9680_v49, %v3863_v23 }
 0x31c   :  { %v3302_v50 = vpop.f32.mrb[9].mxu1 }
 0x31d   :  { %v3686_v0 = vpop.f32.mrb[8].mxu0  ;;  %v3304_v34 = vpop.f32.mrb[10].mxu1 }
 0x31e   :  { %v9682_v21 = vadd.f32 %v3686_v0, %v3300_v57  ;;  %v3688_v58 = vpop.f32.mrb[9].mxu0  ;;  %v3306_v24 = vpop.f32.mrb[11].mxu1 }
 0x31f   :  { %v9684_v25 = vadd.f32 %v3688_v58, %v3302_v50  ;;  %v3690_v7 = vpop.f32.mrb[10].mxu0 }
 0x320   :  { %v9686_v20 = vadd.f32 %v3690_v7, %v3304_v34  ;;  %v3692_v48 = vpop.f32.mrb[11].mxu0  ;;  %v3828_v54 = vadd.f32 %v9682_v21, %v3827_v28 }
 0x321   :  { %v9688_v55 = vadd.f32 %v3692_v48, %v3306_v24  ;;  %v3865_v41 = vadd.f32 %v9684_v25, %v3864_v37 }
 0x322   :  { %v3829_v47 = vadd.f32 %v9686_v20, %v3828_v54 }
 0x323   :  { %v3310_v36 = vpop.f32.mrb[12].mxu1  ;;  %v3866_v50 = vadd.f32 %v9688_v55, %v3865_v41 }
 0x324   :  { %v3312_v38 = vpop.f32.mrb[13].mxu1 }
 0x325   :  { %v3696_v19 = vpop.f32.mrb[12].mxu0  ;;  %v3314_v44 = vpop.f32.mrb[14].mxu1 }
 0x326   :  { %v9690_v10 = vadd.f32 %v3696_v19, %v3310_v36  ;;  %v3698_v5 = vpop.f32.mrb[13].mxu0  ;;  %v3316_v17 = vpop.f32.mrb[15].mxu1 }
 0x327   :  { %v9692_v22 = vadd.f32 %v3698_v5, %v3312_v38  ;;  %v3700_v43 = vpop.f32.mrb[14].mxu0 }
 0x328   :  { %v9696_v30 = vadd.f32 %v3700_v43, %v3314_v44  ;;  %v3702_v4 = vpop.f32.mrb[15].mxu0  ;;  %v3830_v59 = vadd.f32 %v9690_v10, %v3829_v47 }
 0x329   :  { %11079 = vst [vmem:[#allocation28_spill] sm:$0xff] %v9692_v22  ;;  %v9698_v33 = vadd.f32 %v3702_v4, %v3316_v17  ;;  %v3867_v58 = vadd.f32 %v9692_v22, %v3866_v50 }
 0x32a   :  { %v3831_v34 = vadd.f32 %v9696_v30, %v3830_v59 }
 0x32b   :  { %11080 = vst [vmem:[#allocation31_spill] sm:$0xff] %v9698_v33  ;;  %v3320_v40 = vpop.f32.mrb[16].mxu1  ;;  %v3868_v17 = vadd.f32 %v9698_v33, %v3867_v58 }
 0x32c   :  { %v3322_v12 = vpop.f32.mrb[17].mxu1 }
 0x32d   :  { %v3706_v27 = vpop.f32.mrb[16].mxu0  ;;  %v3324_v63 = vpop.f32.mrb[18].mxu1 }
 0x32e   :  { %v9704_v53 = vadd.f32 %v3706_v27, %v3320_v40  ;;  %v3708_v26 = vpop.f32.mrb[17].mxu0  ;;  %v3326_v2 = vpop.f32.mrb[19].mxu1 }
 0x32f   :  { %v9707_v51 = vadd.f32 %v3708_v26, %v3322_v12  ;;  %v3710_v14 = vpop.f32.mrb[18].mxu0 }
 0x330   :  { %v9710_v6 = vadd.f32 %v3710_v14, %v3324_v63  ;;  %v3712_v56 = vpop.f32.mrb[19].mxu0  ;;  %v3832_v7 = vadd.f32 %v9704_v53, %v3831_v34 }
 0x331   :  { %11081 = vst [vmem:[#allocation35_spill] sm:$0xff] %v9707_v51  ;;  %v9712_v45 = vadd.f32 %v3712_v56, %v3326_v2  ;;  %v3869_v12 = vadd.f32 %v9707_v51, %v3868_v17 }
 0x332   :  { %v3833_v4 = vadd.f32 %v9710_v6, %v3832_v7 }
 0x333   :  { %11082 = vst [vmem:[#allocation44_spill] sm:$0xff] %v9712_v45  ;;  %v3330_v16 = vpop.f32.mrb[20].mxu1  ;;  %v3870_v26 = vadd.f32 %v9712_v45, %v3869_v12 }
 0x334   :  { %v3332_v35 = vpop.f32.mrb[21].mxu1 }
 0x335   :  { %v3716_v1 = vpop.f32.mrb[20].mxu0  ;;  %v3334_v9 = vpop.f32.mrb[22].mxu1 }
 0x336   :  { %v9718_v29 = vadd.f32 %v3716_v1, %v3330_v16  ;;  %v3718_v62 = vpop.f32.mrb[21].mxu0  ;;  %v3336_v13 = vpop.f32.mrb[23].mxu1 }
 0x337   :  { %v9720_v8 = vadd.f32 %v3718_v62, %v3332_v35  ;;  %v3720_v32 = vpop.f32.mrb[22].mxu0 }
 0x338   :  { %v9722_v11 = vadd.f32 %v3720_v32, %v3334_v9  ;;  %v3722_v57 = vpop.f32.mrb[23].mxu0  ;;  %v3834_v27 = vadd.f32 %v9718_v29, %v3833_v4 }
 0x339   :  { %11083 = vst [vmem:[#allocation45_spill] sm:$0xff] %v9720_v8  ;;  %v9725_v0 = vadd.f32 %v3722_v57, %v3336_v13  ;;  %v3871_v16 = vadd.f32 %v9720_v8, %v3870_v26 }
 0x33a   :  { %v3835_v14 = vadd.f32 %v9722_v11, %v3834_v27 }
 0x33b   :  { %11084 = vst [vmem:[#allocation40_spill] sm:$0xff] %v9725_v0  ;;  %v3340_v24 = vpop.f32.mrb[24].mxu1  ;;  %v3872_v62 = vadd.f32 %v9725_v0, %v3871_v16 }
 0x33c   :  { %v3342_v48 = vpop.f32.mrb[25].mxu1 }
 0x33d   :  { %v3726_v36 = vpop.f32.mrb[24].mxu0  ;;  %v3344_v38 = vpop.f32.mrb[26].mxu1 }
 0x33e   :  { %v9730_v19 = vadd.f32 %v3726_v36, %v3340_v24  ;;  %v3728_v44 = vpop.f32.mrb[25].mxu0  ;;  %v3346_v5 = vpop.f32.mrb[27].mxu1 }
 0x33f   :  { %v9733_v43 = vadd.f32 %v3728_v44, %v3342_v48  ;;  %v3730_v3 = vpop.f32.mrb[26].mxu0 }
 0x340   :  { %v9736_v18 = vadd.f32 %v3730_v3, %v3344_v38  ;;  %v3732_v40 = vpop.f32.mrb[27].mxu0  ;;  %v3836_v41 = vadd.f32 %v9730_v19, %v3835_v14 }
 0x341   :  { %11085 = vst [vmem:[#allocation46_spill] sm:$0xff] %v9733_v43  ;;  %v9739_v42 = vadd.f32 %v3732_v40, %v3346_v5  ;;  %v3873_v50 = vadd.f32 %v9733_v43, %v3872_v62 }
 0x342   :  { %v3837_v32 = vadd.f32 %v9736_v18, %v3836_v41 }
 0x343   :  { %11086 = vst [vmem:[#allocation47_spill] sm:$0xff] %v9739_v42  ;;  %v3350_v63 = vpop.f32.mrb[28].mxu1  ;;  %v3874_v3 = vadd.f32 %v9739_v42, %v3873_v50 }
 0x344   :  { %v3352_v28 = vpop.f32.mrb[29].mxu1 }
 0x345   :  { %v3736_v2 = vpop.f32.mrb[28].mxu0  ;;  %v3354_v23 = vpop.f32.mrb[30].mxu1 }
 0x346   :  { %v9744_v54 = vadd.f32 %v3736_v2, %v3350_v63  ;;  %v3738_v56 = vpop.f32.mrb[29].mxu0  ;;  %v3356_v37 = vpop.f32.mrb[31].mxu1 }
 0x347   :  { %v9747_v47 = vadd.f32 %v3738_v56, %v3352_v28  ;;  %v3740_v35 = vpop.f32.mrb[30].mxu0 }
 0x348   :  { %v9750_v1 = vadd.f32 %v3740_v35, %v3354_v23  ;;  %v3742_v9 = vpop.f32.mrb[31].mxu0  ;;  %v3838_v24 = vadd.f32 %v9744_v54, %v3837_v32 }
 0x349   :  { %11087 = vst [vmem:[#allocation49_spill] sm:$0xff] %v9747_v47  ;;  %v9752_v59 = vadd.f32 %v3742_v9, %v3356_v37  ;;  %v3875_v12 = vadd.f32 %v9747_v47, %v3874_v3 }
 0x34a   :  { %v3839_v40 = vadd.f32 %v9750_v1, %v3838_v24 }
 0x34b   :  { %11088 = vst [vmem:[#allocation50_spill] sm:$0xff] %v9752_v59  ;;  %v3360_v13 = vpop.f32.mrb[32].mxu1  ;;  %v3876_v37 = vadd.f32 %v9752_v59, %v3875_v12 }
 0x34c   :  { %v3362_v57 = vpop.f32.mrb[33].mxu1 }
 0x34d   :  { %v3746_v34 = vpop.f32.mrb[32].mxu0  ;;  %v3364_v58 = vpop.f32.mrb[34].mxu1 }
 0x34e   :  { %v9758_v7 = vadd.f32 %v3746_v34, %v3360_v13  ;;  %v3748_v48 = vpop.f32.mrb[33].mxu0  ;;  %v3366_v36 = vpop.f32.mrb[35].mxu1 }
 0x34f   :  { %v9760_v38 = vadd.f32 %v3748_v48, %v3362_v57  ;;  %v3750_v44 = vpop.f32.mrb[34].mxu0 }
 0x350   :  { %11089 = vst [vmem:[#allocation48_spill] sm:$0xff] %v9758_v7  ;;  %v9762_v5 = vadd.f32 %v3750_v44, %v3364_v58  ;;  %v3752_v17 = vpop.f32.mrb[35].mxu0  ;;  %v3840_v63 = vadd.f32 %v9758_v7, %v3839_v40 }
 0x351   :  { %11090 = vst [vmem:[#allocation43_spill] sm:$0xff] %v9760_v38  ;;  %v9765_v4 = vadd.f32 %v3752_v17, %v3366_v36  ;;  %v3877_v13 = vadd.f32 %v9760_v38, %v3876_v37 }
 0x352   :  { %11091 = vst [vmem:[#allocation51_spill] sm:$0xff] %v9762_v5  ;;  %v3841_v41 = vadd.f32 %v9762_v5, %v3840_v63 }
 0x353   :  { %11092 = vst [vmem:[#allocation10_spill] sm:$0xff] %v9765_v4  ;;  %v3370_v27 = vpop.f32.mrb[36].mxu1  ;;  %v3878_v58 = vadd.f32 %v9765_v4, %v3877_v13 }
 0x354   :  { %v3372_v28 = vpop.f32.mrb[37].mxu1 }
 0x355   :  { %v3756_v26 = vpop.f32.mrb[36].mxu0  ;;  %v3374_v2 = vpop.f32.mrb[38].mxu1 }
 0x356   :  { %v9770_v23 = vadd.f32 %v3756_v26, %v3370_v27  ;;  %v3758_v14 = vpop.f32.mrb[37].mxu0  ;;  %v3376_v56 = vpop.f32.mrb[39].mxu1 }
 0x357   :  { %v9773_v16 = vadd.f32 %v3758_v14, %v3372_v28  ;;  %v3760_v35 = vpop.f32.mrb[38].mxu0 }
 0x358   :  { %11093 = vst [vmem:[#allocation9_spill] sm:$0xff] %v9770_v23  ;;  %v9776_v9 = vadd.f32 %v3760_v35, %v3374_v2  ;;  %v3762_v62 = vpop.f32.mrb[39].mxu0  ;;  %v3842_v57 = vadd.f32 %v9770_v23, %v3841_v41 }
 0x359   :  { %11094 = vst [vmem:[#allocation11_spill] sm:$0xff] %v9773_v16  ;;  %v9779_v32 = vadd.f32 %v3762_v62, %v3376_v56  ;;  %v3879_v40 = vadd.f32 %v9773_v16, %v3878_v58 }
 0x35a   :  { %11095 = vst [vmem:[#allocation15_spill] sm:$0xff] %v9776_v9  ;;  %v3843_v36 = vadd.f32 %v9776_v9, %v3842_v57 }
 0x35b   :  { %11096 = vst [vmem:[#allocation17_spill] sm:$0xff] %v9779_v32  ;;  %v3380_v50 = vpop.f32.mrb[40].mxu1  ;;  %v3880_v56 = vadd.f32 %v9779_v32, %v3879_v40 }
 0x35c   :  { %v3382_v34 = vpop.f32.mrb[41].mxu1 }
 0x35d   :  { %v3766_v24 = vpop.f32.mrb[40].mxu0  ;;  %v3384_v48 = vpop.f32.mrb[42].mxu1 }
 0x35e   :  { %v9784_v44 = vadd.f32 %v3766_v24, %v3380_v50  ;;  %v3768_v17 = vpop.f32.mrb[41].mxu0  ;;  %v3386_v3 = vpop.f32.mrb[43].mxu1 }
 0x35f   :  { %v9787_v12 = vadd.f32 %v3768_v17, %v3382_v34  ;;  %v3770_v27 = vpop.f32.mrb[42].mxu0 }
 0x360   :  { %v3844_v63 = vadd.f32 %v9784_v44, %v3843_v36  ;;  %v9790_v28 = vadd.f32 %v3770_v27, %v3384_v48  ;;  %v3772_v26 = vpop.f32.mrb[43].mxu0 }
 0x361   :  { %11097 = vst [vmem:[#allocation12_spill] sm:$0xff] %v9787_v12  ;;  %v9792_v2 = vadd.f32 %v3772_v26, %v3386_v3  ;;  %v3881_v41 = vadd.f32 %v9787_v12, %v3880_v56 }
 0x362   :  { %v3845_v14 = vadd.f32 %v9790_v28, %v3844_v63 }
 0x363   :  { %11098 = vst [vmem:[#allocation27_spill] sm:$0xff] %v9792_v2  ;;  %v3390_v37 = vpop.f32.mrb[44].mxu1  ;;  %v3882_v3 = vadd.f32 %v9792_v2, %v3881_v41 }
 0x364   :  { %v3392_v35 = vpop.f32.mrb[45].mxu1 }
 0x365   :  { %v3776_v62 = vpop.f32.mrb[44].mxu0  ;;  %v3394_v13 = vpop.f32.mrb[46].mxu1 }
 0x366   :  { %v9797_v57 = vadd.f32 %v3776_v62, %v3390_v37  ;;  %v3778_v50 = vpop.f32.mrb[45].mxu0  ;;  %v3396_v34 = vpop.f32.mrb[47].mxu1 }
 0x367   :  { %v9799_v58 = vadd.f32 %v3778_v50, %v3392_v35  ;;  %v3780_v24 = vpop.f32.mrb[46].mxu0 }
 0x368   :  { %v3846_v48 = vadd.f32 %v9797_v57, %v3845_v14  ;;  %v9802_v36 = vadd.f32 %v3780_v24, %v3394_v13  ;;  %v3782_v17 = vpop.f32.mrb[47].mxu0 }
 0x369   :  { %11099 = vst [vmem:[#allocation30_spill] sm:$0xff] %v9799_v58  ;;  %v9805_v40 = vadd.f32 %v3782_v17, %v3396_v34  ;;  %v3883_v63 = vadd.f32 %v9799_v58, %v3882_v3 }
 0x36a   :  { %v3847_v27 = vadd.f32 %v9802_v36, %v3846_v48 }
 0x36b   :  { %11100 = vst [vmem:[#allocation13_spill] sm:$0xff] %v9805_v40  ;;  %v3400_v26 = vpop.f32.mrb[48].mxu1  ;;  %v3884_v14 = vadd.f32 %v9805_v40, %v3883_v63 }
 0x36c   :  { %v3402_v56 = vpop.f32.mrb[49].mxu1 }
 0x36d   :  { %v3786_v37 = vpop.f32.mrb[48].mxu0  ;;  %v3404_v62 = vpop.f32.mrb[50].mxu1 }
 0x36e   :  { %v9809_v35 = vadd.f32 %v3786_v37, %v3400_v26  ;;  %v3788_v50 = vpop.f32.mrb[49].mxu0  ;;  %v3406_v12 = vpop.f32.mrb[51].mxu1 }
 0x36f   :  { %v9812_v13 = vadd.f32 %v3788_v50, %v3402_v56  ;;  %v3790_v24 = vpop.f32.mrb[50].mxu0 }
 0x370   :  { %v3848_v41 = vadd.f32 %v9809_v35, %v3847_v27  ;;  %v9815_v34 = vadd.f32 %v3790_v24, %v3404_v62  ;;  %v3792_v48 = vpop.f32.mrb[51].mxu0 }
 0x371   :  { %v3885_v17 = vadd.f32 %v9812_v13, %v3884_v14  ;;  %v9818_v3 = vadd.f32 %v3792_v48, %v3406_v12 }
 0x372   :  { %v3849_v58 = vadd.f32 %v9815_v34, %v3848_v41 }
 0x373   :  { %v3886_v26 = vadd.f32 %v9818_v3, %v3885_v17  ;;  %v3410_v37 = vpop.f32.mrb[52].mxu1 }
 0x374   :  { %v3412_v2 = vpop.f32.mrb[53].mxu1 }
 0x375   :  { %v3796_v32 = vpop.f32.mrb[52].mxu0  ;;  %v3414_v63 = vpop.f32.mrb[54].mxu1 }
 0x376   :  { %v4521_v56 = vadd.f32 %v3796_v32, %v3410_v37  ;;  %v3798_v50 = vpop.f32.mrb[53].mxu0  ;;  %v3416_v40 = vpop.f32.mrb[55].mxu1 }
 0x377   :  { %v9822_v16 = vadd.f32 %v3798_v50, %v3412_v2  ;;  %v3800_v27 = vpop.f32.mrb[54].mxu0 }
 0x378   :  { %v3850_v62 = vadd.f32 %v4521_v56, %v3849_v58  ;;  %v4523_v24 = vadd.f32 %v3800_v27, %v3414_v63  ;;  %v3802_v4 = vpop.f32.mrb[55].mxu0 }
 0x379   :  { %v3887_v12 = vadd.f32 %v9822_v16, %v3886_v26  ;;  %v9825_v14 = vadd.f32 %v3802_v4, %v3416_v40 }
 0x37a   :  { %v3851_v41 = vadd.f32 %v4523_v24, %v3850_v62 }
 0x37b   :  { %v3888_v48 = vadd.f32 %v9825_v14, %v3887_v12  ;;  %v3420_v17 = vpop.f32.mrb[56].mxu1 }
 0x37c   :  { %v3422_v38 = vpop.f32.mrb[57].mxu1 }
 0x37d   :  { %v3806_v59 = vpop.f32.mrb[56].mxu0  ;;  %v3424_v47 = vpop.f32.mrb[58].mxu1 }
 0x37e   :  { %v4525_v32 = vadd.f32 %v3806_v59, %v3420_v17  ;;  %v3808_v37 = vpop.f32.mrb[57].mxu0  ;;  %v3426_v42 = vpop.f32.mrb[59].mxu1 }
 0x37f   :  { %v9828_v2 = vadd.f32 %v3808_v37, %v3422_v38  ;;  %v3810_v50 = vpop.f32.mrb[58].mxu0 }
 0x380   :  { %v3852_v58 = vadd.f32 %v4525_v32, %v3851_v41  ;;  %v4527_v63 = vadd.f32 %v3810_v50, %v3424_v47  ;;  %v3812_v27 = vpop.f32.mrb[59].mxu0 }
 0x381   :  { %v3889_v26 = vadd.f32 %v9828_v2, %v3888_v48  ;;  %v9831_v4 = vadd.f32 %v3812_v27, %v3426_v42 }
 0x382   :  { %v3853_v40 = vadd.f32 %v4527_v63, %v3852_v58 }
 0x383   :  { %v3890_v62 = vadd.f32 %v9831_v4, %v3889_v26  ;;  %v3430_v12 = vpop.f32.mrb[60].mxu1 }
 0x384   :  { %v3432_v43 = vpop.f32.mrb[61].mxu1 }
 0x385   :  { %v3816_v0 = vpop.f32.mrb[60].mxu0  ;;  %v3434_v8 = vpop.f32.mrb[62].mxu1 }
 0x386   :  { %v4529_v59 = vadd.f32 %v3816_v0, %v3430_v12  ;;  %v3818_v17 = vpop.f32.mrb[61].mxu0  ;;  %v3436_v9 = vpop.f32.mrb[63].mxu1 }
 0x387   :  { %v4530_v38 = vadd.f32 %v3818_v17, %v3432_v43  ;;  %v3820_v37 = vpop.f32.mrb[62].mxu0 }
 0x388   :  { %v3854_v45 = vadd.f32 %v4529_v59, %v3853_v40  ;;  %v4531_v41 = vadd.f32 %v3820_v37, %v3434_v8  ;;  %v3822_v47 = vpop.f32.mrb[63].mxu0 }
 0x389   :  { %v3891_v50 = vadd.f32 %v4530_v38, %v3890_v62  ;;  %v4532_v23 = vadd.f32 %v3822_v47, %v3436_v9 }
 0x38a   :  { %v3855_v48 = vadd.f32 %v4531_v41, %v3854_v45 }
 0x38b   :  { %v3892_v42 = vadd.f32 %v4532_v23, %v3891_v50 }
 0x38c   :  { %v3856_v27 = vrot.slane %v3855_v48, 4 }
 0x38d   :  { %v3893_v5 = vrot.slane %v3892_v42, 4 }
 0x38e   :  { %v3857_v58 = vadd.f32 %v3856_v27, %v3855_v48 }
 0x38f   :  { %v3894_v7 = vadd.f32 %v3893_v5, %v3892_v42 }
 0x390   :  { %v3858_v51 = vrot.slane %v3857_v58, 2 }
 0x391   :  { %v3895_v0 = vrot.slane %v3894_v7, 2 }
 0x392   :  { %v3859_v26 = vadd.f32 %v3858_v51, %v3857_v58 }
 0x393   :  { %v3896_v43 = vadd.f32 %v3895_v0, %v3894_v7 }
 0x394   :  { %v3860_v33 = vrot.slane %v3859_v26, 1 }
 0x396   :  { %v3861_v22 = vadd.f32 %v3860_v33, %v3859_v26 }
 0x398   :  { %v9834_v12 = vmul.f32 0.00390625, %v3861_v22 }
 0x39a   :  { %v9838_v8 = vsub.f32 %v9784_v44, %v9834_v12  ;;  %v9842_v45 = vsub.f32 %v9790_v28, %v9834_v12  ;;  %v9846_v9 = vsub.f32 %v9797_v57, %v9834_v12  ;;  %v9850_v51 = vsub.f32 %v9802_v36, %v9834_v12 }
 0x39b   :  { %v9854_v22 = vsub.f32 %v9809_v35, %v9834_v12  ;;  %v9858_v33 = vsub.f32 %v9815_v34, %v9834_v12  ;;  %v9861_v7 = vsub.f32 %v4521_v56, %v9834_v12  ;;  %v9864_v5 = vsub.f32 %v4523_v24, %v9834_v12 }
 0x39c   :  { %11101 = vst [vmem:[#allocation14_spill] sm:$0xff] %v9838_v8  ;;  %11102 = vst [vmem:[#allocation32_spill] sm:$0xff] %v9842_v45  ;;  %v9867_v44 = vsub.f32 %v4525_v32, %v9834_v12  ;;  %v9870_v28 = vsub.f32 %v4527_v63, %v9834_v12  ;;  %v9873_v57 = vsub.f32 %v4529_v59, %v9834_v12  ;;  %v3897_v56 = vrot.slane %v3896_v43, 1 }
 0x39d   :  { %11103 = vst [vmem:[#allocation33_spill] sm:$0xff] %v9846_v9  ;;  %11104 = vst [vmem:[#allocation16_spill] sm:$0xff] %v9850_v51  ;;  %v9876_v36 = vsub.f32 %v4531_v41, %v9834_v12  ;;  %v9880_v35 = vsub.f32 %v9666_v15, %v9834_v12  ;;  %v9884_v34 = vsub.f32 %v9670_v39, %v9834_v12 }
 0x39e   :  { %11105 = vst [vmem:[#allocation18_spill] sm:$0xff] %v9854_v22  ;;  %11106 = vst [vmem:[#allocation34_spill] sm:$0xff] %v9858_v33  ;;  %v9888_v24 = vsub.f32 %v9674_v52, %v9834_v12  ;;  %v9896_v40 = vsub.f32 %v9678_v31, %v9834_v12  ;;  %v3898_v15 = vadd.f32 %v3897_v56, %v3896_v43 }
 0x39f   :  { %11107 = vst [vmem:[#allocation36_spill] sm:$0xff] %v9861_v7  ;;  %11108 = vst [vmem:[#allocation19_spill] sm:$0xff] %v9864_v5  ;;  %v3965_v32 = vmul.f32 %v9880_v35, %v9880_v35  ;;  %v3967_v63 = vmul.f32 %v9884_v34, %v9884_v34  ;;  %v9900_v39 = vsub.f32 %v9682_v21, %v9834_v12 }
 0x3a0   :  { %11109 = vst [vmem:[#allocation20_spill] sm:$0xff] %v9867_v44  ;;  %11110 = vst [vmem:[#allocation37_spill] sm:$0xff] %v9870_v28  ;;  %v3969_v62 = vmul.f32 %v9888_v24, %v9888_v24  ;;  %v9906_v59 = vsub.f32 %v9686_v20, %v9834_v12  ;;  %v9910_v17 = vsub.f32 %v9690_v10, %v9834_v12  ;;  %v9914_v41 = vmul.f32 0.00390625, %v3898_v15 }
 0x3a1   :  { %11111 = vst [vmem:[#allocation38_spill] sm:$0xff] %v9873_v57  ;;  %11112 = vst [vmem:[#allocation21_spill] sm:$0xff] %v9876_v36  ;;  %v4029_v52 = vadd.f32 %v3967_v63, %v3965_v32  ;;  %v3971_v31 = vmul.f32 %v9896_v40, %v9896_v40  ;;  %v3973_v21 = vmul.f32 %v9900_v39, %v9900_v39 }
 0x3a2   :  { %v9920_v50 = vsub.f32 %v9696_v30, %v9834_v12  ;;  %v9924_v20 = vsub.f32 %v9704_v53, %v9834_v12  ;;  %v3975_v10 = vmul.f32 %v9906_v59, %v9906_v59  ;;  %v3977_v48 = vmul.f32 %v9910_v17, %v9910_v17 }
 0x3a3   :  { %v4030_v37 = vadd.f32 %v4029_v52, %v3969_v62  ;;  %v9932_v27 = vsub.f32 %v9812_v13, %v9914_v41  ;;  %v9936_v58 = vsub.f32 %v9818_v3, %v9914_v41  ;;  %v9940_v30 = vsub.f32 %v9822_v16, %v9914_v41 }
 0x3a4   :  { %v9944_v53 = vsub.f32 %v9825_v14, %v9914_v41  ;;  %v9948_v0 = vsub.f32 %v9828_v2, %v9914_v41  ;;  %v9952_v13 = vsub.f32 %v9831_v4, %v9914_v41  ;;  %v9955_v3 = vsub.f32 %v4530_v38, %v9914_v41 }
 0x3a5   :  { %v4031_v47 = vadd.f32 %v4030_v37, %v3971_v31  ;;  %v9959_v16 = vsub.f32 %v9710_v6, %v9834_v12  ;;  %v9962_v43 = vsub.f32 %v4532_v23, %v9914_v41  ;;  %v3979_v14 = vmul.f32 %v9920_v50, %v9920_v50 }
 0x3a6   :  { %11113 = vst [vmem:[#allocation22_spill] sm:$0xff] %v9944_v53  ;;  %11114 = vst [vmem:[#allocation39_spill] sm:$0xff] %v9948_v0  ;;  %v9968_v2 = vsub.f32 %v9668_v61, %v9914_v41  ;;  %v9972_v4 = vsub.f32 %v9672_v46, %v9914_v41  ;;  %v9976_v38 = vsub.f32 %v9718_v29, %v9834_v12 }
 0x3a7   :  { %v4032_v42 = vadd.f32 %v4031_v47, %v3973_v21  ;;  %11115 = vst [vmem:[#allocation41_spill] sm:$0xff] %v9952_v13  ;;  %11116 = vst [vmem:[#allocation23_spill] sm:$0xff] %v9962_v43  ;;  %v3981_v6 = vmul.f32 %v9924_v20, %v9924_v20  ;;  %v9982_v32 = vsub.f32 %v9722_v11, %v9834_v12 }
 0x3a8   :  { %v3983_v61 = vmul.f32 %v9959_v16, %v9959_v16  ;;  %v9988_v46 = vsub.f32 %v9676_v60, %v9914_v41  ;;  %v3966_v29 = vmul.f32 %v9968_v2, %v9968_v2  ;;  %v3968_v15 = vmul.f32 %v9972_v4, %v9972_v4 }
 0x3a9   :  { %v4033_v26 = vadd.f32 %v4032_v42, %v3975_v10  ;;  %v9996_v62 = vsub.f32 %v9730_v19, %v9834_v12  ;;  %v3985_v11 = vmul.f32 %v9976_v38, %v9976_v38  ;;  %v10002_v31 = vsub.f32 %v9680_v49, %v9914_v41 }
 0x3aa   :  { %v10006_v60 = vsub.f32 %v9736_v18, %v9834_v12  ;;  %v3987_v37 = vmul.f32 %v9982_v32, %v9982_v32  ;;  %v10012_v19 = vsub.f32 %v9684_v25, %v9914_v41  ;;  %v3970_v47 = vmul.f32 %v9988_v46, %v9988_v46 }
 0x3ab   :  { %v4034_v56 = vadd.f32 %v4033_v26, %v3977_v48  ;;  %v4066_v10 = vadd.f32 %v3968_v15, %v3966_v29  ;;  %v10018_v49 = vsub.f32 %v9744_v54, %v9834_v12  ;;  %v3989_v18 = vmul.f32 %v9996_v62, %v9996_v62 }
 0x3ac   :  { %v10024_v42 = vsub.f32 %v9688_v55, %v9914_v41  ;;  %v3972_v25 = vmul.f32 %v10002_v31, %v10002_v31  ;;  %v3991_v54 = vmul.f32 %v10006_v60, %v10006_v60  ;;  %v3974_v55 = vmul.f32 %v10012_v19, %v10012_v19 }
 0x3ad   :  { %v4035_v23 = vadd.f32 %v4034_v56, %v3979_v14  ;;  %11117 = vst [vmem:[#allocation24_spill] sm:$0xff] %v10018_v49  ;;  %v4067_v26 = vadd.f32 %v4066_v10, %v3970_v47  ;;  %v10030_v14 = vsub.f32 %v9750_v1, %v9834_v12  ;;  %v3993_v1 = vmul.f32 %v10018_v49, %v10018_v49  ;;  %v11123_v47 = vld [vmem:[#allocation51_spill] sm:$0xff] }
 0x3ae   :  { %v10054_v10 = vsub.f32 %v11123_v47, %v9834_v12 }
 0x3af   :  { %v4036_v63 = vadd.f32 %v4035_v23, %v3981_v6  ;;  %11118 = vst [vmem:[#allocation42_spill] sm:$0xff] %v10030_v14  ;;  %v11119_v6 = vld [vmem:[#allocation28_spill] sm:$0xff] }
 0x3b0   :  { %v10036_v23 = vsub.f32 %v11119_v6, %v9914_v41  ;;  %11124 = vst [vmem:[#allocation25_spill] sm:$0xff] %v10054_v10  ;;  %v11126_v6 = vld [vmem:[#allocation9_spill] sm:$0xff] }
 0x3b1   :  { %v4037_v52 = vadd.f32 %v4036_v63, %v3983_v61  ;;  %v4068_v61 = vadd.f32 %v4067_v26, %v3972_v25  ;;  %v11120_v63 = vld [vmem:[#allocation48_spill] sm:$0xff]  ;;  %v11125_v25 = vld [vmem:[#allocation35_spill] sm:$0xff] }
 0x3b2   :  { %v10042_v29 = vsub.f32 %v11120_v63, %v9834_v12  ;;  %v10060_v26 = vsub.f32 %v11125_v25, %v9914_v41  ;;  %v10066_v63 = vsub.f32 %v11126_v6, %v9834_v12  ;;  %v11129_v25 = vld [vmem:[#allocation15_spill] sm:$0xff]  ;;  %v11131_v6 = vld [vmem:[#allocation45_spill] sm:$0xff] }
 0x3b3   :  { %v4038_v21 = vadd.f32 %v4037_v52, %v3985_v11  ;;  %v11122_v11 = vld [vmem:[#allocation31_spill] sm:$0xff] }
 0x3b4   :  { %11121 = vst [vmem:[#allocation26_spill] sm:$0xff] %v10042_v29  ;;  %v10048_v52 = vsub.f32 %v11122_v11, %v9914_v41  ;;  %11127 = vst [vmem:[#allocation29_spill] sm:$0xff] %v10066_v63  ;;  %v11128_v11 = vld [vmem:[#allocation44_spill] sm:$0xff] }
 0x3b5   :  { %v4039_v48 = vadd.f32 %v4038_v21, %v3987_v37  ;;  %v3976_v37 = vmul.f32 %v10024_v42, %v10024_v42  ;;  %v4069_v21 = vadd.f32 %v4068_v61, %v3974_v55  ;;  %v3997_v55 = vmul.f32 %v10042_v29, %v10042_v29 }
 0x3b6   :  { %v10072_v47 = vsub.f32 %v11128_v11, %v9914_v41  ;;  %v10084_v29 = vsub.f32 %v11131_v6, %v9914_v41  ;;  %v4001_v11 = vmul.f32 %v10066_v63, %v10066_v63 }
 0x3b7   :  { %v4040_v56 = vadd.f32 %v4039_v48, %v3989_v18  ;;  %v3995_v18 = vmul.f32 %v10030_v14, %v10030_v14  ;;  %v10078_v14 = vsub.f32 %v11129_v25, %v9834_v12 }
 0x3b8   :  { %v3984_v25 = vmul.f32 %v10072_v47, %v10072_v47 }
 0x3b9   :  { %v4041_v15 = vadd.f32 %v4040_v56, %v3991_v54  ;;  %v3978_v54 = vmul.f32 %v10036_v23, %v10036_v23  ;;  %v4070_v56 = vadd.f32 %v4069_v21, %v3976_v37  ;;  %11130 = vst [vmem:[#allocation28_spill] sm:$0xff] %v10078_v14  ;;  %v3999_v37 = vmul.f32 %v10054_v10, %v10054_v10  ;;  %v11133_v10 = vld [vmem:[#allocation46_spill] sm:$0xff] }
 0x3ba   :  { %v10100_v49 = vsub.f32 %v11133_v10, %v9914_v41  ;;  %v4007_v10 = vmul.f32 %v9842_v45, %v9842_v45 }
 0x3bb   :  { %v4042_v48 = vadd.f32 %v4041_v15, %v3993_v1  ;;  %v3980_v1 = vmul.f32 %v10048_v52, %v10048_v52  ;;  %v4071_v15 = vadd.f32 %v4070_v56, %v3978_v54  ;;  %v11132_v56 = vld [vmem:[#allocation40_spill] sm:$0xff] }
 0x3bc   :  { %v10092_v12 = vsub.f32 %v11132_v56, %v9914_v41  ;;  %v11134_v56 = vld [vmem:[#allocation47_spill] sm:$0xff] }
 0x3bd   :  { %v4043_v61 = vadd.f32 %v4042_v48, %v3995_v18  ;;  %v3982_v18 = vmul.f32 %v10060_v26, %v10060_v26  ;;  %v4072_v48 = vadd.f32 %v4071_v15, %v3980_v1  ;;  %v3986_v1 = vmul.f32 %v10084_v29, %v10084_v29 }
 0x3be   :  { %v10108_v63 = vsub.f32 %v11134_v56, %v9914_v41  ;;  %v11136_v56 = vld [vmem:[#allocation50_spill] sm:$0xff] }
 0x3bf   :  { %v4044_v21 = vadd.f32 %v4043_v61, %v3997_v55  ;;  %v4073_v55 = vadd.f32 %v4072_v48, %v3982_v18  ;;  %v4003_v61 = vmul.f32 %v10078_v14, %v10078_v14  ;;  %v3988_v18 = vmul.f32 %v10092_v12, %v10092_v12 }
 0x3c1   :  { %v4045_v54 = vadd.f32 %v4044_v21, %v3999_v37  ;;  %v4074_v15 = vadd.f32 %v4073_v55, %v3984_v25  ;;  %v4005_v37 = vmul.f32 %v9838_v8, %v9838_v8  ;;  %v3990_v25 = vmul.f32 %v10100_v49, %v10100_v49 }
 0x3c2   :  { %v10124_v8 = vsub.f32 %v11136_v56, %v9914_v41  ;;  %v11138_v56 = vld [vmem:[#allocation10_spill] sm:$0xff] }
 0x3c3   :  { %v4046_v6 = vadd.f32 %v4045_v54, %v4001_v11  ;;  %v4075_v48 = vadd.f32 %v4074_v15, %v3986_v1  ;;  %v11135_v54 = vld [vmem:[#allocation49_spill] sm:$0xff]  ;;  %v3992_v1 = vmul.f32 %v10108_v63, %v10108_v63 }
 0x3c4   :  { %v10116_v14 = vsub.f32 %v11135_v54, %v9914_v41  ;;  %v11137_v54 = vld [vmem:[#allocation43_spill] sm:$0xff] }
 0x3c5   :  { %v4047_v21 = vadd.f32 %v4046_v6, %v4003_v61  ;;  %v4076_v55 = vadd.f32 %v4075_v48, %v3988_v18  ;;  %v4009_v61 = vmul.f32 %v9846_v9, %v9846_v9  ;;  %v10132_v45 = vsub.f32 %v11137_v54, %v9914_v41  ;;  %v11139_v54 = vld [vmem:[#allocation11_spill] sm:$0xff] }
 0x3c6   :  { %v3994_v18 = vmul.f32 %v10116_v14, %v10116_v14  ;;  %v10140_v9 = vsub.f32 %v11138_v56, %v9914_v41  ;;  %v11140_v56 = vld [vmem:[#allocation17_spill] sm:$0xff] }
 0x3c7   :  { %v4048_v11 = vadd.f32 %v4047_v21, %v4005_v37  ;;  %v4077_v15 = vadd.f32 %v4076_v55, %v3990_v25  ;;  %v4011_v37 = vmul.f32 %v9850_v51, %v9850_v51  ;;  %v3996_v25 = vmul.f32 %v10124_v8, %v10124_v8 }
 0x3c8   :  { %v10148_v51 = vsub.f32 %v11139_v54, %v9914_v41  ;;  %v11141_v54 = vld [vmem:[#allocation12_spill] sm:$0xff] }
 0x3c9   :  { %v4049_v6 = vadd.f32 %v4048_v11, %v4007_v10  ;;  %v4078_v48 = vadd.f32 %v4077_v15, %v3992_v1  ;;  %v4013_v10 = vmul.f32 %v9854_v22, %v9854_v22  ;;  %v3998_v1 = vmul.f32 %v10132_v45, %v10132_v45 }
 0x3ca   :  { %v10156_v22 = vsub.f32 %v11140_v56, %v9914_v41  ;;  %v11142_v56 = vld [vmem:[#allocation27_spill] sm:$0xff] }
 0x3cb   :  { %v4050_v21 = vadd.f32 %v4049_v6, %v4009_v61  ;;  %v4079_v55 = vadd.f32 %v4078_v48, %v3994_v18  ;;  %v4015_v61 = vmul.f32 %v9858_v33, %v9858_v33  ;;  %v4000_v18 = vmul.f32 %v10140_v9, %v10140_v9 }
 0x3cc   :  { %v10164_v33 = vsub.f32 %v11141_v54, %v9914_v41  ;;  %v11143_v54 = vld [vmem:[#allocation30_spill] sm:$0xff] }
 0x3cd   :  { %v4051_v11 = vadd.f32 %v4050_v21, %v4011_v37  ;;  %v4080_v15 = vadd.f32 %v4079_v55, %v3996_v25  ;;  %v4017_v37 = vmul.f32 %v9861_v7, %v9861_v7  ;;  %v4002_v25 = vmul.f32 %v10148_v51, %v10148_v51 }
 0x3ce   :  { %v10172_v7 = vsub.f32 %v11142_v56, %v9914_v41  ;;  %v11144_v56 = vld [vmem:[#allocation13_spill] sm:$0xff] }
 0x3cf   :  { %v4052_v6 = vadd.f32 %v4051_v11, %v4013_v10  ;;  %v4081_v48 = vadd.f32 %v4080_v15, %v3998_v1  ;;  %v4019_v10 = vmul.f32 %v9864_v5, %v9864_v5  ;;  %v4004_v1 = vmul.f32 %v10156_v22, %v10156_v22 }
 0x3d0   :  { %v10180_v5 = vsub.f32 %v11143_v54, %v9914_v41 }
 0x3d1   :  { %v4053_v21 = vadd.f32 %v4052_v6, %v4015_v61  ;;  %v4082_v55 = vadd.f32 %v4081_v48, %v4000_v18  ;;  %v4021_v61 = vmul.f32 %v9867_v44, %v9867_v44  ;;  %v4006_v18 = vmul.f32 %v10164_v33, %v10164_v33 }
 0x3d2   :  { %v10188_v44 = vsub.f32 %v11144_v56, %v9914_v41  ;;  %v4010_v54 = vmul.f32 %v10180_v5, %v10180_v5  ;;  %v4014_v41 = vmul.f32 %v9932_v27, %v9932_v27 }
 0x3d3   :  { %v4054_v11 = vadd.f32 %v4053_v21, %v4017_v37  ;;  %v4083_v15 = vadd.f32 %v4082_v55, %v4002_v25  ;;  %v4023_v37 = vmul.f32 %v9870_v28, %v9870_v28  ;;  %v4008_v25 = vmul.f32 %v10172_v7, %v10172_v7 }
 0x3d5   :  { %v4055_v6 = vadd.f32 %v4054_v11, %v4019_v10  ;;  %v4084_v48 = vadd.f32 %v4083_v15, %v4004_v1  ;;  %v4025_v10 = vmul.f32 %v9873_v57, %v9873_v57 }
 0x3d7   :  { %v4056_v21 = vadd.f32 %v4055_v6, %v4021_v61  ;;  %v4085_v55 = vadd.f32 %v4084_v48, %v4006_v18  ;;  %v4027_v61 = vmul.f32 %v9876_v36, %v9876_v36  ;;  %v4016_v18 = vmul.f32 %v9936_v58, %v9936_v58 }
 0x3d9   :  { %v4057_v11 = vadd.f32 %v4056_v21, %v4023_v37  ;;  %v4086_v1 = vadd.f32 %v4085_v55, %v4008_v25  ;;  %v4012_v37 = vmul.f32 %v10188_v44, %v10188_v44  ;;  %v4020_v25 = vmul.f32 %v9944_v53, %v9944_v53 }
 0x3db   :  { %v4058_v6 = vadd.f32 %v4057_v11, %v4025_v10  ;;  %v4087_v21 = vadd.f32 %v4086_v1, %v4010_v54  ;;  %v4018_v10 = vmul.f32 %v9940_v30, %v9940_v30  ;;  %v4024_v1 = vmul.f32 %v9952_v13, %v9952_v13 }
 0x3dd   :  { %v4059_v15 = vadd.f32 %v4058_v6, %v4027_v61  ;;  %v4088_v56 = vadd.f32 %v4087_v21, %v4012_v37  ;;  %v4022_v6 = vmul.f32 %v9948_v0, %v9948_v0 }
 0x3df   :  { %v4060_v57 = vrot.slane %v4059_v15, 4  ;;  %v4089_v48 = vadd.f32 %v4088_v56, %v4014_v41  ;;  %v4028_v41 = vmul.f32 %v9962_v43, %v9962_v43 }
 0x3e1   :  { %v4061_v36 = vadd.f32 %v4060_v57, %v4059_v15  ;;  %v4090_v11 = vadd.f32 %v4089_v48, %v4016_v18  ;;  %v4026_v57 = vmul.f32 %v9955_v3, %v9955_v3 }
 0x3e3   :  { %v4091_v55 = vadd.f32 %v4090_v11, %v4018_v10  ;;  %v4062_v61 = vrot.slane %v4061_v36, 2 }
 0x3e5   :  { %v4092_v54 = vadd.f32 %v4091_v55, %v4020_v25  ;;  %v4063_v21 = vadd.f32 %v4062_v61, %v4061_v36 }
 0x3e7   :  { %v4093_v37 = vadd.f32 %v4092_v54, %v4022_v6  ;;  %v4064_v18 = vrot.slane %v4063_v21, 1  ;;  %v5149_v54 = vmov 1966171168  }
 0x3e9   :  { %v4094_v15 = vadd.f32 %v4093_v37, %v4024_v1  ;;  %v4065_v11 = vadd.f32 %v4064_v18, %v4063_v21  ;;  %v4114_v1 = vunpack.c.l.s4 %v5149_v54  ;;  %v4116_v37 = vlaneseq }
 0x3eb   :  { %v4095_v56 = vadd.f32 %v4094_v15, %v4026_v57  ;;  %v4103_v25 = vmul.f32 0.00390625, %v4065_v11  ;;  %v4115_v43 = vunpack.c.0.s8 %v4114_v1  ;;  %v4117_v57 = vshrl.u32 %v4116_v37, 7  ;;  %v11145_v37 = vld [vmem:[#allocation24_spill] sm:$0xff] }
 0x3ed   :  { %v4096_v48 = vadd.f32 %v4095_v56, %v4028_v41  ;;  %v4106_v13 = vadd.f32 1e-05, %v4103_v25  ;;  %v4118_v41 = vsub.s32 %v4115_v43, %v4117_v57 }
 0x3ef   :  { %v4097_v10 = vrot.slane %v4096_v48, 4  ;;  %4877 = vrsqrt.f32 %v4106_v13 }
 0x3f1   :  { %v4098_v28 = vadd.f32 %v4097_v10, %v4096_v48  ;;  %v4136_v48 = vsub.s32 1, %v4117_v57  ;;  %v4204_v10 = vld [vmem:[%s10810_s6] sm:$0x3] }
 0x3f3   :  { %v4099_v0 = vrot.slane %v4098_v28, 2 }
 0x3f5   :  { %v4100_v55 = vadd.f32 %v4099_v0, %v4098_v28  ;;  %v4105_v28 = vld [vmem:[%s10809_s5] sm:$0x3] }
 0x3f7   :  { %v4101_v53 = vrot.slane %v4100_v55, 1 }
 0x3f9   :  { %v4102_v6 = vadd.f32 %v4101_v53, %v4100_v55  ;;  %v4878_v15 = vpop.eup %4877  ;;  %v4132_v53 = vsub.s32 0, %v4117_v57  ;;  %v10226_v55 = vrot.slane %v4204_v10, %v4136_v48  ;;  %v11146_v57 = vld [vmem:[#allocation42_spill] sm:$0xff] }
 0x3fb   :  { %v4104_v36 = vmul.f32 0.00390625, %v4102_v6  ;;  %v10224_v43 = vrot.slane %v4204_v10, %v4132_v53  ;;  %v11152_v10 = vld [vmem:[#allocation32_spill] sm:$0xff] }
 0x3fd   :  { %v4107_v61 = vadd.f32 1e-05, %v4104_v36 }
 0x3ff   :  { %4879 = vrsqrt.f32 %v4107_v61 }
 0x409   :  { %v4880_v56 = vpop.eup %4879 }
 0x40a   :  { %v4112_v21 = vcombine.low %v4878_v15, %v4880_v56  ;;  %v11147_v15 = vld [vmem:[#allocation26_spill] sm:$0xff]  ;;  %v11148_v56 = vld [vmem:[#allocation25_spill] sm:$0xff] }
 0x40c   :  { %v4119_v18 = vrot.slane %v4112_v21, %v4118_v41 }
 0x40e   :  { %v4126_v0 = vrot.slane %v4119_v18, %v4118_v41  ;;  %v11149_v18 = vld [vmem:[#allocation29_spill] sm:$0xff] }
 0x410   :  { %v4128_v13 = vmul.f32 %v4126_v0, %v4105_v28  ;;  %v11150_v0 = vld [vmem:[#allocation28_spill] sm:$0xff] }
 0x412   :  { %v10220_v11 = vrot.slane %v4128_v13, %v4132_v53  ;;  %v10222_v25 = vrot.slane %v4128_v13, %v4136_v48  ;;  %v11151_v48 = vld [vmem:[#allocation14_spill] sm:$0xff] }
 0x414   :  { %v10230_v6 = vmul.f32 %v10220_v11, %v9880_v35  ;;  %v10234_v36 = vmul.f32 %v10222_v25, %v9968_v2  ;;  %v10238_v61 = vmul.f32 %v10220_v11, %v9884_v34  ;;  %v10242_v54 = vmul.f32 %v10222_v25, %v9972_v4 }
 0x415   :  { %v10246_v1 = vmul.f32 %v10220_v11, %v9888_v24  ;;  %v10250_v35 = vmul.f32 %v10222_v25, %v9988_v46  ;;  %v10254_v2 = vmul.f32 %v10220_v11, %v9896_v40  ;;  %v10258_v34 = vmul.f32 %v10222_v25, %v10002_v31 }
 0x416   :  { %v10262_v4 = vmul.f32 %v10220_v11, %v9900_v39  ;;  %v10266_v24 = vmul.f32 %v10222_v25, %v10012_v19  ;;  %v10270_v46 = vmul.f32 %v10220_v11, %v9906_v59  ;;  %v10274_v40 = vmul.f32 %v10222_v25, %v10024_v42 }
 0x417   :  { %v10278_v31 = vmul.f32 %v10220_v11, %v9910_v17  ;;  %v10282_v39 = vmul.f32 %v10222_v25, %v10036_v23  ;;  %v10286_v19 = vmul.f32 %v10220_v11, %v9920_v50  ;;  %v10290_v59 = vmul.f32 %v10222_v25, %v10048_v52 }
 0x418   :  { %v10294_v42 = vmul.f32 %v10220_v11, %v9924_v20  ;;  %v10298_v17 = vmul.f32 %v10222_v25, %v10060_v26  ;;  %v10302_v23 = vmul.f32 %v10220_v11, %v9959_v16  ;;  %v10306_v50 = vmul.f32 %v10222_v25, %v10072_v47 }
 0x419   :  { %v10310_v52 = vmul.f32 %v10220_v11, %v9976_v38  ;;  %v10314_v20 = vmul.f32 %v10222_v25, %v10084_v29  ;;  %v10318_v26 = vmul.f32 %v10220_v11, %v9982_v32  ;;  %v10322_v16 = vmul.f32 %v10222_v25, %v10092_v12 }
 0x41a   :  { %v10326_v47 = vmul.f32 %v10220_v11, %v9996_v62  ;;  %v10330_v38 = vmul.f32 %v10222_v25, %v10100_v49  ;;  %v10334_v29 = vmul.f32 %v10220_v11, %v10006_v60  ;;  %v10338_v32 = vmul.f32 %v10222_v25, %v10108_v63 }
 0x41b   :  { %v10342_v12 = vmul.f32 %v10220_v11, %v11145_v37  ;;  %v10346_v62 = vmul.f32 %v10222_v25, %v10116_v14  ;;  %v10350_v49 = vmul.f32 %v10220_v11, %v11146_v57  ;;  %v10354_v60 = vmul.f32 %v10222_v25, %v10124_v8  ;;  %v11153_v57 = vld [vmem:[#allocation33_spill] sm:$0xff] }
 0x41c   :  { %v10358_v63 = vmul.f32 %v10220_v11, %v11147_v15  ;;  %v10362_v41 = vmul.f32 %v10222_v25, %v10132_v45  ;;  %v10366_v14 = vmul.f32 %v10220_v11, %v11148_v56  ;;  %v10370_v21 = vmul.f32 %v10222_v25, %v10140_v9  ;;  %v11154_v56 = vld [vmem:[#allocation16_spill] sm:$0xff] }
 0x41d   :  { %v10374_v8 = vmul.f32 %v10220_v11, %v11149_v18  ;;  %v10378_v28 = vmul.f32 %v10222_v25, %v10148_v51  ;;  %v10382_v45 = vmul.f32 %v10220_v11, %v11150_v0  ;;  %v10386_v53 = vmul.f32 %v10222_v25, %v10156_v22  ;;  %v11155_v0 = vld [vmem:[#allocation18_spill] sm:$0xff] }
 0x41e   :  { %v10390_v9 = vmul.f32 %v10220_v11, %v11151_v48  ;;  %v10394_v13 = vmul.f32 %v10222_v25, %v10164_v33  ;;  %v10398_v51 = vmul.f32 %v10220_v11, %v11152_v10  ;;  %v10402_v37 = vmul.f32 %v10222_v25, %v10172_v7  ;;  %v11158_v10 = vld [vmem:[#allocation34_spill] sm:$0xff] }
 0x41f   :  { %v10406_v22 = vmul.f32 %v10220_v11, %v11153_v57  ;;  %v10410_v15 = vmul.f32 %v10222_v25, %v10180_v5  ;;  %v10414_v33 = vmul.f32 %v10220_v11, %v11154_v56  ;;  %v10418_v18 = vmul.f32 %v10222_v25, %v10188_v44  ;;  %v11161_v56 = vld [vmem:[#allocation36_spill] sm:$0xff] }
 0x420   :  { %v10422_v7 = vmul.f32 %v10220_v11, %v11155_v0  ;;  %v10426_v48 = vmul.f32 %v10222_v25, %v9932_v27  ;;  %v10430_v5 = vmul.f32 %v10220_v11, %v11158_v10  ;;  %v10434_v57 = vmul.f32 %v10222_v25, %v9936_v58 }
 0x421   :  { %v10438_v44 = vmul.f32 %v10220_v11, %v11161_v56  ;;  %v10442_v0 = vmul.f32 %v10222_v25, %v9940_v30 }
 0x422   :  { %11156 = vst [vmem:[#allocation48_spill] sm:$0xff] %v10422_v7  ;;  %11157 = vst [vmem:[#allocation31_spill] sm:$0xff] %v10426_v48  ;;  %v11164_v7 = vld [vmem:[#allocation19_spill] sm:$0xff]  ;;  %v11166_v48 = vld [vmem:[#allocation22_spill] sm:$0xff] }
 0x423   :  { %11159 = vst [vmem:[#allocation51_spill] sm:$0xff] %v10430_v5  ;;  %11160 = vst [vmem:[#allocation35_spill] sm:$0xff] %v10434_v57  ;;  %v10446_v27 = vmul.f32 %v10220_v11, %v11164_v7  ;;  %v10450_v10 = vmul.f32 %v10222_v25, %v11166_v48  ;;  %v11167_v5 = vld [vmem:[#allocation20_spill] sm:$0xff]  ;;  %v11169_v57 = vld [vmem:[#allocation39_spill] sm:$0xff] }
 0x424   :  { %11162 = vst [vmem:[#allocation9_spill] sm:$0xff] %v10438_v44  ;;  %11163 = vst [vmem:[#allocation44_spill] sm:$0xff] %v10442_v0  ;;  %v10454_v58 = vmul.f32 %v10220_v11, %v11167_v5  ;;  %v10458_v56 = vmul.f32 %v10222_v25, %v11169_v57  ;;  %v11171_v44 = vld [vmem:[#allocation37_spill] sm:$0xff]  ;;  %v10474_v5 = vmul.f32 %v10222_v25, %v9955_v3 }
 0x425   :  { %11165 = vst [vmem:[#allocation15_spill] sm:$0xff] %v10446_v27  ;;  %v10462_v30 = vmul.f32 %v10220_v11, %v11171_v44  ;;  %v11172_v0 = vld [vmem:[#allocation41_spill] sm:$0xff]  ;;  %v11174_v27 = vld [vmem:[#allocation38_spill] sm:$0xff]  ;;  %v4219_v3 = vadd.f32 %v10226_v55, %v10242_v54  ;;  %v4226_v54 = vadd.f32 %v10224_v43, %v10270_v46  ;;  %v4233_v46 = vadd.f32 %v10226_v55, %v10298_v17 }
 0x426   :  { %11168 = vst [vmem:[#allocation45_spill] sm:$0xff] %v10454_v58  ;;  %11170 = vst [vmem:[#allocation40_spill] sm:$0xff] %v10458_v56  ;;  %v10466_v7 = vmul.f32 %v10222_v25, %v11172_v0  ;;  %v10470_v48 = vmul.f32 %v10220_v11, %v11174_v27  ;;  %v11175_v58 = vld [vmem:[#allocation21_spill] sm:$0xff]  ;;  %v11176_v56 = vld [vmem:[#allocation23_spill] sm:$0xff]  ;;  %v4216_v0 = vadd.f32 %v10224_v43, %v10230_v6 }
 0x427   :  { %v10478_v57 = vmul.f32 %v10220_v11, %v11175_v58  ;;  %v10482_v44 = vmul.f32 %v10222_v25, %v11176_v56  ;;  %v4218_v27 = vadd.f32 %v10224_v43, %v10238_v61  ;;  %v4220_v11 = vadd.f32 %v10224_v43, %v10246_v1  ;;  %4283 = vst [vmem:[%s10811_s7 + $0x18] sm:$0xff] %v4219_v3 }
 0x428   :  { %11173 = vst [vmem:[#allocation46_spill] sm:$0xff] %v10466_v7  ;;  %v4217_v7 = vadd.f32 %v10226_v55, %v10234_v36  ;;  %v4221_v58 = vadd.f32 %v10226_v55, %v10250_v35  ;;  %v4222_v25 = vadd.f32 %v10224_v43, %v10254_v2  ;;  %v4223_v6 = vadd.f32 %v10226_v55, %v10258_v34 }
 0x429   :  { %v4224_v36 = vadd.f32 %v10224_v43, %v10262_v4  ;;  %v4225_v61 = vadd.f32 %v10226_v55, %v10266_v24  ;;  %v4227_v1 = vadd.f32 %v10226_v55, %v10274_v40  ;;  %4280 = vst [vmem:[%s10811_s7] sm:$0xff] %v4216_v0  ;;  %4282 = vst [vmem:[%s10811_s7 + $0x10] sm:$0xff] %v4218_v27 }
 0x42a   :  { %4281 = vst [vmem:[%s10811_s7 + $0x8] sm:$0xff] %v4217_v7  ;;  %v4228_v35 = vadd.f32 %v10224_v43, %v10278_v31  ;;  %v4229_v2 = vadd.f32 %v10226_v55, %v10282_v39  ;;  %v4230_v34 = vadd.f32 %v10224_v43, %v10286_v19  ;;  %v4231_v4 = vadd.f32 %v10226_v55, %v10290_v59 }
 0x42b   :  { %4284 = vst [vmem:[%s10811_s7 + $0x20] sm:$0xff] %v4220_v11  ;;  %4285 = vst [vmem:[%s10811_s7 + $0x28] sm:$0xff] %v4221_v58  ;;  %v4232_v24 = vadd.f32 %v10224_v43, %v10294_v42  ;;  %v4234_v40 = vadd.f32 %v10224_v43, %v10302_v23  ;;  %v4235_v31 = vadd.f32 %v10226_v55, %v10306_v50  ;;  %v11181_v7 = vld [vmem:[#allocation9_spill] sm:$0xff]  ;;  %v11182_v27 = vld [vmem:[#allocation44_spill] sm:$0xff] }
 0x42c   :  { %4286 = vst [vmem:[%s10811_s7 + $0x30] sm:$0xff] %v4222_v25  ;;  %4287 = vst [vmem:[%s10811_s7 + $0x38] sm:$0xff] %v4223_v6  ;;  %v4236_v39 = vadd.f32 %v10224_v43, %v10310_v52  ;;  %v4237_v19 = vadd.f32 %v10226_v55, %v10314_v20  ;;  %v4238_v59 = vadd.f32 %v10224_v43, %v10318_v26  ;;  %v11183_v11 = vld [vmem:[#allocation15_spill] sm:$0xff] }
 0x42d   :  { %4288 = vst [vmem:[%s10811_s7 + $0x40] sm:$0xff] %v4224_v36  ;;  %4289 = vst [vmem:[%s10811_s7 + $0x48] sm:$0xff] %v4225_v61  ;;  %v4239_v42 = vadd.f32 %v10226_v55, %v10322_v16  ;;  %v4240_v17 = vadd.f32 %v10224_v43, %v10326_v47  ;;  %v4241_v23 = vadd.f32 %v10226_v55, %v10330_v38  ;;  %v11184_v6 = vld [vmem:[#allocation45_spill] sm:$0xff] }
 0x42e   :  { %4290 = vst [vmem:[%s10811_s7 + $0x50] sm:$0xff] %v4226_v54  ;;  %4291 = vst [vmem:[%s10811_s7 + $0x58] sm:$0xff] %v4227_v1  ;;  %v4242_v50 = vadd.f32 %v10224_v43, %v10334_v29  ;;  %v4243_v52 = vadd.f32 %v10226_v55, %v10338_v32  ;;  %v4244_v20 = vadd.f32 %v10224_v43, %v10342_v12 }
 0x42f   :  { %4292 = vst [vmem:[%s10811_s7 + $0x60] sm:$0xff] %v4228_v35  ;;  %4293 = vst [vmem:[%s10811_s7 + $0x68] sm:$0xff] %v4229_v2  ;;  %v4245_v26 = vadd.f32 %v10226_v55, %v10346_v62  ;;  %v4246_v16 = vadd.f32 %v10224_v43, %v10350_v49  ;;  %v4247_v47 = vadd.f32 %v10226_v55, %v10354_v60  ;;  %v11186_v1 = vld [vmem:[#allocation46_spill] sm:$0xff] }
 0x430   :  { %4294 = vst [vmem:[%s10811_s7 + $0x70] sm:$0xff] %v4230_v34  ;;  %4295 = vst [vmem:[%s10811_s7 + $0x78] sm:$0xff] %v4231_v4  ;;  %v4248_v38 = vadd.f32 %v10224_v43, %v10358_v63  ;;  %v4249_v29 = vadd.f32 %v10226_v55, %v10362_v41  ;;  %v4250_v32 = vadd.f32 %v10224_v43, %v10366_v14 }
 0x431   :  { %4296 = vst [vmem:[%s10811_s7 + $0x80] sm:$0xff] %v4232_v24  ;;  %4297 = vst [vmem:[%s10811_s7 + $0x88] sm:$0xff] %v4233_v46  ;;  %v4251_v12 = vadd.f32 %v10226_v55, %v10370_v21  ;;  %v4252_v62 = vadd.f32 %v10224_v43, %v10374_v8  ;;  %v4253_v49 = vadd.f32 %v10226_v55, %v10378_v28 }
 0x432   :  { %4298 = vst [vmem:[%s10811_s7 + $0x90] sm:$0xff] %v4234_v40  ;;  %4299 = vst [vmem:[%s10811_s7 + $0x98] sm:$0xff] %v4235_v31  ;;  %v4254_v60 = vadd.f32 %v10224_v43, %v10382_v45  ;;  %v4255_v63 = vadd.f32 %v10226_v55, %v10386_v53  ;;  %v4256_v41 = vadd.f32 %v10224_v43, %v10390_v9 }
 0x433   :  { %4300 = vst [vmem:[%s10811_s7 + $0xa0] sm:$0xff] %v4236_v39  ;;  %4301 = vst [vmem:[%s10811_s7 + $0xa8] sm:$0xff] %v4237_v19  ;;  %v4257_v14 = vadd.f32 %v10226_v55, %v10394_v13  ;;  %v4258_v21 = vadd.f32 %v10224_v43, %v10398_v51  ;;  %v4259_v8 = vadd.f32 %v10226_v55, %v10402_v37  ;;  %v11177_v13 = vld [vmem:[#allocation48_spill] sm:$0xff]  ;;  %v11178_v37 = vld [vmem:[#allocation31_spill] sm:$0xff] }
 0x434   :  { %4302 = vst [vmem:[%s10811_s7 + $0xb0] sm:$0xff] %v4238_v59  ;;  %4303 = vst [vmem:[%s10811_s7 + $0xb8] sm:$0xff] %v4239_v42  ;;  %v4260_v28 = vadd.f32 %v10224_v43, %v10406_v22  ;;  %v4261_v45 = vadd.f32 %v10226_v55, %v10410_v15  ;;  %v4262_v53 = vadd.f32 %v10224_v43, %v10414_v33  ;;  %v11179_v15 = vld [vmem:[#allocation51_spill] sm:$0xff] }
 0x435   :  { %4304 = vst [vmem:[%s10811_s7 + $0xc0] sm:$0xff] %v4240_v17  ;;  %4305 = vst [vmem:[%s10811_s7 + $0xc8] sm:$0xff] %v4241_v23  ;;  %v4263_v9 = vadd.f32 %v10226_v55, %v10418_v18  ;;  %v4264_v51 = vadd.f32 %v10224_v43, %v11177_v13  ;;  %v4265_v22 = vadd.f32 %v10226_v55, %v11178_v37  ;;  %v11180_v18 = vld [vmem:[#allocation35_spill] sm:$0xff] }
 0x436   :  { %4306 = vst [vmem:[%s10811_s7 + $0xd0] sm:$0xff] %v4242_v50  ;;  %4307 = vst [vmem:[%s10811_s7 + $0xd8] sm:$0xff] %v4243_v52  ;;  %v4266_v33 = vadd.f32 %v10224_v43, %v11179_v15  ;;  %v4267_v56 = vadd.f32 %v10226_v55, %v11180_v18  ;;  %v4268_v0 = vadd.f32 %v10224_v43, %v11181_v7 }
 0x437   :  { %4308 = vst [vmem:[%s10811_s7 + $0xe0] sm:$0xff] %v4244_v20  ;;  %4309 = vst [vmem:[%s10811_s7 + $0xe8] sm:$0xff] %v4245_v26  ;;  %v4269_v3 = vadd.f32 %v10226_v55, %v11182_v27  ;;  %v4270_v58 = vadd.f32 %v10224_v43, %v11183_v11  ;;  %v4271_v25 = vadd.f32 %v10226_v55, %v10450_v10  ;;  %v11185_v10 = vld [vmem:[#allocation40_spill] sm:$0xff] }
 0x438   :  { %4310 = vst [vmem:[%s10811_s7 + $0xf0] sm:$0xff] %v4246_v16  ;;  %4311 = vst [vmem:[%s10811_s7 + $0xf8] sm:$0xff] %v4247_v47  ;;  %v4272_v36 = vadd.f32 %v10224_v43, %v11184_v6  ;;  %v4273_v61 = vadd.f32 %v10226_v55, %v11185_v10  ;;  %v4274_v54 = vadd.f32 %v10224_v43, %v10462_v30 }
 0x439   :  { %4312 = vst [vmem:[%s10811_s7 + $0x100] sm:$0xff] %v4248_v38  ;;  %4313 = vst [vmem:[%s10811_s7 + $0x108] sm:$0xff] %v4249_v29  ;;  %v4275_v35 = vadd.f32 %v10226_v55, %v11186_v1  ;;  %v4276_v30 = vadd.f32 %v10224_v43, %v10470_v48  ;;  %v4277_v2 = vadd.f32 %v10226_v55, %v10474_v5 }
 0x43a   :  { %4314 = vst [vmem:[%s10811_s7 + $0x110] sm:$0xff] %v4250_v32  ;;  %4315 = vst [vmem:[%s10811_s7 + $0x118] sm:$0xff] %v4251_v12  ;;  %v4278_v34 = vadd.f32 %v10224_v43, %v10478_v57  ;;  %v4279_v4 = vadd.f32 %v10226_v55, %v10482_v44 }
 0x43b   :  { %4316 = vst [vmem:[%s10811_s7 + $0x120] sm:$0xff] %v4252_v62  ;;  %4317 = vst [vmem:[%s10811_s7 + $0x128] sm:$0xff] %v4253_v49 }
 0x43c   :  { %4318 = vst [vmem:[%s10811_s7 + $0x130] sm:$0xff] %v4254_v60  ;;  %4319 = vst [vmem:[%s10811_s7 + $0x138] sm:$0xff] %v4255_v63 }
 0x43d   :  { %4320 = vst [vmem:[%s10811_s7 + $0x140] sm:$0xff] %v4256_v41  ;;  %4321 = vst [vmem:[%s10811_s7 + $0x148] sm:$0xff] %v4257_v14 }
 0x43e   :  { %4322 = vst [vmem:[%s10811_s7 + $0x150] sm:$0xff] %v4258_v21  ;;  %4323 = vst [vmem:[%s10811_s7 + $0x158] sm:$0xff] %v4259_v8 }
 0x43f   :  { %4324 = vst [vmem:[%s10811_s7 + $0x160] sm:$0xff] %v4260_v28  ;;  %4325 = vst [vmem:[%s10811_s7 + $0x168] sm:$0xff] %v4261_v45 }
 0x440   :  { %4326 = vst [vmem:[%s10811_s7 + $0x170] sm:$0xff] %v4262_v53  ;;  %4327 = vst [vmem:[%s10811_s7 + $0x178] sm:$0xff] %v4263_v9 }
 0x441   :  { %4328 = vst [vmem:[%s10811_s7 + $0x180] sm:$0xff] %v4264_v51  ;;  %4329 = vst [vmem:[%s10811_s7 + $0x188] sm:$0xff] %v4265_v22 }
 0x442   :  { %4330 = vst [vmem:[%s10811_s7 + $0x190] sm:$0xff] %v4266_v33  ;;  %4331 = vst [vmem:[%s10811_s7 + $0x198] sm:$0xff] %v4267_v56 }
 0x443   :  { %4332 = vst [vmem:[%s10811_s7 + $0x1a0] sm:$0xff] %v4268_v0  ;;  %4333 = vst [vmem:[%s10811_s7 + $0x1a8] sm:$0xff] %v4269_v3 }
 0x444   :  { %4334 = vst [vmem:[%s10811_s7 + $0x1b0] sm:$0xff] %v4270_v58  ;;  %4335 = vst [vmem:[%s10811_s7 + $0x1b8] sm:$0xff] %v4271_v25 }
 0x445   :  { %4336 = vst [vmem:[%s10811_s7 + $0x1c0] sm:$0xff] %v4272_v36  ;;  %4337 = vst [vmem:[%s10811_s7 + $0x1c8] sm:$0xff] %v4273_v61 }
 0x446   :  { %4338 = vst [vmem:[%s10811_s7 + $0x1d0] sm:$0xff] %v4274_v54  ;;  %4339 = vst [vmem:[%s10811_s7 + $0x1d8] sm:$0xff] %v4275_v35 }
 0x447   :  { %4340 = vst [vmem:[%s10811_s7 + $0x1e0] sm:$0xff] %v4276_v30  ;;  %4341 = vst [vmem:[%s10811_s7 + $0x1e8] sm:$0xff] %v4277_v2 }
 0x448   :  { %4342 = vst [vmem:[%s10811_s7 + $0x1f0] sm:$0xff] %v4278_v34  ;;  %4343 = vst [vmem:[%s10811_s7 + $0x1f8] sm:$0xff] %v4279_v4 }
 0x449   :  { %4348 = vsyncpa [#allocation3], 1 }
 0x44a   :  { %4349 = vsyncpa [#allocation5], 1 }

</bundles_post_ra>
